<compile_context>
chip_gen: v7x
topology: tpu7x:2x2x1
jax: 0.10.0
libtpu: 0.0.40
codegen_flags: <defaults>
</compile_context>

<pallas_src>
import math

import jax
import jax.numpy as jnp
from jax.experimental import pallas as pl
from jax.experimental.pallas import tpu as pltpu

MLP_WIDTH = 128
POS_EMBED_SIZE = 3
COND_CODE_SIZE = 69
COND_MAX_LEN = 4
OUT_PAD = 8          # lane-pad the 3-wide output


def _relu(x):
    return jnp.maximum(x, 0.0)


# ---------------------------------------------------------------------------
# Condition branch (L = 4 tokens, run once) -> plain JAX / XLA.
#   cond_in_proj -> + learnable embedding -> 1-head self-attention ->
#   take token 0 -> cond_out_proj.
# ---------------------------------------------------------------------------
def _cond_branch_jax(condition_code, p):
    cc = condition_code[0]                                   # (L, 69)
    L = cc.shape[0]
    cc_in = jax.nn.relu(cc @ p["w_cin"] + p["b_cin"])        # (L, W)
    sa_in = cc_in + p["cond_embedding"][:L]                  # (L, W)
    q = sa_in @ p["wq"] + p["bq"]
    k = sa_in @ p["wk"] + p["bk"]
    v = sa_in @ p["wv"] + p["bv"]
    attn = jax.nn.softmax((q @ k.T) / math.sqrt(MLP_WIDTH), axis=-1) @ v
    # TODO(synk): nn.MultiheadAttention dropout (p=0.2) is a no-op in eval mode; omitted.
    sa_out = attn @ p["wo"] + p["bo"]
    return jax.nn.relu(sa_out[0:1] @ p["w_cout"] + p["b_cout"])   # (1, W)


# ---------------------------------------------------------------------------
# Hot-path kernel: per-point MLP, tiled over N points.
# The condition contribution is already folded into b0/b4; the skip-concat is
# expressed as split matmuls (h @ w4[:128] + pe @ w4[256:]).
# bf16 matmul inputs, f32 accumulation; last layer kept in f32.
# ---------------------------------------------------------------------------
def _mlp_kernel(pos_embed_ref,
                w_pe_ref, b_pe_ref,
                w0p_ref, b0_ref,
                w1_ref, b1_ref, w2_ref, b2_ref, w3_ref, b3_ref,
                w4h_ref, w4p_ref, b4_ref,
                w5_ref, b5_ref,
                w6_ref, b6_ref,
                off_ref):
    f32 = jnp.float32
    bf16 = jnp.bfloat16

    # pos_embed_proj: (TN, 3) @ (3, W)  (tiny K -> keep f32)
    pe = _relu(jnp.dot(pos_embed_ref[...], w_pe_ref[...],
                       preferred_element_type=f32) + b_pe_ref[...])      # (TN, W)
    pe_bf = pe.astype(bf16)

    # block_mlps[0]: pe part of the (256 -> 128) layer; cond part folded into b0.
    h = _relu(jnp.dot(pe_bf, w0p_ref[...], preferred_element_type=f32) + b0_ref[...])
    h = _relu(jnp.dot(h.astype(bf16), w1_ref[...], preferred_element_type=f32) + b1_ref[...])
    h = _relu(jnp.dot(h.astype(bf16), w2_ref[...], preferred_element_type=f32) + b2_ref[...])
    h = _relu(jnp.dot(h.astype(bf16), w3_ref[...], preferred_element_type=f32) + b3_ref[...])
    # skip layer (384 -> 128): h part + pe part; cond part folded into b4.
    h = _relu(jnp.dot(h.astype(bf16), w4h_ref[...], preferred_element_type=f32)
              + jnp.dot(pe_bf, w4p_ref[...], preferred_element_type=f32)
              + b4_ref[...])
    h = _relu(jnp.dot(h.astype(bf16), w5_ref[...], preferred_element_type=f32) + b5_ref[...])
    # last layer (128 -> 3, zero-padded to 8 lanes), kept in f32 (weights ~1e-5).
    off_ref[...] = jnp.dot(h, w6_ref[...], preferred_element_type=f32) + b6_ref[...]


def non_rigid_motion_mlp(pos_embed, pos_xyz, condition_code, params, *, tile_n=512):
    N = pos_embed.shape[0]
    f32 = jnp.float32
    bf16 = jnp.bfloat16

    # ---- condition branch (once, tiny) ----
    cond_out = _cond_branch_jax(condition_code, params)          # (1, W) f32

    # ---- fold the point-invariant condition contribution into biases ----
    w0, w4 = params["w0"], params["w4"]                          # (256,128), (384,128)
    b0_eff = params["b0"] + cond_out @ w0[:MLP_WIDTH]            # (1, W)
    b4_eff = params["b4"] + cond_out @ w4[MLP_WIDTH:2 * MLP_WIDTH]

    # ---- weight prep: bf16 for the big matmuls, f32 first/last layers ----
    w_pe, b_pe = params["w_pe"], params["b_pe"]                  # f32 (K=3)
    w0p = w0[MLP_WIDTH:].astype(bf16)                            # pe rows of block_mlps[0]
    w1, b1 = params["w1"].astype(bf16), params["b1"]
    w2, b2 = params["w2"].astype(bf16), params["b2"]
    w3, b3 = params["w3"].astype(bf16), params["b3"]
    w4h = w4[:MLP_WIDTH].astype(bf16)                            # h rows of skip layer
    w4p = w4[2 * MLP_WIDTH:].astype(bf16)                        # pe rows of skip layer
    w5, b5 = params["w5"].astype(bf16), params["b5"]
    w6p = jnp.zeros((MLP_WIDTH, OUT_PAD), f32).at[:, :3].set(params["w6"])
    b6p = jnp.zeros((1, OUT_PAD), f32).at[:, :3].set(params["b6"])

    # ---- tiling over N: pad with pl.cdiv; prefer >= 2 grid steps (v7x: 2 TCs) ----
    while tile_n > 128 and pl.cdiv(N, tile_n) < 2:
        tile_n //= 2
    n_tiles = pl.cdiv(N, tile_n)
    N_pad = n_tiles * tile_n
    pe_in = pos_embed if N_pad == N else jnp.pad(pos_embed, ((0, N_pad - N), (0, 0)))

    weight_args = [w_pe, b_pe, w0p, b0_eff, w1, b1, w2, b2, w3, b3,
                   w4h, w4p, b4_eff, w5, b5, w6p, b6p]

    def full(a):
        return pl.BlockSpec(a.shape, lambda i: (0, 0))

    weight_specs = [full(a) for a in weight_args]

    off_pad = pl.pallas_call(
        _mlp_kernel,
        out_shape=jax.ShapeDtypeStruct((N_pad, OUT_PAD), f32),
        grid_spec=pltpu.PrefetchScalarGridSpec(
            num_scalar_prefetch=0,
            grid=(n_tiles,),
            in_specs=[pl.BlockSpec((tile_n, POS_EMBED_SIZE), lambda i: (i, 0))]
                     + weight_specs,
            out_specs=pl.BlockSpec((tile_n, OUT_PAD), lambda i: (i, 0)),
        ),
        compiler_params=pltpu.CompilerParams(
            dimension_semantics=("parallel",),
            vmem_limit_bytes=32 * 1024 * 1024,
        ),
    )(pe_in, *weight_args)

    offsets = off_pad[:N, :3]
    return {"xyz": pos_xyz + offsets, "offsets": offsets}


# ---------------------------------------------------------------------------
# Deterministic parameter initialization (shapes from the module __init__).
# Weights stored transposed w.r.t. PyTorch: (in_features, out_features).
# ---------------------------------------------------------------------------
def init_params(seed=0):
    key = jax.random.PRNGKey(seed)
    ks = jax.random.split(key, 16)

    def linear(k, fan_in, fan_out, scale=None):
        s = scale if scale is not None else math.sqrt(2.0 / fan_in)
        w = jax.random.normal(k, (fan_in, fan_out), jnp.float32) * s
        b = jnp.zeros((1, fan_out), jnp.float32)
        return w, b

    p = {}
    p["w_pe"], p["b_pe"] = linear(ks[0], POS_EMBED_SIZE, MLP_WIDTH)           # pos_embed_proj
    p["w_cin"], p["b_cin"] = linear(ks[1], COND_CODE_SIZE, MLP_WIDTH)         # cond_in_proj
    p["cond_embedding"] = jax.random.normal(ks[2], (COND_MAX_LEN, MLP_WIDTH),
                                            jnp.float32)                      # nn.Embedding
    attn_s = 1.0 / math.sqrt(MLP_WIDTH)
    p["wq"], p["bq"] = linear(ks[3], MLP_WIDTH, MLP_WIDTH, scale=attn_s)      # in_proj q/k/v
    p["wk"], p["bk"] = linear(ks[4], MLP_WIDTH, MLP_WIDTH, scale=attn_s)
    p["wv"], p["bv"] = linear(ks[5], MLP_WIDTH, MLP_WIDTH, scale=attn_s)
    p["wo"], p["bo"] = linear(ks[6], MLP_WIDTH, MLP_WIDTH, scale=attn_s)      # out_proj
    p["w_cout"], p["b_cout"] = linear(ks[7], MLP_WIDTH, MLP_WIDTH)            # cond_out_proj
    p["w0"], p["b0"] = linear(ks[8], 2 * MLP_WIDTH, MLP_WIDTH)                # block_mlps[0]
    p["w1"], p["b1"] = linear(ks[9], MLP_WIDTH, MLP_WIDTH)
    p["w2"], p["b2"] = linear(ks[10], MLP_WIDTH, MLP_WIDTH)
    p["w3"], p["b3"] = linear(ks[11], MLP_WIDTH, MLP_WIDTH)
    p["w4"], p["b4"] = linear(ks[12], 3 * MLP_WIDTH, MLP_WIDTH)               # skip layer
    p["w5"], p["b5"] = linear(ks[13], MLP_WIDTH, MLP_WIDTH)
    # last layer: uniform(-1e-5, 1e-5) weight, zero bias (as in the module)
    p["w6"] = jax.random.uniform(ks[14], (MLP_WIDTH, 3), jnp.float32, -1e-5, 1e-5)
    p["b6"] = jnp.zeros((1, 3), jnp.float32)
    return p


# ---------------------------------------------------------------------------
# Pure-JAX f32 reference (mirrors the PyTorch forward exactly).
# ---------------------------------------------------------------------------
def reference(pos_embed, pos_xyz, condition_code, p):
    cond_out = _cond_branch_jax(condition_code, p)                      # (1, W)

    pe = jax.nn.relu(pos_embed @ p["w_pe"] + p["b_pe"])
    cond_tiled = jnp.tile(cond_out, (pe.shape[0], 1))
    pos_condition = jnp.concatenate([cond_tiled, pe], axis=-1)
    h = jax.nn.relu(pos_condition @ p["w0"] + p["b0"])
    h = jax.nn.relu(h @ p["w1"] + p["b1"])
    h = jax.nn.relu(h @ p["w2"] + p["b2"])
    h = jax.nn.relu(h @ p["w3"] + p["b3"])
    h = jnp.concatenate([h, pos_condition], axis=-1)
    h = jax.nn.relu(h @ p["w4"] + p["b4"])
    h = jax.nn.relu(h @ p["w5"] + p["b5"])
    trans = h @ p["w6"] + p["b6"]
    return {"xyz": pos_xyz + trans, "offsets": trans}


if __name__ == "__main__":
    key = jax.random.PRNGKey(0)
    k1, k2, k3 = jax.random.split(key, 3)

    N = 1000                              # not a multiple of tile_n -> exercises padding
    L = COND_MAX_LEN                      # condition sequence length
    pos_embed = jax.random.normal(k1, (N, POS_EMBED_SIZE), jnp.float32)
    pos_xyz = jax.random.normal(k2, (N, 3), jnp.float32)
    condition_code = jax.random.normal(k3, (1, L, COND_CODE_SIZE), jnp.float32)

    params = init_params(0)

    out = non_rigid_motion_mlp(pos_embed, pos_xyz, condition_code, params, tile_n=512)
    jax.block_until_ready(out)

    ref = reference(pos_embed, pos_xyz, condition_code, params)
    assert out["xyz"].shape == (N, 3) and out["offsets"].shape == (N, 3)
    assert jnp.allclose(out["offsets"], ref["offsets"], atol=2e-3, rtol=1e-2)
    assert jnp.allclose(out["xyz"], ref["xyz"], atol=2e-3, rtol=1e-2)

    print("KERNEL_OK")
</pallas_src>

<mosaic_0001>
module attributes {stable_mosaic.version = 11 : i64} {
  func.func @_mlp_kernel(%arg0: i32, %arg1: memref<512x3xf32, #tpu.memory_space<vmem>>, %arg2: memref<3x128xf32, #tpu.memory_space<vmem>>, %arg3: memref<1x128xf32, #tpu.memory_space<vmem>>, %arg4: memref<128x128xbf16, #tpu.memory_space<vmem>>, %arg5: memref<1x128xf32, #tpu.memory_space<vmem>>, %arg6: memref<128x128xbf16, #tpu.memory_space<vmem>>, %arg7: memref<1x128xf32, #tpu.memory_space<vmem>>, %arg8: memref<128x128xbf16, #tpu.memory_space<vmem>>, %arg9: memref<1x128xf32, #tpu.memory_space<vmem>>, %arg10: memref<128x128xbf16, #tpu.memory_space<vmem>>, %arg11: memref<1x128xf32, #tpu.memory_space<vmem>>, %arg12: memref<128x128xbf16, #tpu.memory_space<vmem>>, %arg13: memref<128x128xbf16, #tpu.memory_space<vmem>>, %arg14: memref<1x128xf32, #tpu.memory_space<vmem>>, %arg15: memref<128x128xbf16, #tpu.memory_space<vmem>>, %arg16: memref<1x128xf32, #tpu.memory_space<vmem>>, %arg17: memref<128x8xf32, #tpu.memory_space<vmem>>, %arg18: memref<1x8xf32, #tpu.memory_space<vmem>>, %arg19: memref<512x8xf32, #tpu.memory_space<vmem>>) attributes {dimension_semantics = [#tpu.dimension_semantics<parallel>], iteration_bounds = array<i64: 2>, scalar_prefetch = 0 : i64, scratch_operands = 0 : i64, tpu.core_type = #tpu.core_type<tc>, window_params = [{transform_indices = @transform_0, window_bounds = array<i64: 512, 3>}, {pipeline_mode = #tpu.pipeline_mode<synchronous>, transform_indices = @transform_1, window_bounds = array<i64: 3, 128>}, {pipeline_mode = #tpu.pipeline_mode<synchronous>, transform_indices = @transform_2, window_bounds = array<i64: 1, 128>}, {pipeline_mode = #tpu.pipeline_mode<synchronous>, transform_indices = @transform_3, window_bounds = array<i64: 128, 128>}, {pipeline_mode = #tpu.pipeline_mode<synchronous>, transform_indices = @transform_4, window_bounds = array<i64: 1, 128>}, {pipeline_mode = #tpu.pipeline_mode<synchronous>, transform_indices = @transform_5, window_bounds = array<i64: 128, 128>}, {pipeline_mode = #tpu.pipeline_mode<synchronous>, transform_indices = @transform_6, window_bounds = array<i64: 1, 128>}, {pipeline_mode = #tpu.pipeline_mode<synchronous>, transform_indices = @transform_7, window_bounds = array<i64: 128, 128>}, {pipeline_mode = #tpu.pipeline_mode<synchronous>, transform_indices = @transform_8, window_bounds = array<i64: 1, 128>}, {pipeline_mode = #tpu.pipeline_mode<synchronous>, transform_indices = @transform_9, window_bounds = array<i64: 128, 128>}, {pipeline_mode = #tpu.pipeline_mode<synchronous>, transform_indices = @transform_10, window_bounds = array<i64: 1, 128>}, {pipeline_mode = #tpu.pipeline_mode<synchronous>, transform_indices = @transform_11, window_bounds = array<i64: 128, 128>}, {pipeline_mode = #tpu.pipeline_mode<synchronous>, transform_indices = @transform_12, window_bounds = array<i64: 128, 128>}, {pipeline_mode = #tpu.pipeline_mode<synchronous>, transform_indices = @transform_13, window_bounds = array<i64: 1, 128>}, {pipeline_mode = #tpu.pipeline_mode<synchronous>, transform_indices = @transform_14, window_bounds = array<i64: 128, 128>}, {pipeline_mode = #tpu.pipeline_mode<synchronous>, transform_indices = @transform_15, window_bounds = array<i64: 1, 128>}, {pipeline_mode = #tpu.pipeline_mode<synchronous>, transform_indices = @transform_16, window_bounds = array<i64: 128, 8>}, {pipeline_mode = #tpu.pipeline_mode<synchronous>, transform_indices = @transform_17, window_bounds = array<i64: 1, 8>}, {transform_indices = @transform_18, window_bounds = array<i64: 512, 8>}]} {
    %c0 = arith.constant 0 : index
    %c0_0 = arith.constant 0 : index
    %0 = vector.load %arg1[%c0, %c0_0] : memref<512x3xf32, #tpu.memory_space<vmem>>, vector<512x3xf32>
    %c0_1 = arith.constant 0 : index
    %c0_2 = arith.constant 0 : index
    %1 = vector.load %arg2[%c0_1, %c0_2] : memref<3x128xf32, #tpu.memory_space<vmem>>, vector<3x128xf32>
    %cst = arith.constant dense<0.000000e+00> : vector<512x128xf32>
    %2 = tpu.matmul %0, %1, %cst {dimension_numbers = #tpu.dot_dimension_numbers<[1], [0], [0], [1], [0, 0, 1, 1], [], []>} : vector<512x3xf32>, vector<3x128xf32>, vector<512x128xf32> -> vector<512x128xf32>
    %c0_3 = arith.constant 0 : index
    %c0_4 = arith.constant 0 : index
    %3 = vector.load %arg3[%c0_3, %c0_4] : memref<1x128xf32, #tpu.memory_space<vmem>>, vector<1x128xf32>
    %4 = vector.broadcast %3 : vector<1x128xf32> to vector<512x128xf32>
    %5 = arith.addf %2, %4 : vector<512x128xf32>
    %cst_5 = arith.constant 0.000000e+00 : f32
    %6 = vector.broadcast %cst_5 : f32 to vector<512x128xf32>
    %7 = arith.maximumf %5, %6 : vector<512x128xf32>
    %8 = arith.truncf %7 : vector<512x128xf32> to vector<512x128xbf16>
    %c0_6 = arith.constant 0 : index
    %c0_7 = arith.constant 0 : index
    %9 = vector.load %arg4[%c0_6, %c0_7] : memref<128x128xbf16, #tpu.memory_space<vmem>>, vector<128x128xbf16>
    %cst_8 = arith.constant dense<0.000000e+00> : vector<512x128xf32>
    %10 = tpu.matmul %8, %9, %cst_8 {dimension_numbers = #tpu.dot_dimension_numbers<[1], [0], [0], [1], [0, 0, 1, 1], [], []>} : vector<512x128xbf16>, vector<128x128xbf16>, vector<512x128xf32> -> vector<512x128xf32>
    %c0_9 = arith.constant 0 : index
    %c0_10 = arith.constant 0 : index
    %11 = vector.load %arg5[%c0_9, %c0_10] : memref<1x128xf32, #tpu.memory_space<vmem>>, vector<1x128xf32>
    %12 = vector.broadcast %11 : vector<1x128xf32> to vector<512x128xf32>
    %13 = arith.addf %10, %12 : vector<512x128xf32>
    %cst_11 = arith.constant 0.000000e+00 : f32
    %14 = vector.broadcast %cst_11 : f32 to vector<512x128xf32>
    %15 = arith.maximumf %13, %14 : vector<512x128xf32>
    %16 = arith.truncf %15 : vector<512x128xf32> to vector<512x128xbf16>
    %c0_12 = arith.constant 0 : index
    %c0_13 = arith.constant 0 : index
    %17 = vector.load %arg6[%c0_12, %c0_13] : memref<128x128xbf16, #tpu.memory_space<vmem>>, vector<128x128xbf16>
    %cst_14 = arith.constant dense<0.000000e+00> : vector<512x128xf32>
    %18 = tpu.matmul %16, %17, %cst_14 {dimension_numbers = #tpu.dot_dimension_numbers<[1], [0], [0], [1], [0, 0, 1, 1], [], []>} : vector<512x128xbf16>, vector<128x128xbf16>, vector<512x128xf32> -> vector<512x128xf32>
    %c0_15 = arith.constant 0 : index
    %c0_16 = arith.constant 0 : index
    %19 = vector.load %arg7[%c0_15, %c0_16] : memref<1x128xf32, #tpu.memory_space<vmem>>, vector<1x128xf32>
    %20 = vector.broadcast %19 : vector<1x128xf32> to vector<512x128xf32>
    %21 = arith.addf %18, %20 : vector<512x128xf32>
    %cst_17 = arith.constant 0.000000e+00 : f32
    %22 = vector.broadcast %cst_17 : f32 to vector<512x128xf32>
    %23 = arith.maximumf %21, %22 : vector<512x128xf32>
    %24 = arith.truncf %23 : vector<512x128xf32> to vector<512x128xbf16>
    %c0_18 = arith.constant 0 : index
    %c0_19 = arith.constant 0 : index
    %25 = vector.load %arg8[%c0_18, %c0_19] : memref<128x128xbf16, #tpu.memory_space<vmem>>, vector<128x128xbf16>
    %cst_20 = arith.constant dense<0.000000e+00> : vector<512x128xf32>
    %26 = tpu.matmul %24, %25, %cst_20 {dimension_numbers = #tpu.dot_dimension_numbers<[1], [0], [0], [1], [0, 0, 1, 1], [], []>} : vector<512x128xbf16>, vector<128x128xbf16>, vector<512x128xf32> -> vector<512x128xf32>
    %c0_21 = arith.constant 0 : index
    %c0_22 = arith.constant 0 : index
    %27 = vector.load %arg9[%c0_21, %c0_22] : memref<1x128xf32, #tpu.memory_space<vmem>>, vector<1x128xf32>
    %28 = vector.broadcast %27 : vector<1x128xf32> to vector<512x128xf32>
    %29 = arith.addf %26, %28 : vector<512x128xf32>
    %cst_23 = arith.constant 0.000000e+00 : f32
    %30 = vector.broadcast %cst_23 : f32 to vector<512x128xf32>
    %31 = arith.maximumf %29, %30 : vector<512x128xf32>
    %32 = arith.truncf %31 : vector<512x128xf32> to vector<512x128xbf16>
    %c0_24 = arith.constant 0 : index
    %c0_25 = arith.constant 0 : index
    %33 = vector.load %arg10[%c0_24, %c0_25] : memref<128x128xbf16, #tpu.memory_space<vmem>>, vector<128x128xbf16>
    %cst_26 = arith.constant dense<0.000000e+00> : vector<512x128xf32>
    %34 = tpu.matmul %32, %33, %cst_26 {dimension_numbers = #tpu.dot_dimension_numbers<[1], [0], [0], [1], [0, 0, 1, 1], [], []>} : vector<512x128xbf16>, vector<128x128xbf16>, vector<512x128xf32> -> vector<512x128xf32>
    %c0_27 = arith.constant 0 : index
    %c0_28 = arith.constant 0 : index
    %35 = vector.load %arg11[%c0_27, %c0_28] : memref<1x128xf32, #tpu.memory_space<vmem>>, vector<1x128xf32>
    %36 = vector.broadcast %35 : vector<1x128xf32> to vector<512x128xf32>
    %37 = arith.addf %34, %36 : vector<512x128xf32>
    %cst_29 = arith.constant 0.000000e+00 : f32
    %38 = vector.broadcast %cst_29 : f32 to vector<512x128xf32>
    %39 = arith.maximumf %37, %38 : vector<512x128xf32>
    %40 = arith.truncf %39 : vector<512x128xf32> to vector<512x128xbf16>
    %c0_30 = arith.constant 0 : index
    %c0_31 = arith.constant 0 : index
    %41 = vector.load %arg12[%c0_30, %c0_31] : memref<128x128xbf16, #tpu.memory_space<vmem>>, vector<128x128xbf16>
    %cst_32 = arith.constant dense<0.000000e+00> : vector<512x128xf32>
    %42 = tpu.matmul %40, %41, %cst_32 {dimension_numbers = #tpu.dot_dimension_numbers<[1], [0], [0], [1], [0, 0, 1, 1], [], []>} : vector<512x128xbf16>, vector<128x128xbf16>, vector<512x128xf32> -> vector<512x128xf32>
    %c0_33 = arith.constant 0 : index
    %c0_34 = arith.constant 0 : index
    %43 = vector.load %arg13[%c0_33, %c0_34] : memref<128x128xbf16, #tpu.memory_space<vmem>>, vector<128x128xbf16>
    %cst_35 = arith.constant dense<0.000000e+00> : vector<512x128xf32>
    %44 = tpu.matmul %8, %43, %cst_35 {dimension_numbers = #tpu.dot_dimension_numbers<[1], [0], [0], [1], [0, 0, 1, 1], [], []>} : vector<512x128xbf16>, vector<128x128xbf16>, vector<512x128xf32> -> vector<512x128xf32>
    %45 = arith.addf %42, %44 : vector<512x128xf32>
    %c0_36 = arith.constant 0 : index
    %c0_37 = arith.constant 0 : index
    %46 = vector.load %arg14[%c0_36, %c0_37] : memref<1x128xf32, #tpu.memory_space<vmem>>, vector<1x128xf32>
    %47 = vector.broadcast %46 : vector<1x128xf32> to vector<512x128xf32>
    %48 = arith.addf %45, %47 : vector<512x128xf32>
    %cst_38 = arith.constant 0.000000e+00 : f32
    %49 = vector.broadcast %cst_38 : f32 to vector<512x128xf32>
    %50 = arith.maximumf %48, %49 : vector<512x128xf32>
    %51 = arith.truncf %50 : vector<512x128xf32> to vector<512x128xbf16>
    %c0_39 = arith.constant 0 : index
    %c0_40 = arith.constant 0 : index
    %52 = vector.load %arg15[%c0_39, %c0_40] : memref<128x128xbf16, #tpu.memory_space<vmem>>, vector<128x128xbf16>
    %cst_41 = arith.constant dense<0.000000e+00> : vector<512x128xf32>
    %53 = tpu.matmul %51, %52, %cst_41 {dimension_numbers = #tpu.dot_dimension_numbers<[1], [0], [0], [1], [0, 0, 1, 1], [], []>} : vector<512x128xbf16>, vector<128x128xbf16>, vector<512x128xf32> -> vector<512x128xf32>
    %c0_42 = arith.constant 0 : index
    %c0_43 = arith.constant 0 : index
    %54 = vector.load %arg16[%c0_42, %c0_43] : memref<1x128xf32, #tpu.memory_space<vmem>>, vector<1x128xf32>
    %55 = vector.broadcast %54 : vector<1x128xf32> to vector<512x128xf32>
    %56 = arith.addf %53, %55 : vector<512x128xf32>
    %cst_44 = arith.constant 0.000000e+00 : f32
    %57 = vector.broadcast %cst_44 : f32 to vector<512x128xf32>
    %58 = arith.maximumf %56, %57 : vector<512x128xf32>
    %c0_45 = arith.constant 0 : index
    %c0_46 = arith.constant 0 : index
    %59 = vector.load %arg17[%c0_45, %c0_46] : memref<128x8xf32, #tpu.memory_space<vmem>>, vector<128x8xf32>
    %cst_47 = arith.constant dense<0.000000e+00> : vector<512x8xf32>
    %60 = tpu.matmul %58, %59, %cst_47 {dimension_numbers = #tpu.dot_dimension_numbers<[1], [0], [0], [1], [0, 0, 1, 1], [], []>} : vector<512x128xf32>, vector<128x8xf32>, vector<512x8xf32> -> vector<512x8xf32>
    %c0_48 = arith.constant 0 : index
    %c0_49 = arith.constant 0 : index
    %61 = vector.load %arg18[%c0_48, %c0_49] : memref<1x8xf32, #tpu.memory_space<vmem>>, vector<1x8xf32>
    %62 = vector.broadcast %61 : vector<1x8xf32> to vector<512x8xf32>
    %63 = arith.addf %60, %62 : vector<512x8xf32>
    %c0_50 = arith.constant 0 : index
    %c0_51 = arith.constant 0 : index
    %64 = vector.load %arg19[%c0_50, %c0_51] : memref<512x8xf32, #tpu.memory_space<vmem>>, vector<512x8xf32>
    tpu.vector_store %arg19[%c0_50, %c0_51], %63 {strides = array<i32>} : memref<512x8xf32, #tpu.memory_space<vmem>>, vector<512x8xf32>,
    return
  }
  func.func @transform_0(%arg0: i32) -> (i32, i32) {
    %c0_i32 = arith.constant 0 : i32
    %c0_i32_0 = arith.constant 0 : i32
    return %arg0, %c0_i32 : i32, i32
  }
  func.func @transform_1(%arg0: i32) -> (i32, i32) {
    %c0_i32 = arith.constant 0 : i32
    %c0_i32_0 = arith.constant 0 : i32
    %c0_i32_1 = arith.constant 0 : i32
    return %c0_i32, %c0_i32_0 : i32, i32
  }
  func.func @transform_2(%arg0: i32) -> (i32, i32) {
    %c0_i32 = arith.constant 0 : i32
    %c0_i32_0 = arith.constant 0 : i32
    %c0_i32_1 = arith.constant 0 : i32
    return %c0_i32, %c0_i32_0 : i32, i32
  }
  func.func @transform_3(%arg0: i32) -> (i32, i32) {
    %c0_i32 = arith.constant 0 : i32
    %c0_i32_0 = arith.constant 0 : i32
    %c0_i32_1 = arith.constant 0 : i32
    return %c0_i32, %c0_i32_0 : i32, i32
  }
  func.func @transform_4(%arg0: i32) -> (i32, i32) {
    %c0_i32 = arith.constant 0 : i32
    %c0_i32_0 = arith.constant 0 : i32
    %c0_i32_1 = arith.constant 0 : i32
    return %c0_i32, %c0_i32_0 : i32, i32
  }
  func.func @transform_5(%arg0: i32) -> (i32, i32) {
    %c0_i32 = arith.constant 0 : i32
    %c0_i32_0 = arith.constant 0 : i32
    %c0_i32_1 = arith.constant 0 : i32
    return %c0_i32, %c0_i32_0 : i32, i32
  }
  func.func @transform_6(%arg0: i32) -> (i32, i32) {
    %c0_i32 = arith.constant 0 : i32
    %c0_i32_0 = arith.constant 0 : i32
    %c0_i32_1 = arith.constant 0 : i32
    return %c0_i32, %c0_i32_0 : i32, i32
  }
  func.func @transform_7(%arg0: i32) -> (i32, i32) {
    %c0_i32 = arith.constant 0 : i32
    %c0_i32_0 = arith.constant 0 : i32
    %c0_i32_1 = arith.constant 0 : i32
    return %c0_i32, %c0_i32_0 : i32, i32
  }
  func.func @transform_8(%arg0: i32) -> (i32, i32) {
    %c0_i32 = arith.constant 0 : i32
    %c0_i32_0 = arith.constant 0 : i32
    %c0_i32_1 = arith.constant 0 : i32
    return %c0_i32, %c0_i32_0 : i32, i32
  }
  func.func @transform_9(%arg0: i32) -> (i32, i32) {
    %c0_i32 = arith.constant 0 : i32
    %c0_i32_0 = arith.constant 0 : i32
    %c0_i32_1 = arith.constant 0 : i32
    return %c0_i32, %c0_i32_0 : i32, i32
  }
  func.func @transform_10(%arg0: i32) -> (i32, i32) {
    %c0_i32 = arith.constant 0 : i32
    %c0_i32_0 = arith.constant 0 : i32
    %c0_i32_1 = arith.constant 0 : i32
    return %c0_i32, %c0_i32_0 : i32, i32
  }
  func.func @transform_11(%arg0: i32) -> (i32, i32) {
    %c0_i32 = arith.constant 0 : i32
    %c0_i32_0 = arith.constant 0 : i32
    %c0_i32_1 = arith.constant 0 : i32
    return %c0_i32, %c0_i32_0 : i32, i32
  }
  func.func @transform_12(%arg0: i32) -> (i32, i32) {
    %c0_i32 = arith.constant 0 : i32
    %c0_i32_0 = arith.constant 0 : i32
    %c0_i32_1 = arith.constant 0 : i32
    return %c0_i32, %c0_i32_0 : i32, i32
  }
  func.func @transform_13(%arg0: i32) -> (i32, i32) {
    %c0_i32 = arith.constant 0 : i32
    %c0_i32_0 = arith.constant 0 : i32
    %c0_i32_1 = arith.constant 0 : i32
    return %c0_i32, %c0_i32_0 : i32, i32
  }
  func.func @transform_14(%arg0: i32) -> (i32, i32) {
    %c0_i32 = arith.constant 0 : i32
    %c0_i32_0 = arith.constant 0 : i32
    %c0_i32_1 = arith.constant 0 : i32
    return %c0_i32, %c0_i32_0 : i32, i32
  }
  func.func @transform_15(%arg0: i32) -> (i32, i32) {
    %c0_i32 = arith.constant 0 : i32
    %c0_i32_0 = arith.constant 0 : i32
    %c0_i32_1 = arith.constant 0 : i32
    return %c0_i32, %c0_i32_0 : i32, i32
  }
  func.func @transform_16(%arg0: i32) -> (i32, i32) {
    %c0_i32 = arith.constant 0 : i32
    %c0_i32_0 = arith.constant 0 : i32
    %c0_i32_1 = arith.constant 0 : i32
    return %c0_i32, %c0_i32_0 : i32, i32
  }
  func.func @transform_17(%arg0: i32) -> (i32, i32) {
    %c0_i32 = arith.constant 0 : i32
    %c0_i32_0 = arith.constant 0 : i32
    %c0_i32_1 = arith.constant 0 : i32
    return %c0_i32, %c0_i32_0 : i32, i32
  }
  func.func @transform_18(%arg0: i32) -> (i32, i32) {
    %c0_i32 = arith.constant 0 : i32
    %c0_i32_0 = arith.constant 0 : i32
    return %arg0, %c0_i32 : i32, i32
  }
}

</mosaic_0001>

<bundles_post_ra>
// kernel: tpu_custom_call.1
= control target key start
LH: loop header
LB: loop body
LE: loop exit
PB: predicated region body
PF: predicated region fallthrough
CT: control target
= control target key end

     0   :  { %s6596_s27 = smov 0   ;;  %s7779_s0 = inlined_call_operand.vmem [shape: f32[1024,3], index: 0, kind: input, shape index: {}]   ;;  %s7780_s1 = inlined_call_operand.vmem [shape: f32[3,128], index: 1, kind: input, shape index: {}]   ;;  %s7781_s2 = inlined_call_operand.vmem [shape: f32[1,128], index: 2, kind: input, shape index: {}]   ;;  %s7782_s3 = inlined_call_operand.vmem [shape: bf16[128,128], index: 3, kind: input, shape index: {}]   ;;  %s7783_s4 = inlined_call_operand.vmem [shape: f32[1,128], index: 4, kind: input, shape index: {}]   ;;  %s7784_s5 = inlined_call_operand.vmem [shape: bf16[128,128], index: 5, kind: input, shape index: {}]   ;;  %s7785_s6 = inlined_call_operand.vmem [shape: f32[1,128], index: 6, kind: input, shape index: {}]   ;;  %s7786_s7 = inlined_call_operand.vmem [shape: bf16[128,128], index: 7, kind: input, shape index: {}]   ;;  %s7787_s8 = inlined_call_operand.vmem [shape: f32[1,128], index: 8, kind: input, shape index: {}]   ;;  %s7788_s9 = inlined_call_operand.vmem [shape: bf16[128,128], index: 9, kind: input, shape index: {}]   ;;  %s7789_s10 = inlined_call_operand.vmem [shape: f32[1,128], index: 10, kind: input, shape index: {}]   ;;  %s7790_s11 = inlined_call_operand.vmem [shape: bf16[128,128], index: 11, kind: input, shape index: {}]   ;;  %s7791_s12 = inlined_call_operand.vmem [shape: bf16[128,128], index: 12, kind: input, shape index: {}]   ;;  %s7792_s13 = inlined_call_operand.vmem [shape: f32[1,128], index: 13, kind: input, shape index: {}]   ;;  %s7793_s14 = inlined_call_operand.vmem [shape: bf16[128,128], index: 14, kind: input, shape index: {}]   ;;  %s7794_s15 = inlined_call_operand.vmem [shape: f32[1,128], index: 15, kind: input, shape index: {}]   ;;  %s7795_s16 = inlined_call_operand.vmem [shape: f32[128,8], index: 16, kind: input, shape index: {}]   ;;  %s7796_s17 = inlined_call_operand.vmem [shape: f32[1,8], index: 17, kind: input, shape index: {}]   ;;  %s7797_s18 = inlined_call_operand.vmem [shape: f32[1024,8], index: 18, kind: output, shape index: {}]  }
   0x1   :  { %7798 = sst [smem:[#allocation2_spill]] %s7779_s0 }
   0x2   :  { %7799 = sst [smem:[#allocation3_spill]] %s7780_s1 }
   0x3   :  { %7800 = sst [smem:[#allocation4_spill]] %s7781_s2 }
   0x4 LB: > { %s4980_s28 = sadd.s32 4294967295, %s6499_s27   ;;  %p4984_p0 = scmp.ge.s32.totalorder %s6499_s27, 1  ;;  %s6499_s27 = sphi %s6596_s27, %s28_s27  }
   0x5   : > { %p513_p1 = scmp.lt.s32.totalorder %s6499_s27, 3 }
   0x7   : > { %p514_p2 = pnand %p4984_p0, %p513_p1 }
   0x8   : > { %s7801_s0 = sld [smem:[#allocation3_spill]] (!%p514_p2)  ;;  %vm845_vm0 = vcmask (!%p514_p2), 1042432   ;;  %s4985_s19 = sshll.u32 (!%p514_p2), %s4980_s28, 6  ;;  %v6437_v1 = vld [vmem:[%s7782_s3] sm:$0xff] (!%p514_p2)   ;;  %vm652_vm1 = vcmask (!%p514_p2), 23552   ;;  %v6438_v10 = vld [vmem:[%s7782_s3 + $0x8] sm:$0xff] (!%p514_p2)  }
   0x9   : > { %517 = sbr.rel (%p514_p2) target bundleno = 1913 (0x779), region = 92  ;;  %p568_p3 = scmp.lt.s32.totalorder (!%p514_p2), %s4985_s19, 127  ;;  %v6439_v17 = vld [vmem:[%s7782_s3 + $0x10] sm:$0xff] (!%p514_p2)   ;;  %v6440_v22 = vld [vmem:[%s7782_s3 + $0x18] sm:$0xff] (!%p514_p2)   ;;  %v6441_v25 = vld [vmem:[%s7782_s3 + $0x20] sm:$0xff] (!%p514_p2)   ;;  %vm4859_vm2 = vcmask (!%p514_p2), 64512  }
   0xa   : > { %s7802_s23 = sld [smem:[#allocation2_spill]] (!%p514_p2)  ;;  %v6442_v32 = vld [vmem:[%s7782_s3 + $0x28] sm:$0xff] (!%p514_p2)   ;;  %v6443_v37 = vld [vmem:[%s7782_s3 + $0x30] sm:$0xff] (!%p514_p2)  }
   0xe   : > { %v644_v0 = vld [vmem:[%s7801_s0] sm:$0x7] (!%p514_p2)  ;;  %s7803_s0 = sld [smem:[#allocation4_spill]] (!%p514_p2) }
   0xf   : > { %5545 = vmatprep.subr.msk.mxu0 (!%p514_p2), %vm845_vm0, %v644_v0  ;;  %6363 = vmatprep.subr.msk.mxu1 (!%p514_p2), %vm845_vm0, %v644_v0 }
  0x10   : > { %5546 = vmatpush3.msk.msra.mxu0 %vm845_vm0, %v644_v0  ;;  %6364 = vmatpush3.msk.msra.mxu1 %vm845_vm0, %v644_v0  ;;  %s7805_s19 = smov (!%p568_p3, %s4985_s19), 127 }
  0x11   : > { %5643 = vmatprep.subr.bf16.mxu1 %v6437_v1  ;;  %s4986_s21 = sshll.u32 %s7805_s19, 3 }
  0x12   : > { %s6618_s24 = scalar_lea.vmem %s7802_s23, %s4986_s21 }
  0x13   : > { %v580_v2 = vld [vmem:[%s6618_s24] sm:$0xff]  ;;  %v581_v3 = vld [vmem:[%s6618_s24 + $0x8] sm:$0xff]  ;;  %v582_v4 = vld [vmem:[%s6618_s24 + $0x10] sm:$0xff] }
  0x14   : > { %5547 = vmatprep.mubr.msk.f32.mxu0 %vm652_vm1, %v580_v2  ;;  %v583_v5 = vld [vmem:[%s6618_s24 + $0x18] sm:$0xff]  ;;  %v584_v6 = vld [vmem:[%s6618_s24 + $0x20] sm:$0xff]  ;;  %v585_v7 = vld [vmem:[%s6618_s24 + $0x28] sm:$0xff] }
  0x15   : > { %5548 = vmatmul.mubr.msk.f32.vlgmr.msra.gmra.mrb[0].mxu0 %vm652_vm1, %v581_v3  ;;  %v586_v8 = vld [vmem:[%s6618_s24 + $0x30] sm:$0xff]  ;;  %v612_v9 = vld [vmem:[%s6618_s24 + $0x100] sm:$0xff]  ;;  %v587_v11 = vld [vmem:[%s6618_s24 + $0x38] sm:$0xff] }
  0x16   : > { %5550 = vmatprep.mubr.msk.f32.mxu0 %vm652_vm1, %v582_v4  ;;  %5595 = vmatprep.mubr.msk.f32.mxu1 %vm652_vm1, %v612_v9  ;;  %v613_v12 = vld [vmem:[%s6618_s24 + $0x108] sm:$0xff]  ;;  %v614_v13 = vld [vmem:[%s6618_s24 + $0x110] sm:$0xff]  ;;  %v588_v14 = vld [vmem:[%s6618_s24 + $0x40] sm:$0xff] }
  0x17   : > { %5596 = vmatmul.mubr.msk.f32.vlgmr.msra.gmra.mrb[0].mxu1 %vm652_vm1, %v613_v12  ;;  %v615_v15 = vld [vmem:[%s6618_s24 + $0x118] sm:$0xff]  ;;  %v616_v16 = vld [vmem:[%s6618_s24 + $0x120] sm:$0xff]  ;;  %v589_v18 = vld [vmem:[%s6618_s24 + $0x48] sm:$0xff] }
  0x18   : > { %5598 = vmatprep.mubr.msk.f32.mxu1 %vm652_vm1, %v614_v13  ;;  %5644 = vmatpush3.bf16.msra.mxu1 %v6437_v1  ;;  %v590_v19 = vld [vmem:[%s6618_s24 + $0x50] sm:$0xff]  ;;  %v617_v20 = vld [vmem:[%s6618_s24 + $0x128] sm:$0xff]  ;;  %v591_v23 = vld [vmem:[%s6618_s24 + $0x58] sm:$0xff] }
  0x19   : > { %5551 = vmatmul.mubr.msk.f32.gmra.mrb[2].mxu0 %vm652_vm1, %v583_v5  ;;  %5645 = vmatprep.subr.bf16.mxu1 %v6438_v10  ;;  %v618_v21 = vld [vmem:[%s6618_s24 + $0x130] sm:$0xff]  ;;  %v592_v24 = vld [vmem:[%s6618_s24 + $0x60] sm:$0xff]  ;;  %v593_v26 = vld [vmem:[%s6618_s24 + $0x68] sm:$0xff] }
  0x1a   : > { %5553 = vmatprep.mubr.msk.f32.mxu0 %vm652_vm1, %v584_v6  ;;  %v619_v27 = vld [vmem:[%s6618_s24 + $0x138] sm:$0xff]  ;;  %v620_v28 = vld [vmem:[%s6618_s24 + $0x140] sm:$0xff]  ;;  %v594_v29 = vld [vmem:[%s6618_s24 + $0x70] sm:$0xff] }
  0x1b   : > { %5599 = vmatmul.mubr.msk.f32.gmra.mrb[2].mxu1 %vm652_vm1, %v615_v15  ;;  %v621_v30 = vld [vmem:[%s6618_s24 + $0x148] sm:$0xff]  ;;  %v622_v31 = vld [vmem:[%s6618_s24 + $0x150] sm:$0xff]  ;;  %v595_v33 = vld [vmem:[%s6618_s24 + $0x78] sm:$0xff] }
  0x1c   : > { %5601 = vmatprep.mubr.msk.f32.mxu1 %vm652_vm1, %v616_v16  ;;  %5646 = vmatpush3.bf16.msra.mxu1 %v6438_v10  ;;  %v596_v34 = vld [vmem:[%s6618_s24 + $0x80] sm:$0xff]  ;;  %v623_v35 = vld [vmem:[%s6618_s24 + $0x158] sm:$0xff]  ;;  %v597_v38 = vld [vmem:[%s6618_s24 + $0x88] sm:$0xff] }
  0x1d   : > { %5554 = vmatmul.mubr.msk.f32.gmra.mrb[4].mxu0 %vm652_vm1, %v585_v7  ;;  %5647 = vmatprep.subr.bf16.mxu1 %v6439_v17  ;;  %v624_v36 = vld [vmem:[%s6618_s24 + $0x160] sm:$0xff]  ;;  %v598_v39 = vld [vmem:[%s6618_s24 + $0x90] sm:$0xff]  ;;  %v625_v40 = vld [vmem:[%s6618_s24 + $0x168] sm:$0xff] }
  0x1e   : > { %5556 = vmatprep.mubr.msk.f32.mxu0 %vm652_vm1, %v586_v8  ;;  %v626_v41 = vld [vmem:[%s6618_s24 + $0x170] sm:$0xff]  ;;  %v599_v42 = vld [vmem:[%s6618_s24 + $0x98] sm:$0xff]  ;;  %v600_v43 = vld [vmem:[%s6618_s24 + $0xa0] sm:$0xff] }
  0x1f   : > { %5602 = vmatmul.mubr.msk.f32.gmra.mrb[4].mxu1 %vm652_vm1, %v617_v20  ;;  %v627_v44 = vld [vmem:[%s6618_s24 + $0x178] sm:$0xff]  ;;  %v628_v45 = vld [vmem:[%s6618_s24 + $0x180] sm:$0xff]  ;;  %v601_v46 = vld [vmem:[%s6618_s24 + $0xa8] sm:$0xff] }
  0x20   : > { %5604 = vmatprep.mubr.msk.f32.mxu1 %vm652_vm1, %v618_v21  ;;  %5648 = vmatpush3.bf16.msra.mxu1 %v6439_v17  ;;  %v602_v47 = vld [vmem:[%s6618_s24 + $0xb0] sm:$0xff]  ;;  %v629_v48 = vld [vmem:[%s6618_s24 + $0x188] sm:$0xff]  ;;  %v603_v50 = vld [vmem:[%s6618_s24 + $0xb8] sm:$0xff] }
  0x21   : > { %5557 = vmatmul.mubr.msk.f32.gmra.mrb[6].mxu0 %vm652_vm1, %v587_v11  ;;  %5649 = vmatprep.subr.bf16.mxu1 %v6440_v22  ;;  %v630_v49 = vld [vmem:[%s6618_s24 + $0x190] sm:$0xff]  ;;  %v604_v51 = vld [vmem:[%s6618_s24 + $0xc0] sm:$0xff]  ;;  %v631_v52 = vld [vmem:[%s6618_s24 + $0x198] sm:$0xff] }
  0x22   : > { %5559 = vmatprep.mubr.msk.f32.mxu0 %vm652_vm1, %v588_v14  ;;  %v632_v53 = vld [vmem:[%s6618_s24 + $0x1a0] sm:$0xff]  ;;  %v605_v54 = vld [vmem:[%s6618_s24 + $0xc8] sm:$0xff]  ;;  %v606_v55 = vld [vmem:[%s6618_s24 + $0xd0] sm:$0xff] }
  0x23   : > { %5605 = vmatmul.mubr.msk.f32.gmra.mrb[6].mxu1 %vm652_vm1, %v619_v27  ;;  %v633_v56 = vld [vmem:[%s6618_s24 + $0x1a8] sm:$0xff]  ;;  %v634_v57 = vld [vmem:[%s6618_s24 + $0x1b0] sm:$0xff]  ;;  %v607_v58 = vld [vmem:[%s6618_s24 + $0xd8] sm:$0xff] }
  0x24   : > { %5607 = vmatprep.mubr.msk.f32.mxu1 %vm652_vm1, %v620_v28  ;;  %5650 = vmatpush3.bf16.msra.mxu1 %v6440_v22  ;;  %v608_v59 = vld [vmem:[%s6618_s24 + $0xe0] sm:$0xff]  ;;  %v635_v60 = vld [vmem:[%s6618_s24 + $0x1b8] sm:$0xff]  ;;  %v609_v62 = vld [vmem:[%s6618_s24 + $0xe8] sm:$0xff] }
  0x25   : > { %5560 = vmatmul.mubr.msk.f32.gmra.mrb[8].mxu0 %vm652_vm1, %v589_v18  ;;  %5651 = vmatprep.subr.bf16.mxu1 %v6441_v25  ;;  %v636_v61 = vld [vmem:[%s6618_s24 + $0x1c0] sm:$0xff]  ;;  %v610_v63 = vld [vmem:[%s6618_s24 + $0xf0] sm:$0xff]  ;;  %v637_v0 = vld [vmem:[%s6618_s24 + $0x1c8] sm:$0xff] }
  0x26   : > { %5562 = vmatprep.mubr.msk.f32.mxu0 %vm652_vm1, %v590_v19  ;;  %v638_v1 = vld [vmem:[%s6618_s24 + $0x1d0] sm:$0xff]  ;;  %v611_v2 = vld [vmem:[%s6618_s24 + $0xf8] sm:$0xff]  ;;  %v640_v4 = vld [vmem:[%s6618_s24 + $0x1e0] sm:$0xff] }
  0x27   : > { %5608 = vmatmul.mubr.msk.f32.gmra.mrb[8].mxu1 %vm652_vm1, %v621_v30  ;;  %v639_v3 = vld [vmem:[%s6618_s24 + $0x1d8] sm:$0xff]  ;;  %v641_v5 = vld [vmem:[%s6618_s24 + $0x1e8] sm:$0xff]  ;;  %v642_v6 = vld [vmem:[%s6618_s24 + $0x1f0] sm:$0xff] }
  0x28   : > { %5610 = vmatprep.mubr.msk.f32.mxu1 %vm652_vm1, %v622_v31  ;;  %5652 = vmatpush3.bf16.msra.mxu1 %v6441_v25  ;;  %v643_v7 = vld [vmem:[%s6618_s24 + $0x1f8] sm:$0xff]  ;;  %v6772_v9 = vld [vmem:[%s7803_s0] ss:$0 sm:$0xff]  ;;  %v6446_v18 = vld [vmem:[%s7784_s5 + $0x8] sm:$0xff]   ;;  %s7582_s24 = scalar_lea.vmem %s7797_s18, %s4986_s21 }
  0x29   : > { %5563 = vmatmul.mubr.msk.f32.gmra.mrb[10].mxu0 %vm652_vm1, %v591_v23  ;;  %5653 = vmatprep.subr.bf16.mxu1 %v6442_v32  ;;  %v6444_v8 = vld [vmem:[%s7782_s3 + $0x38] sm:$0xff]   ;;  %v6445_v17 = vld [vmem:[%s7784_s5] sm:$0xff]  }
  0x2a   : > { %5565 = vmatprep.mubr.msk.f32.mxu0 %vm652_vm1, %v592_v24  ;;  %5723 = vmatprep.subr.bf16.mxu0 %v6445_v17 }
  0x2b   : > { %5611 = vmatmul.mubr.msk.f32.gmra.mrb[10].mxu1 %vm652_vm1, %v623_v35  ;;  %5724 = vmatpush3.bf16.msra.mxu0 %v6445_v17 }
  0x2c   : > { %5613 = vmatprep.mubr.msk.f32.mxu1 %vm652_vm1, %v624_v36  ;;  %5654 = vmatpush3.bf16.msra.mxu1 %v6442_v32 }
  0x2d   : > { %5566 = vmatmul.mubr.msk.f32.gmra.mrb[12].mxu0 %vm652_vm1, %v593_v26  ;;  %5655 = vmatprep.subr.bf16.mxu1 %v6443_v37  ;;  %v6447_v26 = vld [vmem:[%s7784_s5 + $0x10] sm:$0xff]  }
  0x2e   : > { %5568 = vmatprep.mubr.msk.f32.mxu0 %vm652_vm1, %v594_v29  ;;  %5725 = vmatprep.subr.bf16.mxu0 %v6446_v18 }
  0x2f   : > { %5614 = vmatmul.mubr.msk.f32.gmra.mrb[12].mxu1 %vm652_vm1, %v625_v40  ;;  %5726 = vmatpush3.bf16.msra.mxu0 %v6446_v18 }
  0x30   : > { %5616 = vmatprep.mubr.msk.f32.mxu1 %vm652_vm1, %v626_v41  ;;  %5656 = vmatpush3.bf16.msra.mxu1 %v6443_v37 }
  0x31   : > { %5569 = vmatmul.mubr.msk.f32.gmra.mrb[14].mxu0 %vm652_vm1, %v595_v33  ;;  %5657 = vmatprep.subr.bf16.mxu1 %v6444_v8 }
  0x32   : > { %5571 = vmatprep.mubr.msk.f32.mxu0 %vm652_vm1, %v596_v34  ;;  %5727 = vmatprep.subr.bf16.mxu0 %v6447_v26 }
  0x33   : > { %5617 = vmatmul.mubr.msk.f32.gmra.mrb[14].mxu1 %vm652_vm1, %v627_v44  ;;  %5728 = vmatpush3.bf16.msra.mxu0 %v6447_v26 }
  0x34   : > { %5619 = vmatprep.mubr.msk.f32.mxu1 %vm652_vm1, %v628_v45  ;;  %5658 = vmatpush3.bf16.msra.mxu1 %v6444_v8 }
  0x35   : > { %5572 = vmatmul.mubr.msk.f32.gmra.mrb[16].mxu0 %vm652_vm1, %v597_v38  ;;  %v6448_v38 = vld [vmem:[%s7784_s5 + $0x18] sm:$0xff]  }
  0x36   : > { %5574 = vmatprep.mubr.msk.f32.mxu0 %vm652_vm1, %v598_v39  ;;  %5729 = vmatprep.subr.bf16.mxu0 %v6448_v38 }
  0x37   : > { %5620 = vmatmul.mubr.msk.f32.gmra.mrb[16].mxu1 %vm652_vm1, %v629_v48  ;;  %5730 = vmatpush3.bf16.msra.mxu0 %v6448_v38 }
  0x38   : > { %5622 = vmatprep.mubr.msk.f32.mxu1 %vm652_vm1, %v630_v49 }
  0x39   : > { %5575 = vmatmul.mubr.msk.f32.gmra.mrb[18].mxu0 %vm652_vm1, %v599_v42 }
  0x3a   : > { %5577 = vmatprep.mubr.msk.f32.mxu0 %vm652_vm1, %v600_v43 }
  0x3b   : > { %5623 = vmatmul.mubr.msk.f32.gmra.mrb[18].mxu1 %vm652_vm1, %v631_v52 }
  0x3c   : > { %5625 = vmatprep.mubr.msk.f32.mxu1 %vm652_vm1, %v632_v53  ;;  %v6449_v53 = vld [vmem:[%s7784_s5 + $0x20] sm:$0xff]  }
  0x3d   : > { %5578 = vmatmul.mubr.msk.f32.gmra.mrb[20].mxu0 %vm652_vm1, %v601_v46  ;;  %5731 = vmatprep.subr.bf16.mxu0 %v6449_v53 }
  0x3e   : > { %5580 = vmatprep.mubr.msk.f32.mxu0 %vm652_vm1, %v602_v47  ;;  %5732 = vmatpush3.bf16.msra.mxu0 %v6449_v53 }
  0x3f   : > { %5626 = vmatmul.mubr.msk.f32.gmra.mrb[20].mxu1 %vm652_vm1, %v633_v56 }
  0x40   : > { %5628 = vmatprep.mubr.msk.f32.mxu1 %vm652_vm1, %v634_v57 }
  0x41   : > { %5581 = vmatmul.mubr.msk.f32.gmra.mrb[22].mxu0 %vm652_vm1, %v603_v50 }
  0x42   : > { %5583 = vmatprep.mubr.msk.f32.mxu0 %vm652_vm1, %v604_v51 }
  0x43   : > { %5629 = vmatmul.mubr.msk.f32.gmra.mrb[22].mxu1 %vm652_vm1, %v635_v60 }
  0x44   : > { %5631 = vmatprep.mubr.msk.f32.mxu1 %vm652_vm1, %v636_v61 }
  0x45   : > { %5584 = vmatmul.mubr.msk.f32.gmra.mrb[24].mxu0 %vm652_vm1, %v605_v54 }
  0x46   : > { %5586 = vmatprep.mubr.msk.f32.mxu0 %vm652_vm1, %v606_v55 }
  0x47   : > { %5632 = vmatmul.mubr.msk.f32.gmra.mrb[24].mxu1 %vm652_vm1, %v637_v0 }
  0x48   : > { %5634 = vmatprep.mubr.msk.f32.mxu1 %vm652_vm1, %v638_v1 }
  0x49   : > { %5587 = vmatmul.mubr.msk.f32.gmra.mrb[26].mxu0 %vm652_vm1, %v607_v58 }
  0x4a   : > { %5589 = vmatprep.mubr.msk.f32.mxu0 %vm652_vm1, %v608_v59 }
  0x4b   : > { %5635 = vmatmul.mubr.msk.f32.gmra.mrb[26].mxu1 %vm652_vm1, %v639_v3 }
  0x4c   : > { %5637 = vmatprep.mubr.msk.f32.mxu1 %vm652_vm1, %v640_v4  ;;  %v6450_v4 = vld [vmem:[%s7784_s5 + $0x28] sm:$0xff]  }
  0x4d   : > { %5590 = vmatmul.mubr.msk.f32.gmra.mrb[28].mxu0 %vm652_vm1, %v609_v62  ;;  %5733 = vmatprep.subr.bf16.mxu0 %v6450_v4 }
  0x4e   : > { %5592 = vmatprep.mubr.msk.f32.mxu0 %vm652_vm1, %v610_v63  ;;  %5734 = vmatpush3.bf16.msra.mxu0 %v6450_v4 }
  0x4f   : > { %5638 = vmatmul.mubr.msk.f32.gmra.mrb[28].mxu1 %vm652_vm1, %v641_v5 }
  0x50   : > { %5640 = vmatprep.mubr.msk.f32.mxu1 %vm652_vm1, %v642_v6 }
  0x51   : > { %5593 = vmatmul.mubr.msk.f32.gmra.mrb[30].mxu0 %vm652_vm1, %v611_v2 }
  0x53   : > { %5641 = vmatmul.mubr.msk.f32.gmra.mrb[30].mxu1 %vm652_vm1, %v643_v7 }
  0xe8   : > { %v5549_v10 = vpop.f32.mrb[0].mxu0 }
  0xe9   : > { %v921_v11 = vadd.f32 %v5549_v10, %v6772_v9  ;;  %v915_v12 = vpop.f32.mrb[1].mxu0 }
  0xea   : > { %v916_v13 = vadd.f32 %v6772_v9, %v915_v12  ;;  %v5597_v31 = vpop.f32.mrb[0].mxu1 }
  0xeb   : > { %v1235_v14 = vmax.f32 %v921_v11, 0.0  ;;  %v1081_v33 = vadd.f32 %v5597_v31, %v6772_v9  ;;  %v1075_v34 = vpop.f32.mrb[1].mxu1 }
  0xec   : > { %v1234_v15 = vmax.f32 %v916_v13, 0.0  ;;  %v5552_v16 = vpop.f32.mrb[2].mxu0  ;;  %v1076_v37 = vadd.f32 %v6772_v9, %v1075_v34 }
  0xed   : > { %v931_v19 = vadd.f32 %v5552_v16, %v6772_v9  ;;  %v925_v20 = vpop.f32.mrb[3].mxu0  ;;  %v1267_v41 = vmax.f32 %v1081_v33, 0.0 }
  0xee   : > { %v926_v21 = vadd.f32 %v6772_v9, %v925_v20  ;;  %v6784_v22 = vpack.c.bf16 %v1235_v14, %v1234_v15  ;;  %v1266_v44 = vmax.f32 %v1076_v37, 0.0  ;;  %v5600_v45 = vpop.f32.mrb[2].mxu1  ;;  %v6451_v20 = vld [vmem:[%s7784_s5 + $0x30] sm:$0xff]  }
  0xef   : > { %v1237_v23 = vmax.f32 %v931_v19, 0.0  ;;  %v1091_v47 = vadd.f32 %v5600_v45, %v6772_v9  ;;  %v1085_v48 = vpop.f32.mrb[3].mxu1  ;;  %5735 = vmatprep.subr.bf16.mxu0 %v6451_v20 }
  0xf0   : > { %v1236_v24 = vmax.f32 %v926_v21, 0.0  ;;  %v5555_v25 = vpop.f32.mrb[4].mxu0  ;;  %5659 = vmatprep.mubr.bf16.mxu1 %v6784_v22  ;;  %v6806_v51 = vpack.c.bf16 %v1267_v41, %v1266_v44  ;;  %v1086_v52 = vadd.f32 %v6772_v9, %v1085_v48  ;;  %5736 = vmatpush3.bf16.msra.mxu0 %v6451_v20 }
  0xf1   : > { %v941_v27 = vadd.f32 %v5555_v25, %v6772_v9  ;;  %v935_v28 = vpop.f32.mrb[5].mxu0  ;;  %v1269_v56 = vmax.f32 %v1091_v47, 0.0 }
  0xf2   : > { %v6791_v29 = vpack.c.bf16 %v1237_v23, %v1236_v24  ;;  %v936_v30 = vadd.f32 %v6772_v9, %v935_v28  ;;  %v1268_v59 = vmax.f32 %v1086_v52, 0.0  ;;  %v5603_v60 = vpop.f32.mrb[4].mxu1 }
  0xf3   : > { %v1239_v32 = vmax.f32 %v941_v27, 0.0  ;;  %v1101_v62 = vadd.f32 %v5603_v60, %v6772_v9  ;;  %v1095_v63 = vpop.f32.mrb[5].mxu1 }
  0xf4   : > { %v1238_v35 = vmax.f32 %v936_v30, 0.0  ;;  %v5558_v36 = vpop.f32.mrb[6].mxu0  ;;  %5660 = vmatmul.mubr.bf16.vlgmr.msra.gmra.mrb[32].mxu1 %v6791_v29  ;;  %v6818_v2 = vpack.c.bf16 %v1269_v56, %v1268_v59  ;;  %v1096_v3 = vadd.f32 %v6772_v9, %v1095_v63 }
  0xf5   : > { %v951_v39 = vadd.f32 %v5558_v36, %v6772_v9  ;;  %v945_v40 = vpop.f32.mrb[7].mxu0  ;;  %v1271_v7 = vmax.f32 %v1101_v62, 0.0 }
  0xf6   : > { %v946_v42 = vadd.f32 %v6772_v9, %v945_v40  ;;  %v6802_v43 = vpack.c.bf16 %v1239_v32, %v1238_v35  ;;  %v1270_v11 = vmax.f32 %v1096_v3, 0.0  ;;  %v5606_v12 = vpop.f32.mrb[6].mxu1 }
  0xf7   : > { %v1241_v46 = vmax.f32 %v951_v39, 0.0  ;;  %v1111_v14 = vadd.f32 %v5606_v12, %v6772_v9  ;;  %v1105_v15 = vpop.f32.mrb[7].mxu1 }
  0xf8   : > { %v1240_v49 = vmax.f32 %v946_v42, 0.0  ;;  %v5561_v50 = vpop.f32.mrb[8].mxu0  ;;  %5663 = vmatprep.mubr.bf16.mxu1 %v6802_v43  ;;  %v6830_v18 = vpack.c.bf16 %v1271_v7, %v1270_v11  ;;  %v1106_v19 = vadd.f32 %v6772_v9, %v1105_v15 }
  0xf9   : > { %v961_v54 = vadd.f32 %v5561_v50, %v6772_v9  ;;  %v955_v55 = vpop.f32.mrb[9].mxu0  ;;  %v1273_v24 = vmax.f32 %v1111_v14, 0.0 }
  0xfa   : > { %v956_v57 = vadd.f32 %v6772_v9, %v955_v55  ;;  %v6814_v58 = vpack.c.bf16 %v1241_v46, %v1240_v49  ;;  %v1272_v27 = vmax.f32 %v1106_v19, 0.0  ;;  %v5609_v28 = vpop.f32.mrb[8].mxu1 }
  0xfb   : > { %v1243_v61 = vmax.f32 %v961_v54, 0.0  ;;  %v1121_v31 = vadd.f32 %v5609_v28, %v6772_v9  ;;  %v1115_v32 = vpop.f32.mrb[9].mxu1 }
  0xfc   : > { %v1242_v0 = vmax.f32 %v956_v57, 0.0  ;;  %v5564_v1 = vpop.f32.mrb[10].mxu0  ;;  %5664 = vmatmul.mubr.bf16.gmra.mrb[36].mxu1 %v6814_v58  ;;  %v6842_v35 = vpack.c.bf16 %v1273_v24, %v1272_v27  ;;  %v1116_v36 = vadd.f32 %v6772_v9, %v1115_v32 }
  0xfd   : > { %v971_v5 = vadd.f32 %v5564_v1, %v6772_v9  ;;  %v965_v6 = vpop.f32.mrb[11].mxu0  ;;  %v1275_v39 = vmax.f32 %v1121_v31, 0.0 }
  0xfe   : > { %v966_v8 = vadd.f32 %v6772_v9, %v965_v6  ;;  %v6826_v10 = vpack.c.bf16 %v1243_v61, %v1242_v0  ;;  %v1274_v42 = vmax.f32 %v1116_v36, 0.0  ;;  %v5612_v44 = vpop.f32.mrb[10].mxu1 }
  0xff   : > { %v1245_v13 = vmax.f32 %v971_v5, 0.0  ;;  %v1131_v46 = vadd.f32 %v5612_v44, %v6772_v9  ;;  %v1125_v47 = vpop.f32.mrb[11].mxu1 }
 0x100   : > { %v1244_v16 = vmax.f32 %v966_v8, 0.0  ;;  %v5567_v17 = vpop.f32.mrb[12].mxu0  ;;  %5667 = vmatprep.mubr.bf16.mxu1 %v6826_v10  ;;  %v6851_v50 = vpack.c.bf16 %v1275_v39, %v1274_v42  ;;  %v1126_v52 = vadd.f32 %v6772_v9, %v1125_v47 }
 0x101   : > { %v981_v21 = vadd.f32 %v5567_v17, %v6772_v9  ;;  %v975_v23 = vpop.f32.mrb[13].mxu0  ;;  %v1277_v55 = vmax.f32 %v1131_v46, 0.0 }
 0x102   : > { %v976_v25 = vadd.f32 %v6772_v9, %v975_v23  ;;  %v6838_v26 = vpack.c.bf16 %v1245_v13, %v1244_v16  ;;  %v1276_v59 = vmax.f32 %v1126_v52, 0.0  ;;  %v5615_v60 = vpop.f32.mrb[12].mxu1 }
 0x103   : > { %v1247_v30 = vmax.f32 %v981_v21, 0.0  ;;  %v1141_v62 = vadd.f32 %v5615_v60, %v6772_v9  ;;  %v1135_v63 = vpop.f32.mrb[13].mxu1 }
 0x104   : > { %v1246_v33 = vmax.f32 %v976_v25, 0.0  ;;  %v5570_v34 = vpop.f32.mrb[14].mxu0  ;;  %5668 = vmatmul.mubr.bf16.gmra.mrb[40].mxu1 %v6838_v26  ;;  %v6860_v3 = vpack.c.bf16 %v1277_v55, %v1276_v59  ;;  %v1136_v4 = vadd.f32 %v6772_v9, %v1135_v63 }
 0x105   : > { %v991_v37 = vadd.f32 %v5570_v34, %v6772_v9  ;;  %v985_v38 = vpop.f32.mrb[15].mxu0  ;;  %v1279_v7 = vmax.f32 %v1141_v62, 0.0 }
 0x106   : > { %v986_v40 = vadd.f32 %v6772_v9, %v985_v38  ;;  %v6847_v41 = vpack.c.bf16 %v1247_v30, %v1246_v33  ;;  %v1278_v12 = vmax.f32 %v1136_v4, 0.0  ;;  %v5618_v13 = vpop.f32.mrb[14].mxu1 }
 0x107   : > { %v1249_v45 = vmax.f32 %v991_v37, 0.0  ;;  %v1151_v15 = vadd.f32 %v5618_v13, %v6772_v9  ;;  %v1145_v16 = vpop.f32.mrb[15].mxu1 }
 0x108   : > { %v1248_v48 = vmax.f32 %v986_v40, 0.0  ;;  %v5573_v49 = vpop.f32.mrb[16].mxu0  ;;  %5671 = vmatprep.mubr.bf16.mxu1 %v6847_v41  ;;  %v6869_v20 = vpack.c.bf16 %v1279_v7, %v1278_v12  ;;  %v1146_v21 = vadd.f32 %v6772_v9, %v1145_v16 }
 0x109   : > { %v1001_v53 = vadd.f32 %v5573_v49, %v6772_v9  ;;  %v995_v54 = vpop.f32.mrb[17].mxu0  ;;  %v1281_v25 = vmax.f32 %v1151_v15, 0.0 }
 0x10a   : > { %v996_v56 = vadd.f32 %v6772_v9, %v995_v54  ;;  %v6856_v57 = vpack.c.bf16 %v1249_v45, %v1248_v48  ;;  %v1280_v30 = vmax.f32 %v1146_v21, 0.0  ;;  %v5621_v31 = vpop.f32.mrb[16].mxu1 }
 0x10b   : > { %v1251_v61 = vmax.f32 %v1001_v53, 0.0  ;;  %v1161_v33 = vadd.f32 %v5621_v31, %v6772_v9  ;;  %v1155_v34 = vpop.f32.mrb[17].mxu1 }
 0x10c   : > { %v1250_v0 = vmax.f32 %v996_v56, 0.0  ;;  %v5576_v1 = vpop.f32.mrb[18].mxu0  ;;  %5672 = vmatmul.mubr.bf16.gmra.mrb[44].mxu1 %v6856_v57  ;;  %v6878_v38 = vpack.c.bf16 %v1281_v25, %v1280_v30  ;;  %v1156_v39 = vadd.f32 %v6772_v9, %v1155_v34 }
 0x10d   : > { %v1011_v5 = vadd.f32 %v5576_v1, %v6772_v9  ;;  %v1005_v6 = vpop.f32.mrb[19].mxu0  ;;  %v1283_v44 = vmax.f32 %v1161_v33, 0.0 }
 0x10e   : > { %v1006_v8 = vadd.f32 %v6772_v9, %v1005_v6  ;;  %v6865_v11 = vpack.c.bf16 %v1251_v61, %v1250_v0  ;;  %v1282_v47 = vmax.f32 %v1156_v39, 0.0  ;;  %v5624_v48 = vpop.f32.mrb[18].mxu1 }
 0x10f   : > { %v1253_v14 = vmax.f32 %v1011_v5, 0.0  ;;  %v1171_v52 = vadd.f32 %v5624_v48, %v6772_v9  ;;  %v1165_v53 = vpop.f32.mrb[19].mxu1 }
 0x110   : > { %v1252_v17 = vmax.f32 %v1006_v8, 0.0  ;;  %v5579_v19 = vpop.f32.mrb[20].mxu0  ;;  %5675 = vmatprep.mubr.bf16.mxu1 %v6865_v11  ;;  %v6887_v56 = vpack.c.bf16 %v1283_v44, %v1282_v47  ;;  %v1166_v59 = vadd.f32 %v6772_v9, %v1165_v53 }
 0x111   : > { %v1021_v23 = vadd.f32 %v5579_v19, %v6772_v9  ;;  %v1015_v24 = vpop.f32.mrb[21].mxu0  ;;  %v1285_v62 = vmax.f32 %v1171_v52, 0.0 }
 0x112   : > { %v1016_v27 = vadd.f32 %v6772_v9, %v1015_v24  ;;  %v6874_v28 = vpack.c.bf16 %v1253_v14, %v1252_v17  ;;  %v1284_v1 = vmax.f32 %v1166_v59, 0.0  ;;  %v5627_v4 = vpop.f32.mrb[20].mxu1 }
 0x113   : > { %v1255_v32 = vmax.f32 %v1021_v23, 0.0  ;;  %v1181_v6 = vadd.f32 %v5627_v4, %v6772_v9  ;;  %v1175_v7 = vpop.f32.mrb[21].mxu1 }
 0x114   : > { %v1254_v36 = vmax.f32 %v1016_v27, 0.0  ;;  %v5582_v37 = vpop.f32.mrb[22].mxu0  ;;  %5676 = vmatmul.mubr.bf16.gmra.mrb[48].mxu1 %v6874_v28  ;;  %v6896_v13 = vpack.c.bf16 %v1285_v62, %v1284_v1  ;;  %v1176_v14 = vadd.f32 %v6772_v9, %v1175_v7 }
 0x115   : > { %v1031_v40 = vadd.f32 %v5582_v37, %v6772_v9  ;;  %v1025_v42 = vpop.f32.mrb[23].mxu0  ;;  %v1287_v17 = vmax.f32 %v1181_v6, 0.0 }
 0x116   : > { %v1026_v45 = vadd.f32 %v6772_v9, %v1025_v42  ;;  %v6883_v46 = vpack.c.bf16 %v1255_v32, %v1254_v36  ;;  %v1286_v23 = vmax.f32 %v1176_v14, 0.0  ;;  %v5630_v24 = vpop.f32.mrb[22].mxu1 }
 0x117   : > { %v1257_v49 = vmax.f32 %v1031_v40, 0.0  ;;  %v1191_v27 = vadd.f32 %v5630_v24, %v6772_v9  ;;  %v1185_v30 = vpop.f32.mrb[23].mxu1 }
 0x118   : > { %v1256_v54 = vmax.f32 %v1026_v45, 0.0  ;;  %v5585_v55 = vpop.f32.mrb[24].mxu0  ;;  %5679 = vmatprep.mubr.bf16.mxu1 %v6883_v46  ;;  %v6905_v33 = vpack.c.bf16 %v1287_v17, %v1286_v23  ;;  %v1186_v34 = vadd.f32 %v6772_v9, %v1185_v30 }
 0x119   : > { %v1041_v60 = vadd.f32 %v5585_v55, %v6772_v9  ;;  %v1035_v61 = vpop.f32.mrb[25].mxu0  ;;  %v1289_v39 = vmax.f32 %v1191_v27, 0.0 }
 0x11a   : > { %v1036_v63 = vadd.f32 %v6772_v9, %v1035_v61  ;;  %v6892_v0 = vpack.c.bf16 %v1257_v49, %v1256_v54  ;;  %v1288_v44 = vmax.f32 %v1186_v34, 0.0  ;;  %v5633_v45 = vpop.f32.mrb[24].mxu1 }
 0x11b   : > { %v1259_v5 = vmax.f32 %v1041_v60, 0.0  ;;  %v1201_v48 = vadd.f32 %v5633_v45, %v6772_v9  ;;  %v1195_v49 = vpop.f32.mrb[25].mxu1 }
 0x11c   : > { %v1258_v8 = vmax.f32 %v1036_v63, 0.0  ;;  %v5588_v12 = vpop.f32.mrb[26].mxu0  ;;  %5680 = vmatmul.mubr.bf16.gmra.mrb[52].mxu1 %v6892_v0  ;;  %v6914_v54 = vpack.c.bf16 %v1289_v39, %v1288_v44  ;;  %v1196_v55 = vadd.f32 %v6772_v9, %v1195_v49  ;;  %v6967_v49 = vld [vmem:[%s7783_s4] ss:$0 sm:$0xff] }
 0x11d   : > { %v1051_v15 = vadd.f32 %v5588_v12, %v6772_v9  ;;  %v1045_v16 = vpop.f32.mrb[27].mxu0  ;;  %v1291_v61 = vmax.f32 %v1201_v48, 0.0  ;;  %v6454_v48 = vld [vmem:[%s7786_s7 + $0x8] sm:$0xff]  }
 0x11e   : > { %v1046_v19 = vadd.f32 %v6772_v9, %v1045_v16  ;;  %v6901_v21 = vpack.c.bf16 %v1259_v5, %v1258_v8  ;;  %v1290_v1 = vmax.f32 %v1196_v55, 0.0  ;;  %v5636_v4 = vpop.f32.mrb[26].mxu1 }
 0x11f   : > { %v1261_v25 = vmax.f32 %v1051_v15, 0.0  ;;  %v1211_v6 = vadd.f32 %v5636_v4, %v6772_v9  ;;  %v1205_v7 = vpop.f32.mrb[27].mxu1  ;;  %v6456_v4 = vld [vmem:[%s7786_s7 + $0x18] sm:$0xff]  }
 0x120   : > { %v1260_v31 = vmax.f32 %v1046_v19, 0.0  ;;  %v5591_v32 = vpop.f32.mrb[28].mxu0  ;;  %5683 = vmatprep.mubr.bf16.mxu1 %v6901_v21  ;;  %v6923_v12 = vpack.c.bf16 %v1291_v61, %v1290_v1  ;;  %v1206_v14 = vadd.f32 %v6772_v9, %v1205_v7  ;;  %v6455_v1 = vld [vmem:[%s7786_s7 + $0x10] sm:$0xff]  }
 0x121   : > { %v1061_v36 = vadd.f32 %v5591_v32, %v6772_v9  ;;  %v1055_v37 = vpop.f32.mrb[29].mxu0  ;;  %v1293_v15 = vmax.f32 %v1211_v6, 0.0 }
 0x122   : > { %v1056_v40 = vadd.f32 %v6772_v9, %v1055_v37  ;;  %v6910_v42 = vpack.c.bf16 %v1261_v25, %v1260_v31  ;;  %v1292_v17 = vmax.f32 %v1206_v14, 0.0  ;;  %v5639_v19 = vpop.f32.mrb[28].mxu1 }
 0x123   : > { %v1263_v47 = vmax.f32 %v1061_v36, 0.0  ;;  %v1221_v23 = vadd.f32 %v5639_v19, %v6772_v9  ;;  %v1215_v24 = vpop.f32.mrb[29].mxu1 }
 0x124   : > { %v1262_v52 = vmax.f32 %v1056_v40, 0.0  ;;  %v5594_v53 = vpop.f32.mrb[30].mxu0  ;;  %5684 = vmatmul.mubr.bf16.gmra.mrb[56].mxu1 %v6910_v42  ;;  %v6930_v25 = vpack.c.bf16 %v1293_v15, %v1292_v17  ;;  %v1216_v27 = vadd.f32 %v6772_v9, %v1215_v24  ;;  %v6457_v17 = vld [vmem:[%s7786_s7 + $0x20] sm:$0xff]  }
 0x125   : > { %v1071_v59 = vadd.f32 %v5594_v53, %v6772_v9  ;;  %v1065_v60 = vpop.f32.mrb[31].mxu0  ;;  %v1295_v30 = vmax.f32 %v1221_v23, 0.0 }
 0x126   : > { %v1066_v62 = vadd.f32 %v6772_v9, %v1065_v60  ;;  %v6919_v63 = vpack.c.bf16 %v1263_v47, %v1262_v52  ;;  %v1294_v31 = vmax.f32 %v1216_v27, 0.0  ;;  %v5642_v32 = vpop.f32.mrb[30].mxu1  ;;  %v6453_v47 = vld [vmem:[%s7786_s7] sm:$0xff]  }
 0x127   : > { %v1265_v5 = vmax.f32 %v1071_v59, 0.0  ;;  %v1231_v34 = vadd.f32 %v5642_v32, %v6772_v9  ;;  %v1225_v36 = vpop.f32.mrb[31].mxu1  ;;  %5803 = vmatprep.subr.bf16.mxu1 %v6453_v47 }
 0x128   : > { %v1264_v8 = vmax.f32 %v1066_v62, 0.0  ;;  %5687 = vmatprep.mubr.bf16.mxu1 %v6919_v63  ;;  %v6935_v37 = vpack.c.bf16 %v1295_v30, %v1294_v31  ;;  %v1226_v39 = vadd.f32 %v6772_v9, %v1225_v36  ;;  %v6452_v9 = vld [vmem:[%s7784_s5 + $0x38] sm:$0xff]   ;;  %5804 = vmatpush3.bf16.msra.mxu1 %v6453_v47  ;;  %v6458_v36 = vld [vmem:[%s7786_s7 + $0x28] sm:$0xff]  }
 0x129   : > { %v1297_v40 = vmax.f32 %v1231_v34, 0.0  ;;  %5737 = vmatprep.subr.bf16.mxu0 %v6452_v9  ;;  %5805 = vmatprep.subr.bf16.mxu1 %v6454_v48 }
 0x12a   : > { %v6926_v16 = vpack.c.bf16 %v1265_v5, %v1264_v8  ;;  %v1296_v44 = vmax.f32 %v1226_v39, 0.0  ;;  %5738 = vmatpush3.bf16.msra.mxu0 %v6452_v9 }
 0x12c   : > { %5688 = vmatmul.mubr.bf16.gmra.mrb[60].mxu1 %v6926_v16  ;;  %v6939_v45 = vpack.c.bf16 %v1297_v40, %v1296_v44 }
 0x12d   : > { %5691 = vmatprep.mubr.bf16.mxu1 %v6806_v51  ;;  %5806 = vmatpush3.bf16.msra.mxu1 %v6454_v48 }
 0x12e   : > { %5807 = vmatprep.subr.bf16.mxu1 %v6455_v1 }
 0x131   : > { %5808 = vmatpush3.bf16.msra.mxu1 %v6455_v1 }
 0x132   : > { %5809 = vmatprep.subr.bf16.mxu1 %v6456_v4 }
 0x134   : > { %5692 = vmatmul.mubr.bf16.gmra.mrb[64].mxu1 %v6818_v2 }
 0x135   : > { %5695 = vmatprep.mubr.bf16.mxu1 %v6830_v18  ;;  %5810 = vmatpush3.bf16.msra.mxu1 %v6456_v4 }
 0x136   : > { %5811 = vmatprep.subr.bf16.mxu1 %v6457_v17 }
 0x139   : > { %5812 = vmatpush3.bf16.msra.mxu1 %v6457_v17 }
 0x13a   : > { %5813 = vmatprep.subr.bf16.mxu1 %v6458_v36 }
 0x13c   : > { %5696 = vmatmul.mubr.bf16.gmra.mrb[68].mxu1 %v6842_v35 }
 0x13d   : > { %5699 = vmatprep.mubr.bf16.mxu1 %v6851_v50  ;;  %5814 = vmatpush3.bf16.msra.mxu1 %v6458_v36 }
 0x144   : > { %5700 = vmatmul.mubr.bf16.gmra.mrb[72].mxu1 %v6860_v3 }
 0x145   : > { %5703 = vmatprep.mubr.bf16.mxu1 %v6869_v20 }
 0x14c   : > { %5704 = vmatmul.mubr.bf16.gmra.mrb[76].mxu1 %v6878_v38 }
 0x14d   : > { %5707 = vmatprep.mubr.bf16.mxu1 %v6887_v56 }
 0x154   : > { %5708 = vmatmul.mubr.bf16.gmra.mrb[80].mxu1 %v6896_v13 }
 0x155   : > { %5711 = vmatprep.mubr.bf16.mxu1 %v6905_v33 }
 0x15c   : > { %5712 = vmatmul.mubr.bf16.gmra.mrb[84].mxu1 %v6914_v54 }
 0x15d   : > { %5715 = vmatprep.mubr.bf16.mxu1 %v6923_v12 }
 0x164   : > { %5716 = vmatmul.mubr.bf16.gmra.mrb[88].mxu1 %v6930_v25 }
 0x165   : > { %5719 = vmatprep.mubr.bf16.mxu1 %v6935_v37 }
 0x16c   : > { %5720 = vmatmul.mubr.bf16.gmra.mrb[92].mxu1 %v6939_v45 }
 0x1c7   : > { %v5661_v52 = vpop.f32.mrb[32].mxu1 }
 0x1c8   : > { %v1444_v53 = vadd.f32 %v5661_v52, %v6967_v49  ;;  %v1435_v55 = vpop.f32.mrb[33].mxu1  ;;  %v6459_v52 = vld [vmem:[%s7786_s7 + $0x30] sm:$0xff]  }
 0x1c9   : > { %v1436_v59 = vadd.f32 %v6967_v49, %v1435_v55  ;;  %v5662_v60 = vpop.f32.mrb[34].mxu1  ;;  %5815 = vmatprep.subr.bf16.mxu1 %v6459_v52 }
 0x1ca   : > { %v1447_v61 = vadd.f32 %v5662_v60, %v6967_v49  ;;  %v1438_v62 = vpop.f32.mrb[35].mxu1  ;;  %v1692_v6 = vmax.f32 %v1444_v53, 0.0  ;;  %5816 = vmatpush3.bf16.msra.mxu1 %v6459_v52 }
 0x1cb   : > { %v1439_v5 = vadd.f32 %v6967_v49, %v1438_v62  ;;  %v1690_v8 = vmax.f32 %v1436_v59, 0.0 }
 0x1cc   : > { %v1693_v7 = vmax.f32 %v1447_v61, 0.0 }
 0x1cd   : > { %v1691_v14 = vmax.f32 %v1439_v5, 0.0  ;;  %v6460_v5 = vld [vmem:[%s7786_s7 + $0x38] sm:$0xff]  }
 0x1ce   : > { %v1755_v15 = vpack.c.bf16 %v1693_v7, %v1692_v6  ;;  %5817 = vmatprep.subr.bf16.mxu1 %v6460_v5 }
 0x1cf   : > { %v1754_v19 = vpack.c.bf16 %v1691_v14, %v1690_v8  ;;  %v5665_v23 = vpop.f32.mrb[36].mxu1  ;;  %5818 = vmatpush3.bf16.msra.mxu1 %v6460_v5 }
 0x1d0   : > { %v1460_v24 = vadd.f32 %v5665_v23, %v6967_v49  ;;  %v1451_v27 = vpop.f32.mrb[37].mxu1 }
 0x1d1   : > { %v1452_v30 = vadd.f32 %v6967_v49, %v1451_v27  ;;  %v5666_v31 = vpop.f32.mrb[38].mxu1  ;;  %5739 = vmatprep.mubr.bf16.mxu0 %v1754_v19 }
 0x1d2   : > { %v1463_v32 = vadd.f32 %v5666_v31, %v6967_v49  ;;  %v1454_v34 = vpop.f32.mrb[39].mxu1  ;;  %5740 = vmatmul.mubr.bf16.vlgmr.msra.gmra.mrb[32].mxu0 %v1755_v15  ;;  %v1696_v40 = vmax.f32 %v1460_v24, 0.0 }
 0x1d3   : > { %v1455_v39 = vadd.f32 %v6967_v49, %v1454_v34  ;;  %v1694_v9 = vmax.f32 %v1452_v30, 0.0 }
 0x1d4   : > { %v1697_v44 = vmax.f32 %v1463_v32, 0.0 }
 0x1d5   : > { %v1695_v47 = vmax.f32 %v1455_v39, 0.0 }
 0x1d6   : > { %v1757_v48 = vpack.c.bf16 %v1697_v44, %v1696_v40 }
 0x1d7   : > { %v1756_v53 = vpack.c.bf16 %v1695_v47, %v1694_v9  ;;  %v5669_v55 = vpop.f32.mrb[40].mxu1 }
 0x1d8   : > { %v1476_v59 = vadd.f32 %v5669_v55, %v6967_v49  ;;  %v1467_v60 = vpop.f32.mrb[41].mxu1 }
 0x1d9   : > { %v1468_v61 = vadd.f32 %v6967_v49, %v1467_v60  ;;  %v5670_v62 = vpop.f32.mrb[42].mxu1  ;;  %5743 = vmatprep.mubr.bf16.mxu0 %v1756_v53 }
 0x1da   : > { %v1479_v1 = vadd.f32 %v5670_v62, %v6967_v49  ;;  %v1470_v4 = vpop.f32.mrb[43].mxu1  ;;  %5744 = vmatmul.mubr.bf16.gmra.mrb[36].mxu0 %v1757_v48  ;;  %v1700_v7 = vmax.f32 %v1476_v59, 0.0 }
 0x1db   : > { %v1471_v6 = vadd.f32 %v6967_v49, %v1470_v4  ;;  %v1698_v14 = vmax.f32 %v1468_v61, 0.0 }
 0x1dc   : > { %v1701_v8 = vmax.f32 %v1479_v1, 0.0 }
 0x1dd   : > { %v1699_v15 = vmax.f32 %v1471_v6, 0.0 }
 0x1de   : > { %v1759_v17 = vpack.c.bf16 %v1701_v8, %v1700_v7 }
 0x1df   : > { %v1758_v19 = vpack.c.bf16 %v1699_v15, %v1698_v14  ;;  %v5673_v23 = vpop.f32.mrb[44].mxu1 }
 0x1e0   : > { %v1492_v24 = vadd.f32 %v5673_v23, %v6967_v49  ;;  %v1483_v27 = vpop.f32.mrb[45].mxu1 }
 0x1e1   : > { %v1484_v30 = vadd.f32 %v6967_v49, %v1483_v27  ;;  %v5674_v31 = vpop.f32.mrb[46].mxu1  ;;  %5747 = vmatprep.mubr.bf16.mxu0 %v1758_v19 }
 0x1e2   : > { %v1495_v32 = vadd.f32 %v5674_v31, %v6967_v49  ;;  %v1486_v34 = vpop.f32.mrb[47].mxu1  ;;  %5748 = vmatmul.mubr.bf16.gmra.mrb[40].mxu0 %v1759_v17  ;;  %v1704_v39 = vmax.f32 %v1492_v24, 0.0 }
 0x1e3   : > { %v1487_v36 = vadd.f32 %v6967_v49, %v1486_v34  ;;  %v1702_v44 = vmax.f32 %v1484_v30, 0.0 }
 0x1e4   : > { %v1705_v40 = vmax.f32 %v1495_v32, 0.0 }
 0x1e5   : > { %v1703_v9 = vmax.f32 %v1487_v36, 0.0 }
 0x1e6   : > { %v1761_v47 = vpack.c.bf16 %v1705_v40, %v1704_v39 }
 0x1e7   : > { %v1760_v48 = vpack.c.bf16 %v1703_v9, %v1702_v44  ;;  %v5677_v52 = vpop.f32.mrb[48].mxu1 }
 0x1e8   : > { %v1508_v53 = vadd.f32 %v5677_v52, %v6967_v49  ;;  %v1499_v55 = vpop.f32.mrb[49].mxu1 }
 0x1e9   : > { %v1500_v59 = vadd.f32 %v6967_v49, %v1499_v55  ;;  %v5678_v60 = vpop.f32.mrb[50].mxu1  ;;  %5751 = vmatprep.mubr.bf16.mxu0 %v1760_v48 }
 0x1ea   : > { %v1511_v61 = vadd.f32 %v5678_v60, %v6967_v49  ;;  %v1502_v62 = vpop.f32.mrb[51].mxu1  ;;  %5752 = vmatmul.mubr.bf16.gmra.mrb[44].mxu0 %v1761_v47  ;;  %v1708_v4 = vmax.f32 %v1508_v53, 0.0 }
 0x1eb   : > { %v1503_v1 = vadd.f32 %v6967_v49, %v1502_v62  ;;  %v1706_v6 = vmax.f32 %v1500_v59, 0.0 }
 0x1ec   : > { %v1709_v5 = vmax.f32 %v1511_v61, 0.0 }
 0x1ed   : > { %v1707_v7 = vmax.f32 %v1503_v1, 0.0 }
 0x1ee   : > { %v1763_v8 = vpack.c.bf16 %v1709_v5, %v1708_v4 }
 0x1ef   : > { %v1762_v14 = vpack.c.bf16 %v1707_v7, %v1706_v6  ;;  %v5681_v15 = vpop.f32.mrb[52].mxu1 }
 0x1f0   : > { %v1524_v17 = vadd.f32 %v5681_v15, %v6967_v49  ;;  %v1515_v19 = vpop.f32.mrb[53].mxu1 }
 0x1f1   : > { %v1516_v23 = vadd.f32 %v6967_v49, %v1515_v19  ;;  %v5682_v24 = vpop.f32.mrb[54].mxu1  ;;  %5755 = vmatprep.mubr.bf16.mxu0 %v1762_v14 }
 0x1f2   : > { %v1527_v27 = vadd.f32 %v5682_v24, %v6967_v49  ;;  %v1518_v30 = vpop.f32.mrb[55].mxu1  ;;  %5756 = vmatmul.mubr.bf16.gmra.mrb[48].mxu0 %v1763_v8  ;;  %v1712_v32 = vmax.f32 %v1524_v17, 0.0 }
 0x1f3   : > { %v1519_v31 = vadd.f32 %v6967_v49, %v1518_v30  ;;  %v1710_v36 = vmax.f32 %v1516_v23, 0.0 }
 0x1f4   : > { %v1713_v34 = vmax.f32 %v1527_v27, 0.0 }
 0x1f5   : > { %v1711_v39 = vmax.f32 %v1519_v31, 0.0 }
 0x1f6   : > { %v1765_v40 = vpack.c.bf16 %v1713_v34, %v1712_v32 }
 0x1f7   : > { %v1764_v44 = vpack.c.bf16 %v1711_v39, %v1710_v36  ;;  %v5685_v9 = vpop.f32.mrb[56].mxu1 }
 0x1f8   : > { %v1540_v47 = vadd.f32 %v5685_v9, %v6967_v49  ;;  %v1531_v48 = vpop.f32.mrb[57].mxu1 }
 0x1f9   : > { %v1532_v52 = vadd.f32 %v6967_v49, %v1531_v48  ;;  %v5686_v53 = vpop.f32.mrb[58].mxu1  ;;  %5759 = vmatprep.mubr.bf16.mxu0 %v1764_v44 }
 0x1fa   : > { %v1543_v55 = vadd.f32 %v5686_v53, %v6967_v49  ;;  %v1534_v59 = vpop.f32.mrb[59].mxu1  ;;  %5760 = vmatmul.mubr.bf16.gmra.mrb[52].mxu0 %v1765_v40  ;;  %v1716_v61 = vmax.f32 %v1540_v47, 0.0 }
 0x1fb   : > { %v1535_v60 = vadd.f32 %v6967_v49, %v1534_v59  ;;  %v1714_v1 = vmax.f32 %v1532_v52, 0.0 }
 0x1fc   : > { %v1717_v62 = vmax.f32 %v1543_v55, 0.0 }
 0x1fd   : > { %v1715_v4 = vmax.f32 %v1535_v60, 0.0 }
 0x1fe   : > { %v1767_v5 = vpack.c.bf16 %v1717_v62, %v1716_v61 }
 0x1ff   : > { %v1766_v6 = vpack.c.bf16 %v1715_v4, %v1714_v1  ;;  %v5689_v7 = vpop.f32.mrb[60].mxu1 }
 0x200   : > { %v1556_v8 = vadd.f32 %v5689_v7, %v6967_v49  ;;  %v1547_v14 = vpop.f32.mrb[61].mxu1 }
 0x201   : > { %v1548_v15 = vadd.f32 %v6967_v49, %v1547_v14  ;;  %v5690_v17 = vpop.f32.mrb[62].mxu1  ;;  %5763 = vmatprep.mubr.bf16.mxu0 %v1766_v6 }
 0x202   : > { %v1559_v19 = vadd.f32 %v5690_v17, %v6967_v49  ;;  %v1550_v23 = vpop.f32.mrb[63].mxu1  ;;  %5764 = vmatmul.mubr.bf16.gmra.mrb[56].mxu0 %v1767_v5  ;;  %v1720_v27 = vmax.f32 %v1556_v8, 0.0 }
 0x203   : > { %v1551_v24 = vadd.f32 %v6967_v49, %v1550_v23  ;;  %v1718_v31 = vmax.f32 %v1548_v15, 0.0 }
 0x204   : > { %v1721_v30 = vmax.f32 %v1559_v19, 0.0 }
 0x205   : > { %v1719_v32 = vmax.f32 %v1551_v24, 0.0 }
 0x206   : > { %v1769_v34 = vpack.c.bf16 %v1721_v30, %v1720_v27 }
 0x207   : > { %v1768_v36 = vpack.c.bf16 %v1719_v32, %v1718_v31  ;;  %v5693_v39 = vpop.f32.mrb[64].mxu1 }
 0x208   : > { %v1572_v40 = vadd.f32 %v5693_v39, %v6967_v49  ;;  %v1563_v44 = vpop.f32.mrb[65].mxu1 }
 0x209   : > { %v1564_v9 = vadd.f32 %v6967_v49, %v1563_v44  ;;  %v5694_v47 = vpop.f32.mrb[66].mxu1  ;;  %5767 = vmatprep.mubr.bf16.mxu0 %v1768_v36 }
 0x20a   : > { %v1575_v48 = vadd.f32 %v5694_v47, %v6967_v49  ;;  %v1566_v52 = vpop.f32.mrb[67].mxu1  ;;  %5768 = vmatmul.mubr.bf16.gmra.mrb[60].mxu0 %v1769_v34  ;;  %v1724_v55 = vmax.f32 %v1572_v40, 0.0 }
 0x20b   : > { %v1567_v53 = vadd.f32 %v6967_v49, %v1566_v52  ;;  %v1722_v60 = vmax.f32 %v1564_v9, 0.0 }
 0x20c   : > { %v1725_v59 = vmax.f32 %v1575_v48, 0.0 }
 0x20d   : > { %v1723_v61 = vmax.f32 %v1567_v53, 0.0 }
 0x20e   : > { %v1771_v62 = vpack.c.bf16 %v1725_v59, %v1724_v55 }
 0x20f   : > { %v1770_v1 = vpack.c.bf16 %v1723_v61, %v1722_v60  ;;  %v5697_v4 = vpop.f32.mrb[68].mxu1 }
 0x210   : > { %v1588_v5 = vadd.f32 %v5697_v4, %v6967_v49  ;;  %v1579_v6 = vpop.f32.mrb[69].mxu1 }
 0x211   : > { %v1580_v7 = vadd.f32 %v6967_v49, %v1579_v6  ;;  %v5698_v8 = vpop.f32.mrb[70].mxu1  ;;  %5771 = vmatprep.mubr.bf16.mxu0 %v1770_v1 }
 0x212   : > { %v1591_v14 = vadd.f32 %v5698_v8, %v6967_v49  ;;  %v1582_v15 = vpop.f32.mrb[71].mxu1  ;;  %5772 = vmatmul.mubr.bf16.gmra.mrb[64].mxu0 %v1771_v62  ;;  %v1728_v19 = vmax.f32 %v1588_v5, 0.0 }
 0x213   : > { %v1583_v17 = vadd.f32 %v6967_v49, %v1582_v15  ;;  %v1726_v24 = vmax.f32 %v1580_v7, 0.0 }
 0x214   : > { %v1729_v23 = vmax.f32 %v1591_v14, 0.0 }
 0x215   : > { %v1727_v27 = vmax.f32 %v1583_v17, 0.0 }
 0x216   : > { %v1773_v30 = vpack.c.bf16 %v1729_v23, %v1728_v19 }
 0x217   : > { %v1772_v31 = vpack.c.bf16 %v1727_v27, %v1726_v24  ;;  %v5701_v32 = vpop.f32.mrb[72].mxu1 }
 0x218   : > { %v1604_v34 = vadd.f32 %v5701_v32, %v6967_v49  ;;  %v1595_v36 = vpop.f32.mrb[73].mxu1 }
 0x219   : > { %v1596_v39 = vadd.f32 %v6967_v49, %v1595_v36  ;;  %v5702_v40 = vpop.f32.mrb[74].mxu1  ;;  %5775 = vmatprep.mubr.bf16.mxu0 %v1772_v31 }
 0x21a   : > { %v1607_v44 = vadd.f32 %v5702_v40, %v6967_v49  ;;  %v1598_v9 = vpop.f32.mrb[75].mxu1  ;;  %5776 = vmatmul.mubr.bf16.gmra.mrb[68].mxu0 %v1773_v30  ;;  %v1732_v48 = vmax.f32 %v1604_v34, 0.0 }
 0x21b   : > { %v1599_v47 = vadd.f32 %v6967_v49, %v1598_v9  ;;  %v1730_v53 = vmax.f32 %v1596_v39, 0.0 }
 0x21c   : > { %v1733_v52 = vmax.f32 %v1607_v44, 0.0 }
 0x21d   : > { %v1731_v55 = vmax.f32 %v1599_v47, 0.0 }
 0x21e   : > { %v1775_v59 = vpack.c.bf16 %v1733_v52, %v1732_v48 }
 0x21f   : > { %v1774_v60 = vpack.c.bf16 %v1731_v55, %v1730_v53  ;;  %v5705_v61 = vpop.f32.mrb[76].mxu1 }
 0x220   : > { %v1620_v62 = vadd.f32 %v5705_v61, %v6967_v49  ;;  %v1611_v1 = vpop.f32.mrb[77].mxu1 }
 0x221   : > { %v1612_v4 = vadd.f32 %v6967_v49, %v1611_v1  ;;  %v5706_v5 = vpop.f32.mrb[78].mxu1  ;;  %5779 = vmatprep.mubr.bf16.mxu0 %v1774_v60 }
 0x222   : > { %v1623_v6 = vadd.f32 %v5706_v5, %v6967_v49  ;;  %v1614_v7 = vpop.f32.mrb[79].mxu1  ;;  %5780 = vmatmul.mubr.bf16.gmra.mrb[72].mxu0 %v1775_v59  ;;  %v1736_v14 = vmax.f32 %v1620_v62, 0.0 }
 0x223   : > { %v1615_v8 = vadd.f32 %v6967_v49, %v1614_v7  ;;  %v1734_v17 = vmax.f32 %v1612_v4, 0.0 }
 0x224   : > { %v1737_v15 = vmax.f32 %v1623_v6, 0.0 }
 0x225   : > { %v1735_v19 = vmax.f32 %v1615_v8, 0.0 }
 0x226   : > { %v1777_v23 = vpack.c.bf16 %v1737_v15, %v1736_v14 }
 0x227   : > { %v1776_v24 = vpack.c.bf16 %v1735_v19, %v1734_v17  ;;  %v5709_v27 = vpop.f32.mrb[80].mxu1 }
 0x228   : > { %v1636_v30 = vadd.f32 %v5709_v27, %v6967_v49  ;;  %v1627_v31 = vpop.f32.mrb[81].mxu1 }
 0x229   : > { %v1628_v32 = vadd.f32 %v6967_v49, %v1627_v31  ;;  %v5710_v34 = vpop.f32.mrb[82].mxu1  ;;  %5783 = vmatprep.mubr.bf16.mxu0 %v1776_v24 }
 0x22a   : > { %v1639_v36 = vadd.f32 %v5710_v34, %v6967_v49  ;;  %v1630_v39 = vpop.f32.mrb[83].mxu1  ;;  %5784 = vmatmul.mubr.bf16.gmra.mrb[76].mxu0 %v1777_v23  ;;  %v1740_v44 = vmax.f32 %v1636_v30, 0.0 }
 0x22b   : > { %v1631_v40 = vadd.f32 %v6967_v49, %v1630_v39  ;;  %v1738_v47 = vmax.f32 %v1628_v32, 0.0 }
 0x22c   : > { %v1741_v9 = vmax.f32 %v1639_v36, 0.0 }
 0x22d   : > { %v1739_v48 = vmax.f32 %v1631_v40, 0.0 }
 0x22e   : > { %v1779_v52 = vpack.c.bf16 %v1741_v9, %v1740_v44 }
 0x22f   : > { %v1778_v53 = vpack.c.bf16 %v1739_v48, %v1738_v47  ;;  %v5713_v55 = vpop.f32.mrb[84].mxu1 }
 0x230   : > { %v1652_v59 = vadd.f32 %v5713_v55, %v6967_v49  ;;  %v1643_v60 = vpop.f32.mrb[85].mxu1 }
 0x231   : > { %v1644_v61 = vadd.f32 %v6967_v49, %v1643_v60  ;;  %v5714_v62 = vpop.f32.mrb[86].mxu1  ;;  %5787 = vmatprep.mubr.bf16.mxu0 %v1778_v53 }
 0x232   : > { %v1655_v1 = vadd.f32 %v5714_v62, %v6967_v49  ;;  %v1646_v4 = vpop.f32.mrb[87].mxu1  ;;  %5788 = vmatmul.mubr.bf16.gmra.mrb[80].mxu0 %v1779_v52  ;;  %v1744_v6 = vmax.f32 %v1652_v59, 0.0 }
 0x233   : > { %v1647_v5 = vadd.f32 %v6967_v49, %v1646_v4  ;;  %v1742_v8 = vmax.f32 %v1644_v61, 0.0 }
 0x234   : > { %v1745_v7 = vmax.f32 %v1655_v1, 0.0 }
 0x235   : > { %v1743_v14 = vmax.f32 %v1647_v5, 0.0 }
 0x236   : > { %v1781_v15 = vpack.c.bf16 %v1745_v7, %v1744_v6 }
 0x237   : > { %v1780_v17 = vpack.c.bf16 %v1743_v14, %v1742_v8  ;;  %v5717_v19 = vpop.f32.mrb[88].mxu1  ;;  %v6462_v14 = vld [vmem:[%s7791_s12] sm:$0xff]  }
 0x238   : > { %v1668_v23 = vadd.f32 %v5717_v19, %v6967_v49  ;;  %v1659_v24 = vpop.f32.mrb[89].mxu1  ;;  %5963 = vmatprep.subr.bf16.mxu1 %v6462_v14 }
 0x239   : > { %v1660_v27 = vadd.f32 %v6967_v49, %v1659_v24  ;;  %v5718_v30 = vpop.f32.mrb[90].mxu1  ;;  %5791 = vmatprep.mubr.bf16.mxu0 %v1780_v17  ;;  %v7063_v17 = vld [vmem:[%s7785_s6] ss:$0 sm:$0xff] }
 0x23a   : > { %v1671_v31 = vadd.f32 %v5718_v30, %v6967_v49  ;;  %v1662_v32 = vpop.f32.mrb[91].mxu1  ;;  %5792 = vmatmul.mubr.bf16.gmra.mrb[84].mxu0 %v1781_v15  ;;  %v1748_v36 = vmax.f32 %v1668_v23, 0.0  ;;  %v6461_v15 = vld [vmem:[%s7788_s9] sm:$0xff]  }
 0x23b   : > { %v1663_v34 = vadd.f32 %v6967_v49, %v1662_v32  ;;  %v1746_v40 = vmax.f32 %v1660_v27, 0.0  ;;  %5883 = vmatprep.subr.bf16.mxu0 %v6461_v15 }
 0x23c   : > { %v1749_v39 = vmax.f32 %v1671_v31, 0.0  ;;  %5884 = vmatpush3.bf16.msra.mxu0 %v6461_v15 }
 0x23d   : > { %v1747_v44 = vmax.f32 %v1663_v34, 0.0 }
 0x23e   : > { %v1783_v9 = vpack.c.bf16 %v1749_v39, %v1748_v36  ;;  %v6471_v36 = vld [vmem:[%s7788_s9 + $0x10] sm:$0xff]  }
 0x23f   : > { %v1782_v47 = vpack.c.bf16 %v1747_v44, %v1746_v40  ;;  %v5721_v48 = vpop.f32.mrb[92].mxu1 }
 0x240   : > { %v1684_v52 = vadd.f32 %v5721_v48, %v6967_v49  ;;  %v1675_v53 = vpop.f32.mrb[93].mxu1 }
 0x241   : > { %v1676_v55 = vadd.f32 %v6967_v49, %v1675_v53  ;;  %v5722_v59 = vpop.f32.mrb[94].mxu1  ;;  %5795 = vmatprep.mubr.bf16.mxu0 %v1782_v47 }
 0x242   : > { %v1687_v60 = vadd.f32 %v5722_v59, %v6967_v49  ;;  %v1678_v61 = vpop.f32.mrb[95].mxu1  ;;  %5796 = vmatmul.mubr.bf16.gmra.mrb[88].mxu0 %v1783_v9  ;;  %v1752_v1 = vmax.f32 %v1684_v52, 0.0  ;;  %v6463_v59 = vld [vmem:[%s7791_s12 + $0x8] sm:$0xff]  }
 0x243   : > { %v1679_v62 = vadd.f32 %v6967_v49, %v1678_v61  ;;  %v1750_v5 = vmax.f32 %v1676_v55, 0.0  ;;  %v6466_v49 = vld [vmem:[%s7788_s9 + $0x8] sm:$0xff]  }
 0x244   : > { %v1753_v4 = vmax.f32 %v1687_v60, 0.0  ;;  %5885 = vmatprep.subr.bf16.mxu0 %v6466_v49 }
 0x245   : > { %v1751_v6 = vmax.f32 %v1679_v62, 0.0  ;;  %5886 = vmatpush3.bf16.msra.mxu0 %v6466_v49 }
 0x246   : > { %v1785_v7 = vpack.c.bf16 %v1753_v4, %v1752_v1  ;;  %5887 = vmatprep.subr.bf16.mxu0 %v6471_v36 }
 0x247   : > { %v1784_v8 = vpack.c.bf16 %v1751_v6, %v1750_v5 }
 0x249   : > { %5799 = vmatprep.mubr.bf16.mxu0 %v1784_v8  ;;  %5888 = vmatpush3.bf16.msra.mxu0 %v6471_v36 }
 0x24a   : > { %5800 = vmatmul.mubr.bf16.gmra.mrb[92].mxu0 %v1785_v7  ;;  %v6464_v7 = vld [vmem:[%s7791_s12 + $0x10] sm:$0xff]  }
 0x2a5   : > { %v5741_v19 = vpop.f32.mrb[32].mxu0 }
 0x2a6   : > { %v1900_v23 = vadd.f32 %v5741_v19, %v7063_v17  ;;  %v1891_v24 = vpop.f32.mrb[33].mxu0 }
 0x2a7   : > { %v1892_v27 = vadd.f32 %v7063_v17, %v1891_v24  ;;  %v5742_v30 = vpop.f32.mrb[34].mxu0 }
 0x2a8   : > { %v1903_v31 = vadd.f32 %v5742_v30, %v7063_v17  ;;  %v1894_v32 = vpop.f32.mrb[35].mxu0  ;;  %v2148_v39 = vmax.f32 %v1900_v23, 0.0 }
 0x2a9   : > { %v1895_v34 = vadd.f32 %v7063_v17, %v1894_v32  ;;  %v2146_v44 = vmax.f32 %v1892_v27, 0.0 }
 0x2aa   : > { %v2149_v40 = vmax.f32 %v1903_v31, 0.0 }
 0x2ab   : > { %v2147_v9 = vmax.f32 %v1895_v34, 0.0 }
 0x2ac   : > { %v2211_v47 = vpack.c.bf16 %v2149_v40, %v2148_v39  ;;  %v6472_v39 = vld [vmem:[%s7788_s9 + $0x18] sm:$0xff]  }
 0x2ad   : > { %v2210_v48 = vpack.c.bf16 %v2147_v9, %v2146_v44  ;;  %v5745_v52 = vpop.f32.mrb[36].mxu0  ;;  %v6467_v9 = vld [vmem:[%s7791_s12 + $0x20] sm:$0xff]   ;;  %5889 = vmatprep.subr.bf16.mxu0 %v6472_v39 }
 0x2ae   : > { %v1916_v53 = vadd.f32 %v5745_v52, %v7063_v17  ;;  %v1907_v55 = vpop.f32.mrb[37].mxu0  ;;  %5890 = vmatpush3.bf16.msra.mxu0 %v6472_v39 }
 0x2af   : > { %v1908_v60 = vadd.f32 %v7063_v17, %v1907_v55  ;;  %v5746_v61 = vpop.f32.mrb[38].mxu0  ;;  %5819 = vmatprep.mubr.bf16.mxu1 %v2210_v48 }
 0x2b0   : > { %v1919_v62 = vadd.f32 %v5746_v61, %v7063_v17  ;;  %v1910_v1 = vpop.f32.mrb[39].mxu0  ;;  %5820 = vmatmul.mubr.bf16.vlgmr.msra.gmra.mrb[96].mxu1 %v2211_v47  ;;  %v2152_v5 = vmax.f32 %v1916_v53, 0.0  ;;  %v6468_v61 = vld [vmem:[%s7791_s12 + $0x28] sm:$0xff]  }
 0x2b1   : > { %v1911_v4 = vadd.f32 %v7063_v17, %v1910_v1  ;;  %5964 = vmatpush3.bf16.msra.mxu1 %v6462_v14  ;;  %v2150_v8 = vmax.f32 %v1908_v60, 0.0  ;;  %v6465_v14 = vld [vmem:[%s7791_s12 + $0x18] sm:$0xff]  }
 0x2b2   : > { %v2153_v6 = vmax.f32 %v1919_v62, 0.0  ;;  %5965 = vmatprep.subr.bf16.mxu1 %v6463_v59 }
 0x2b3   : > { %v2151_v15 = vmax.f32 %v1911_v4, 0.0 }
 0x2b4   : > { %v2213_v49 = vpack.c.bf16 %v2153_v6, %v2152_v5 }
 0x2b5   : > { %v2212_v19 = vpack.c.bf16 %v2151_v15, %v2150_v8  ;;  %v5749_v23 = vpop.f32.mrb[40].mxu0  ;;  %5966 = vmatpush3.bf16.msra.mxu1 %v6463_v59  ;;  %v6469_v15 = vld [vmem:[%s7791_s12 + $0x30] sm:$0xff]  }
 0x2b6   : > { %v1932_v24 = vadd.f32 %v5749_v23, %v7063_v17  ;;  %v1923_v27 = vpop.f32.mrb[41].mxu0  ;;  %5967 = vmatprep.subr.bf16.mxu1 %v6464_v7 }
 0x2b7   : > { %v1924_v30 = vadd.f32 %v7063_v17, %v1923_v27  ;;  %v5750_v31 = vpop.f32.mrb[42].mxu0  ;;  %5823 = vmatprep.mubr.bf16.mxu1 %v2212_v19 }
 0x2b8   : > { %v1935_v32 = vadd.f32 %v5750_v31, %v7063_v17  ;;  %v1926_v34 = vpop.f32.mrb[43].mxu0  ;;  %5824 = vmatmul.mubr.bf16.gmra.mrb[100].mxu1 %v2213_v49  ;;  %v2156_v40 = vmax.f32 %v1932_v24, 0.0  ;;  %v6470_v31 = vld [vmem:[%s7791_s12 + $0x38] sm:$0xff]  }
 0x2b9   : > { %v1927_v36 = vadd.f32 %v7063_v17, %v1926_v34  ;;  %5968 = vmatpush3.bf16.msra.mxu1 %v6464_v7  ;;  %v2154_v47 = vmax.f32 %v1924_v30, 0.0 }
 0x2ba   : > { %v2157_v44 = vmax.f32 %v1935_v32, 0.0  ;;  %5969 = vmatprep.subr.bf16.mxu1 %v6465_v14 }
 0x2bb   : > { %v2155_v48 = vmax.f32 %v1927_v36, 0.0 }
 0x2bc   : > { %v2215_v52 = vpack.c.bf16 %v2157_v44, %v2156_v40  ;;  %v6473_v44 = vld [vmem:[%s7788_s9 + $0x20] sm:$0xff]  }
 0x2bd   : > { %v2214_v53 = vpack.c.bf16 %v2155_v48, %v2154_v47  ;;  %v5753_v55 = vpop.f32.mrb[44].mxu0  ;;  %5970 = vmatpush3.bf16.msra.mxu1 %v6465_v14  ;;  %5891 = vmatprep.subr.bf16.mxu0 %v6473_v44 }
 0x2be   : > { %v1948_v59 = vadd.f32 %v5753_v55, %v7063_v17  ;;  %v1939_v60 = vpop.f32.mrb[45].mxu0  ;;  %5971 = vmatprep.subr.bf16.mxu1 %v6467_v9  ;;  %5892 = vmatpush3.bf16.msra.mxu0 %v6473_v44 }
 0x2bf   : > { %v1940_v62 = vadd.f32 %v7063_v17, %v1939_v60  ;;  %v5754_v1 = vpop.f32.mrb[46].mxu0  ;;  %5827 = vmatprep.mubr.bf16.mxu1 %v2214_v53 }
 0x2c0   : > { %v1951_v4 = vadd.f32 %v5754_v1, %v7063_v17  ;;  %v1942_v5 = vpop.f32.mrb[47].mxu0  ;;  %5828 = vmatmul.mubr.bf16.gmra.mrb[104].mxu1 %v2215_v52  ;;  %v2160_v7 = vmax.f32 %v1948_v59, 0.0 }
 0x2c1   : > { %v1943_v6 = vadd.f32 %v7063_v17, %v1942_v5  ;;  %5972 = vmatpush3.bf16.msra.mxu1 %v6467_v9  ;;  %v2158_v49 = vmax.f32 %v1940_v62, 0.0 }
 0x2c2   : > { %v2161_v8 = vmax.f32 %v1951_v4, 0.0  ;;  %5973 = vmatprep.subr.bf16.mxu1 %v6468_v61 }
 0x2c3   : > { %v2159_v19 = vmax.f32 %v1943_v6, 0.0 }
 0x2c4   : > { %v2217_v23 = vpack.c.bf16 %v2161_v8, %v2160_v7 }
 0x2c5   : > { %v2216_v24 = vpack.c.bf16 %v2159_v19, %v2158_v49  ;;  %v5757_v27 = vpop.f32.mrb[48].mxu0  ;;  %5974 = vmatpush3.bf16.msra.mxu1 %v6468_v61 }
 0x2c6   : > { %v1964_v14 = vadd.f32 %v5757_v27, %v7063_v17  ;;  %v1955_v30 = vpop.f32.mrb[49].mxu0  ;;  %5975 = vmatprep.subr.bf16.mxu1 %v6469_v15 }
 0x2c7   : > { %v1956_v32 = vadd.f32 %v7063_v17, %v1955_v30  ;;  %v5758_v34 = vpop.f32.mrb[50].mxu0  ;;  %5831 = vmatprep.mubr.bf16.mxu1 %v2216_v24 }
 0x2c8   : > { %v1967_v36 = vadd.f32 %v5758_v34, %v7063_v17  ;;  %v1958_v39 = vpop.f32.mrb[51].mxu0  ;;  %5832 = vmatmul.mubr.bf16.gmra.mrb[108].mxu1 %v2217_v23  ;;  %v2164_v9 = vmax.f32 %v1964_v14, 0.0 }
 0x2c9   : > { %v1959_v40 = vadd.f32 %v7063_v17, %v1958_v39  ;;  %5976 = vmatpush3.bf16.msra.mxu1 %v6469_v15  ;;  %v2162_v48 = vmax.f32 %v1956_v32, 0.0  ;;  %v6474_v39 = vld [vmem:[%s7788_s9 + $0x28] sm:$0xff]  }
 0x2ca   : > { %v2165_v47 = vmax.f32 %v1967_v36, 0.0  ;;  %5977 = vmatprep.subr.bf16.mxu1 %v6470_v31  ;;  %5893 = vmatprep.subr.bf16.mxu0 %v6474_v39 }
 0x2cb   : > { %v2163_v52 = vmax.f32 %v1959_v40, 0.0  ;;  %5894 = vmatpush3.bf16.msra.mxu0 %v6474_v39 }
 0x2cc   : > { %v2219_v53 = vpack.c.bf16 %v2165_v47, %v2164_v9 }
 0x2cd   : > { %v2218_v55 = vpack.c.bf16 %v2163_v52, %v2162_v48  ;;  %v5761_v59 = vpop.f32.mrb[52].mxu0  ;;  %5978 = vmatpush3.bf16.msra.mxu1 %v6470_v31 }
 0x2ce   : > { %v1980_v60 = vadd.f32 %v5761_v59, %v7063_v17  ;;  %v1971_v61 = vpop.f32.mrb[53].mxu0 }
 0x2cf   : > { %v1972_v62 = vadd.f32 %v7063_v17, %v1971_v61  ;;  %v5762_v1 = vpop.f32.mrb[54].mxu0  ;;  %5835 = vmatprep.mubr.bf16.mxu1 %v2218_v55 }
 0x2d0   : > { %v1983_v4 = vadd.f32 %v5762_v1, %v7063_v17  ;;  %v1974_v5 = vpop.f32.mrb[55].mxu0  ;;  %5836 = vmatmul.mubr.bf16.gmra.mrb[112].mxu1 %v2219_v53  ;;  %v2168_v7 = vmax.f32 %v1980_v60, 0.0 }
 0x2d1   : > { %v1975_v6 = vadd.f32 %v7063_v17, %v1974_v5  ;;  %v2166_v15 = vmax.f32 %v1972_v62, 0.0 }
 0x2d2   : > { %v2169_v8 = vmax.f32 %v1983_v4, 0.0 }
 0x2d3   : > { %v2167_v49 = vmax.f32 %v1975_v6, 0.0 }
 0x2d4   : > { %v2221_v19 = vpack.c.bf16 %v2169_v8, %v2168_v7 }
 0x2d5   : > { %v2220_v23 = vpack.c.bf16 %v2167_v49, %v2166_v15  ;;  %v5765_v24 = vpop.f32.mrb[56].mxu0 }
 0x2d6   : > { %v1996_v27 = vadd.f32 %v5765_v24, %v7063_v17  ;;  %v1987_v14 = vpop.f32.mrb[57].mxu0 }
 0x2d7   : > { %v1988_v30 = vadd.f32 %v7063_v17, %v1987_v14  ;;  %v5766_v31 = vpop.f32.mrb[58].mxu0  ;;  %5839 = vmatprep.mubr.bf16.mxu1 %v2220_v23 }
 0x2d8   : > { %v1999_v32 = vadd.f32 %v5766_v31, %v7063_v17  ;;  %v1990_v34 = vpop.f32.mrb[59].mxu0  ;;  %5840 = vmatmul.mubr.bf16.gmra.mrb[116].mxu1 %v2221_v19  ;;  %v2172_v40 = vmax.f32 %v1996_v27, 0.0 }
 0x2d9   : > { %v1991_v36 = vadd.f32 %v7063_v17, %v1990_v34  ;;  %v2170_v9 = vmax.f32 %v1988_v30, 0.0  ;;  %v6475_v34 = vld [vmem:[%s7788_s9 + $0x30] sm:$0xff]  }
 0x2da   : > { %v2173_v44 = vmax.f32 %v1999_v32, 0.0  ;;  %5895 = vmatprep.subr.bf16.mxu0 %v6475_v34 }
 0x2db   : > { %v2171_v47 = vmax.f32 %v1991_v36, 0.0  ;;  %5896 = vmatpush3.bf16.msra.mxu0 %v6475_v34 }
 0x2dc   : > { %v2223_v48 = vpack.c.bf16 %v2173_v44, %v2172_v40 }
 0x2dd   : > { %v2222_v52 = vpack.c.bf16 %v2171_v47, %v2170_v9  ;;  %v5769_v53 = vpop.f32.mrb[60].mxu0 }
 0x2de   : > { %v2012_v55 = vadd.f32 %v5769_v53, %v7063_v17  ;;  %v2003_v59 = vpop.f32.mrb[61].mxu0 }
 0x2df   : > { %v2004_v60 = vadd.f32 %v7063_v17, %v2003_v59  ;;  %v5770_v61 = vpop.f32.mrb[62].mxu0  ;;  %5843 = vmatprep.mubr.bf16.mxu1 %v2222_v52 }
 0x2e0   : > { %v2015_v62 = vadd.f32 %v5770_v61, %v7063_v17  ;;  %v2006_v1 = vpop.f32.mrb[63].mxu0  ;;  %5844 = vmatmul.mubr.bf16.gmra.mrb[120].mxu1 %v2223_v48  ;;  %v2176_v5 = vmax.f32 %v2012_v55, 0.0 }
 0x2e1   : > { %v2007_v4 = vadd.f32 %v7063_v17, %v2006_v1  ;;  %v2174_v7 = vmax.f32 %v2004_v60, 0.0 }
 0x2e2   : > { %v2177_v6 = vmax.f32 %v2015_v62, 0.0 }
 0x2e3   : > { %v2175_v8 = vmax.f32 %v2007_v4, 0.0 }
 0x2e4   : > { %v2225_v15 = vpack.c.bf16 %v2177_v6, %v2176_v5 }
 0x2e5   : > { %v2224_v49 = vpack.c.bf16 %v2175_v8, %v2174_v7  ;;  %v5773_v19 = vpop.f32.mrb[64].mxu0 }
 0x2e6   : > { %v2028_v23 = vadd.f32 %v5773_v19, %v7063_v17  ;;  %v2019_v24 = vpop.f32.mrb[65].mxu0 }
 0x2e7   : > { %v2020_v27 = vadd.f32 %v7063_v17, %v2019_v24  ;;  %v5774_v14 = vpop.f32.mrb[66].mxu0  ;;  %5847 = vmatprep.mubr.bf16.mxu1 %v2224_v49 }
 0x2e8   : > { %v2031_v30 = vadd.f32 %v5774_v14, %v7063_v17  ;;  %v2022_v31 = vpop.f32.mrb[67].mxu0  ;;  %5848 = vmatmul.mubr.bf16.gmra.mrb[124].mxu1 %v2225_v15  ;;  %v2180_v36 = vmax.f32 %v2028_v23, 0.0 }
 0x2e9   : > { %v2023_v32 = vadd.f32 %v7063_v17, %v2022_v31  ;;  %v2178_v40 = vmax.f32 %v2020_v27, 0.0  ;;  %v6476_v31 = vld [vmem:[%s7788_s9 + $0x38] sm:$0xff]  }
 0x2ea   : > { %v2181_v39 = vmax.f32 %v2031_v30, 0.0  ;;  %5897 = vmatprep.subr.bf16.mxu0 %v6476_v31 }
 0x2eb   : > { %v2179_v44 = vmax.f32 %v2023_v32, 0.0  ;;  %5898 = vmatpush3.bf16.msra.mxu0 %v6476_v31 }
 0x2ec   : > { %v2227_v9 = vpack.c.bf16 %v2181_v39, %v2180_v36 }
 0x2ed   : > { %v2226_v47 = vpack.c.bf16 %v2179_v44, %v2178_v40  ;;  %v5777_v48 = vpop.f32.mrb[68].mxu0 }
 0x2ee   : > { %v2044_v52 = vadd.f32 %v5777_v48, %v7063_v17  ;;  %v2035_v53 = vpop.f32.mrb[69].mxu0 }
 0x2ef   : > { %v2036_v55 = vadd.f32 %v7063_v17, %v2035_v53  ;;  %v5778_v59 = vpop.f32.mrb[70].mxu0  ;;  %5851 = vmatprep.mubr.bf16.mxu1 %v2226_v47 }
 0x2f0   : > { %v2047_v60 = vadd.f32 %v5778_v59, %v7063_v17  ;;  %v2038_v61 = vpop.f32.mrb[71].mxu0  ;;  %5852 = vmatmul.mubr.bf16.gmra.mrb[128].mxu1 %v2227_v9  ;;  %v2184_v1 = vmax.f32 %v2044_v52, 0.0 }
 0x2f1   : > { %v2039_v62 = vadd.f32 %v7063_v17, %v2038_v61  ;;  %v2182_v5 = vmax.f32 %v2036_v55, 0.0 }
 0x2f2   : > { %v2185_v4 = vmax.f32 %v2047_v60, 0.0 }
 0x2f3   : > { %v2183_v6 = vmax.f32 %v2039_v62, 0.0 }
 0x2f4   : > { %v2229_v7 = vpack.c.bf16 %v2185_v4, %v2184_v1 }
 0x2f5   : > { %v2228_v8 = vpack.c.bf16 %v2183_v6, %v2182_v5  ;;  %v5781_v15 = vpop.f32.mrb[72].mxu0 }
 0x2f6   : > { %v2060_v49 = vadd.f32 %v5781_v15, %v7063_v17  ;;  %v2051_v19 = vpop.f32.mrb[73].mxu0 }
 0x2f7   : > { %v2052_v23 = vadd.f32 %v7063_v17, %v2051_v19  ;;  %v5782_v24 = vpop.f32.mrb[74].mxu0  ;;  %5855 = vmatprep.mubr.bf16.mxu1 %v2228_v8 }
 0x2f8   : > { %v2063_v27 = vadd.f32 %v5782_v24, %v7063_v17  ;;  %v2054_v14 = vpop.f32.mrb[75].mxu0  ;;  %5856 = vmatmul.mubr.bf16.gmra.mrb[132].mxu1 %v2229_v7  ;;  %v2188_v32 = vmax.f32 %v2060_v49, 0.0 }
 0x2f9   : > { %v2055_v30 = vadd.f32 %v7063_v17, %v2054_v14  ;;  %v2186_v36 = vmax.f32 %v2052_v23, 0.0 }
 0x2fa   : > { %v2189_v34 = vmax.f32 %v2063_v27, 0.0 }
 0x2fb   : > { %v2187_v39 = vmax.f32 %v2055_v30, 0.0 }
 0x2fc   : > { %v2231_v40 = vpack.c.bf16 %v2189_v34, %v2188_v32 }
 0x2fd   : > { %v2230_v44 = vpack.c.bf16 %v2187_v39, %v2186_v36  ;;  %v5785_v9 = vpop.f32.mrb[76].mxu0 }
 0x2fe   : > { %v2076_v47 = vadd.f32 %v5785_v9, %v7063_v17  ;;  %v2067_v48 = vpop.f32.mrb[77].mxu0 }
 0x2ff   : > { %v2068_v52 = vadd.f32 %v7063_v17, %v2067_v48  ;;  %v5786_v53 = vpop.f32.mrb[78].mxu0  ;;  %5859 = vmatprep.mubr.bf16.mxu1 %v2230_v44 }
 0x300   : > { %v2079_v55 = vadd.f32 %v5786_v53, %v7063_v17  ;;  %v2070_v59 = vpop.f32.mrb[79].mxu0  ;;  %5860 = vmatmul.mubr.bf16.gmra.mrb[136].mxu1 %v2231_v40  ;;  %v2192_v61 = vmax.f32 %v2076_v47, 0.0 }
 0x301   : > { %v2071_v60 = vadd.f32 %v7063_v17, %v2070_v59  ;;  %v2190_v1 = vmax.f32 %v2068_v52, 0.0 }
 0x302   : > { %v2193_v62 = vmax.f32 %v2079_v55, 0.0 }
 0x303   : > { %v2191_v4 = vmax.f32 %v2071_v60, 0.0 }
 0x304   : > { %v2233_v5 = vpack.c.bf16 %v2193_v62, %v2192_v61 }
 0x305   : > { %v2232_v6 = vpack.c.bf16 %v2191_v4, %v2190_v1  ;;  %v5789_v7 = vpop.f32.mrb[80].mxu0 }
 0x306   : > { %v2092_v8 = vadd.f32 %v5789_v7, %v7063_v17  ;;  %v2083_v15 = vpop.f32.mrb[81].mxu0 }
 0x307   : > { %v2084_v49 = vadd.f32 %v7063_v17, %v2083_v15  ;;  %v5790_v19 = vpop.f32.mrb[82].mxu0  ;;  %5863 = vmatprep.mubr.bf16.mxu1 %v2232_v6 }
 0x308   : > { %v2095_v23 = vadd.f32 %v5790_v19, %v7063_v17  ;;  %v2086_v24 = vpop.f32.mrb[83].mxu0  ;;  %5864 = vmatmul.mubr.bf16.gmra.mrb[140].mxu1 %v2233_v5  ;;  %v2196_v14 = vmax.f32 %v2092_v8, 0.0 }
 0x309   : > { %v2087_v27 = vadd.f32 %v7063_v17, %v2086_v24  ;;  %v2194_v31 = vmax.f32 %v2084_v49, 0.0 }
 0x30a   : > { %v2197_v30 = vmax.f32 %v2095_v23, 0.0 }
 0x30b   : > { %v2195_v32 = vmax.f32 %v2087_v27, 0.0 }
 0x30c   : > { %v2235_v34 = vpack.c.bf16 %v2197_v30, %v2196_v14 }
 0x30d   : > { %v2234_v36 = vpack.c.bf16 %v2195_v32, %v2194_v31  ;;  %v5793_v39 = vpop.f32.mrb[84].mxu0 }
 0x30e   : > { %v2108_v40 = vadd.f32 %v5793_v39, %v7063_v17  ;;  %v2099_v44 = vpop.f32.mrb[85].mxu0 }
 0x30f   : > { %v2100_v9 = vadd.f32 %v7063_v17, %v2099_v44  ;;  %v5794_v47 = vpop.f32.mrb[86].mxu0  ;;  %5867 = vmatprep.mubr.bf16.mxu1 %v2234_v36 }
 0x310   : > { %v2111_v48 = vadd.f32 %v5794_v47, %v7063_v17  ;;  %v2102_v52 = vpop.f32.mrb[87].mxu0  ;;  %5868 = vmatmul.mubr.bf16.gmra.mrb[144].mxu1 %v2235_v34  ;;  %v2200_v55 = vmax.f32 %v2108_v40, 0.0 }
 0x311   : > { %v2103_v53 = vadd.f32 %v7063_v17, %v2102_v52  ;;  %v2198_v60 = vmax.f32 %v2100_v9, 0.0 }
 0x312   : > { %v2201_v59 = vmax.f32 %v2111_v48, 0.0 }
 0x313   : > { %v2199_v61 = vmax.f32 %v2103_v53, 0.0 }
 0x314   : > { %v2237_v62 = vpack.c.bf16 %v2201_v59, %v2200_v55 }
 0x315   : > { %v2236_v1 = vpack.c.bf16 %v2199_v61, %v2198_v60  ;;  %v5797_v4 = vpop.f32.mrb[88].mxu0 }
 0x316   : > { %v2124_v5 = vadd.f32 %v5797_v4, %v7063_v17  ;;  %v2115_v6 = vpop.f32.mrb[89].mxu0 }
 0x317   : > { %v2116_v7 = vadd.f32 %v7063_v17, %v2115_v6  ;;  %v5798_v8 = vpop.f32.mrb[90].mxu0  ;;  %5871 = vmatprep.mubr.bf16.mxu1 %v2236_v1 }
 0x318   : > { %v2127_v15 = vadd.f32 %v5798_v8, %v7063_v17  ;;  %v2118_v49 = vpop.f32.mrb[91].mxu0  ;;  %5872 = vmatmul.mubr.bf16.gmra.mrb[148].mxu1 %v2237_v62  ;;  %v2204_v23 = vmax.f32 %v2124_v5, 0.0  ;;  %v6482_v62 = vld [vmem:[%s7790_s11 + $0x28] sm:$0xff]  }
 0x319   : > { %v2119_v19 = vadd.f32 %v7063_v17, %v2118_v49  ;;  %v2202_v27 = vmax.f32 %v2116_v7, 0.0 }
 0x31a   : > { %v2205_v24 = vmax.f32 %v2127_v15, 0.0  ;;  %v6483_v15 = vld [vmem:[%s7790_s11 + $0x30] sm:$0xff]  }
 0x31b   : > { %v2203_v14 = vmax.f32 %v2119_v19, 0.0 }
 0x31c   : > { %v2239_v30 = vpack.c.bf16 %v2205_v24, %v2204_v23 }
 0x31d   : > { %v2238_v31 = vpack.c.bf16 %v2203_v14, %v2202_v27  ;;  %v5801_v32 = vpop.f32.mrb[92].mxu0 }
 0x31e   : > { %v2140_v34 = vadd.f32 %v5801_v32, %v7063_v17  ;;  %v2131_v36 = vpop.f32.mrb[93].mxu0 }
 0x31f   : > { %v2132_v39 = vadd.f32 %v7063_v17, %v2131_v36  ;;  %v5802_v40 = vpop.f32.mrb[94].mxu0  ;;  %5875 = vmatprep.mubr.bf16.mxu1 %v2238_v31 }
 0x320   : > { %v2143_v44 = vadd.f32 %v5802_v40, %v7063_v17  ;;  %v2134_v9 = vpop.f32.mrb[95].mxu0  ;;  %5876 = vmatmul.mubr.bf16.gmra.mrb[152].mxu1 %v2239_v30  ;;  %v2208_v48 = vmax.f32 %v2140_v34, 0.0  ;;  %v6484_v30 = vld [vmem:[%s7790_s11 + $0x38] sm:$0xff]  }
 0x321   : > { %v2135_v47 = vadd.f32 %v7063_v17, %v2134_v9  ;;  %v2206_v53 = vmax.f32 %v2132_v39, 0.0 }
 0x322   : > { %v2209_v52 = vmax.f32 %v2143_v44, 0.0 }
 0x323   : > { %v2207_v55 = vmax.f32 %v2135_v47, 0.0 }
 0x324   : > { %v2241_v59 = vpack.c.bf16 %v2209_v52, %v2208_v48 }
 0x325   : > { %v2240_v60 = vpack.c.bf16 %v2207_v55, %v2206_v53 }
 0x327   : > { %5879 = vmatprep.mubr.bf16.mxu1 %v2240_v60 }
 0x328   : > { %5880 = vmatmul.mubr.bf16.gmra.mrb[156].mxu1 %v2241_v59 }
 0x329   : > { %5979 = vmatprep.mubr.bf16.mxu1 %v6784_v22  ;;  %v6477_v22 = vld [vmem:[%s7790_s11] sm:$0xff]  }
 0x32a   : > { %6043 = vmatprep.subr.bf16.mxu1 %v6477_v22 }
 0x330   : > { %5980 = vmatmul.mubr.bf16.vlgmr.msra.gmra.mrb[160].mxu1 %v6791_v29  ;;  %v6478_v29 = vld [vmem:[%s7790_s11 + $0x8] sm:$0xff]  }
 0x331   : > { %5983 = vmatprep.mubr.bf16.mxu1 %v6802_v43  ;;  %6044 = vmatpush3.bf16.msra.mxu1 %v6477_v22  ;;  %v7200_v43 = vld [vmem:[%s7787_s8] ss:$0 sm:$0xff] }
 0x332   : > { %6045 = vmatprep.subr.bf16.mxu1 %v6478_v29 }
 0x335   : > { %6046 = vmatpush3.bf16.msra.mxu1 %v6478_v29 }
 0x338   : > { %5984 = vmatmul.mubr.bf16.gmra.mrb[164].mxu1 %v6814_v58 }
 0x339   : > { %5987 = vmatprep.mubr.bf16.mxu1 %v6826_v10 }
 0x340   : > { %5988 = vmatmul.mubr.bf16.gmra.mrb[168].mxu1 %v6838_v26 }
 0x341   : > { %5991 = vmatprep.mubr.bf16.mxu1 %v6847_v41  ;;  %v6479_v41 = vld [vmem:[%s7790_s11 + $0x10] sm:$0xff]  }
 0x342   : > { %6047 = vmatprep.subr.bf16.mxu1 %v6479_v41 }
 0x343   : > { %6048 = vmatpush3.bf16.msra.mxu1 %v6479_v41 }
 0x348   : > { %5992 = vmatmul.mubr.bf16.gmra.mrb[172].mxu1 %v6856_v57 }
 0x349   : > { %5995 = vmatprep.mubr.bf16.mxu1 %v6865_v11 }
 0x350   : > { %5996 = vmatmul.mubr.bf16.gmra.mrb[176].mxu1 %v6874_v28 }
 0x351   : > { %5999 = vmatprep.mubr.bf16.mxu1 %v6883_v46 }
 0x358   : > { %6000 = vmatmul.mubr.bf16.gmra.mrb[180].mxu1 %v6892_v0  ;;  %v6481_v0 = vld [vmem:[%s7790_s11 + $0x20] sm:$0xff]  }
 0x359   : > { %6003 = vmatprep.mubr.bf16.mxu1 %v6901_v21 }
 0x360   : > { %6004 = vmatmul.mubr.bf16.gmra.mrb[184].mxu1 %v6910_v42 }
 0x361   : > { %6007 = vmatprep.mubr.bf16.mxu1 %v6919_v63 }
 0x368   : > { %6008 = vmatmul.mubr.bf16.gmra.mrb[188].mxu1 %v6926_v16 }
 0x369   : > { %6011 = vmatprep.mubr.bf16.mxu1 %v6806_v51 }
 0x370   : > { %6012 = vmatmul.mubr.bf16.gmra.mrb[192].mxu1 %v6818_v2 }
 0x371   : > { %6015 = vmatprep.mubr.bf16.mxu1 %v6830_v18 }
 0x378   : > { %6016 = vmatmul.mubr.bf16.gmra.mrb[196].mxu1 %v6842_v35 }
 0x379   : > { %6019 = vmatprep.mubr.bf16.mxu1 %v6851_v50  ;;  %v6480_v50 = vld [vmem:[%s7790_s11 + $0x18] sm:$0xff]  }
 0x37a   : > { %6049 = vmatprep.subr.bf16.mxu1 %v6480_v50 }
 0x37b   : > { %6050 = vmatpush3.bf16.msra.mxu1 %v6480_v50 }
 0x37c   : > { %6051 = vmatprep.subr.bf16.mxu1 %v6481_v0 }
 0x37f   : > { %6052 = vmatpush3.bf16.msra.mxu1 %v6481_v0 }
 0x380   : > { %6020 = vmatmul.mubr.bf16.gmra.mrb[200].mxu1 %v6860_v3  ;;  %6053 = vmatprep.subr.bf16.mxu1 %v6482_v62 }
 0x381   : > { %6023 = vmatprep.mubr.bf16.mxu1 %v6869_v20 }
 0x383   : > { %v5821_v51 = vpop.f32.mrb[96].mxu1  ;;  %6054 = vmatpush3.bf16.msra.mxu1 %v6482_v62 }
 0x384   : > { %v2356_v58 = vadd.f32 %v5821_v51, %v7200_v43  ;;  %v2347_v2 = vpop.f32.mrb[97].mxu1  ;;  %6055 = vmatprep.subr.bf16.mxu1 %v6483_v15 }
 0x385   : > { %v2348_v10 = vadd.f32 %v7200_v43, %v2347_v2  ;;  %v5822_v18 = vpop.f32.mrb[98].mxu1 }
 0x386   : > { %v2359_v26 = vadd.f32 %v5822_v18, %v7200_v43  ;;  %v2350_v35 = vpop.f32.mrb[99].mxu1  ;;  %v2604_v3 = vmax.f32 %v2356_v58, 0.0 }
 0x387   : > { %v2351_v57 = vadd.f32 %v7200_v43, %v2350_v35  ;;  %v2602_v20 = vmax.f32 %v2348_v10, 0.0  ;;  %6056 = vmatpush3.bf16.msra.mxu1 %v6483_v15 }
 0x388   : > { %v2605_v11 = vmax.f32 %v2359_v26, 0.0  ;;  %6024 = vmatmul.mubr.bf16.gmra.mrb[204].mxu1 %v6878_v38  ;;  %6057 = vmatprep.subr.bf16.mxu1 %v6484_v30 }
 0x389   : > { %v2603_v28 = vmax.f32 %v2351_v57, 0.0  ;;  %6027 = vmatprep.mubr.bf16.mxu1 %v6887_v56 }
 0x38a   : > { %v2667_v46 = vpack.c.bf16 %v2605_v11, %v2604_v3 }
 0x38b   : > { %v2666_v21 = vpack.c.bf16 %v2603_v28, %v2602_v20  ;;  %v5825_v42 = vpop.f32.mrb[100].mxu1  ;;  %6058 = vmatpush3.bf16.msra.mxu1 %v6484_v30 }
 0x38c   : > { %v2372_v63 = vadd.f32 %v5825_v42, %v7200_v43  ;;  %v2363_v16 = vpop.f32.mrb[101].mxu1 }
 0x38d   : > { %v2364_v17 = vadd.f32 %v7200_v43, %v2363_v16  ;;  %v5826_v38 = vpop.f32.mrb[102].mxu1  ;;  %5899 = vmatprep.mubr.bf16.mxu0 %v2666_v21 }
 0x38e   : > { %v2375_v61 = vadd.f32 %v5826_v38, %v7200_v43  ;;  %v2366_v56 = vpop.f32.mrb[103].mxu1  ;;  %5900 = vmatmul.mubr.bf16.vlgmr.msra.gmra.mrb[96].mxu0 %v2667_v46  ;;  %v2608_v4 = vmax.f32 %v2372_v63, 0.0 }
 0x38f   : > { %v2367_v1 = vadd.f32 %v7200_v43, %v2366_v56  ;;  %v2606_v6 = vmax.f32 %v2364_v17, 0.0 }
 0x390   : > { %v2609_v5 = vmax.f32 %v2375_v61, 0.0  ;;  %6028 = vmatmul.mubr.bf16.gmra.mrb[208].mxu1 %v6896_v13 }
 0x391   : > { %v2607_v7 = vmax.f32 %v2367_v1, 0.0  ;;  %6031 = vmatprep.mubr.bf16.mxu1 %v6905_v33 }
 0x392   : > { %v2669_v8 = vpack.c.bf16 %v2609_v5, %v2608_v4 }
 0x393   : > { %v2668_v49 = vpack.c.bf16 %v2607_v7, %v2606_v6  ;;  %v5829_v19 = vpop.f32.mrb[104].mxu1 }
 0x394   : > { %v2388_v23 = vadd.f32 %v5829_v19, %v7200_v43  ;;  %v2379_v24 = vpop.f32.mrb[105].mxu1 }
 0x395   : > { %v2380_v27 = vadd.f32 %v7200_v43, %v2379_v24  ;;  %v5830_v14 = vpop.f32.mrb[106].mxu1  ;;  %5903 = vmatprep.mubr.bf16.mxu0 %v2668_v49 }
 0x396   : > { %v2391_v13 = vadd.f32 %v5830_v14, %v7200_v43  ;;  %v2382_v33 = vpop.f32.mrb[107].mxu1  ;;  %5904 = vmatmul.mubr.bf16.gmra.mrb[100].mxu0 %v2669_v8  ;;  %v2612_v32 = vmax.f32 %v2388_v23, 0.0 }
 0x397   : > { %v2383_v31 = vadd.f32 %v7200_v43, %v2382_v33  ;;  %v2610_v36 = vmax.f32 %v2380_v27, 0.0 }
 0x398   : > { %v2613_v34 = vmax.f32 %v2391_v13, 0.0  ;;  %6032 = vmatmul.mubr.bf16.gmra.mrb[212].mxu1 %v6914_v54 }
 0x399   : > { %v2611_v39 = vmax.f32 %v2383_v31, 0.0  ;;  %6035 = vmatprep.mubr.bf16.mxu1 %v6923_v12 }
 0x39a   : > { %v2671_v40 = vpack.c.bf16 %v2613_v34, %v2612_v32 }
 0x39b   : > { %v2670_v44 = vpack.c.bf16 %v2611_v39, %v2610_v36  ;;  %v5833_v9 = vpop.f32.mrb[108].mxu1 }
 0x39c   : > { %v2404_v47 = vadd.f32 %v5833_v9, %v7200_v43  ;;  %v2395_v48 = vpop.f32.mrb[109].mxu1 }
 0x39d   : > { %v2396_v52 = vadd.f32 %v7200_v43, %v2395_v48  ;;  %v5834_v53 = vpop.f32.mrb[110].mxu1  ;;  %5907 = vmatprep.mubr.bf16.mxu0 %v2670_v44 }
 0x39e   : > { %v2407_v55 = vadd.f32 %v5834_v53, %v7200_v43  ;;  %v2398_v54 = vpop.f32.mrb[111].mxu1  ;;  %5908 = vmatmul.mubr.bf16.gmra.mrb[104].mxu0 %v2671_v40  ;;  %v2616_v12 = vmax.f32 %v2404_v47, 0.0 }
 0x39f   : > { %v2399_v59 = vadd.f32 %v7200_v43, %v2398_v54  ;;  %v2614_v22 = vmax.f32 %v2396_v52, 0.0 }
 0x3a0   : > { %v2617_v60 = vmax.f32 %v2407_v55, 0.0  ;;  %6036 = vmatmul.mubr.bf16.gmra.mrb[216].mxu1 %v6930_v25 }
 0x3a1   : > { %v2615_v29 = vmax.f32 %v2399_v59, 0.0  ;;  %6039 = vmatprep.mubr.bf16.mxu1 %v6935_v37 }
 0x3a2   : > { %v2673_v51 = vpack.c.bf16 %v2617_v60, %v2616_v12 }
 0x3a3   : > { %v2672_v58 = vpack.c.bf16 %v2615_v29, %v2614_v22  ;;  %v5837_v2 = vpop.f32.mrb[112].mxu1 }
 0x3a4   : > { %v2420_v10 = vadd.f32 %v5837_v2, %v7200_v43  ;;  %v2411_v18 = vpop.f32.mrb[113].mxu1 }
 0x3a5   : > { %v2412_v26 = vadd.f32 %v7200_v43, %v2411_v18  ;;  %v5838_v35 = vpop.f32.mrb[114].mxu1  ;;  %5911 = vmatprep.mubr.bf16.mxu0 %v2672_v58 }
 0x3a6   : > { %v2423_v41 = vadd.f32 %v5838_v35, %v7200_v43  ;;  %v2414_v50 = vpop.f32.mrb[115].mxu1  ;;  %5912 = vmatmul.mubr.bf16.gmra.mrb[108].mxu0 %v2673_v51  ;;  %v2620_v57 = vmax.f32 %v2420_v10, 0.0 }
 0x3a7   : > { %v2415_v25 = vadd.f32 %v7200_v43, %v2414_v50  ;;  %v2618_v37 = vmax.f32 %v2412_v26, 0.0 }
 0x3a8   : > { %v2621_v3 = vmax.f32 %v2423_v41, 0.0  ;;  %6040 = vmatmul.mubr.bf16.gmra.mrb[220].mxu1 %v6939_v45 }
 0x3a9   : > { %v2619_v11 = vmax.f32 %v2415_v25, 0.0 }
 0x3aa   : > { %v2675_v20 = vpack.c.bf16 %v2621_v3, %v2620_v57 }
 0x3ab   : > { %v2674_v28 = vpack.c.bf16 %v2619_v11, %v2618_v37  ;;  %v5841_v46 = vpop.f32.mrb[116].mxu1 }
 0x3ac   : > { %v2436_v0 = vadd.f32 %v5841_v46, %v7200_v43  ;;  %v2427_v21 = vpop.f32.mrb[117].mxu1 }
 0x3ad   : > { %v2428_v42 = vadd.f32 %v7200_v43, %v2427_v21  ;;  %v5842_v63 = vpop.f32.mrb[118].mxu1  ;;  %5915 = vmatprep.mubr.bf16.mxu0 %v2674_v28 }
 0x3ae   : > { %v2439_v16 = vadd.f32 %v5842_v63, %v7200_v43  ;;  %v2430_v17 = vpop.f32.mrb[119].mxu1  ;;  %5916 = vmatmul.mubr.bf16.gmra.mrb[112].mxu0 %v2675_v20  ;;  %v2624_v61 = vmax.f32 %v2436_v0, 0.0 }
 0x3af   : > { %v2431_v38 = vadd.f32 %v7200_v43, %v2430_v17  ;;  %v2622_v56 = vmax.f32 %v2428_v42, 0.0 }
 0x3b0   : > { %v2625_v45 = vmax.f32 %v2439_v16, 0.0 }
 0x3b1   : > { %v2623_v62 = vmax.f32 %v2431_v38, 0.0 }
 0x3b2   : > { %v2677_v1 = vpack.c.bf16 %v2625_v45, %v2624_v61 }
 0x3b3   : > { %v2676_v4 = vpack.c.bf16 %v2623_v62, %v2622_v56  ;;  %v5845_v5 = vpop.f32.mrb[120].mxu1 }
 0x3b4   : > { %v2452_v6 = vadd.f32 %v5845_v5, %v7200_v43  ;;  %v2443_v7 = vpop.f32.mrb[121].mxu1 }
 0x3b5   : > { %v2444_v8 = vadd.f32 %v7200_v43, %v2443_v7  ;;  %v5846_v15 = vpop.f32.mrb[122].mxu1  ;;  %5919 = vmatprep.mubr.bf16.mxu0 %v2676_v4 }
 0x3b6   : > { %v2455_v49 = vadd.f32 %v5846_v15, %v7200_v43  ;;  %v2446_v19 = vpop.f32.mrb[123].mxu1  ;;  %5920 = vmatmul.mubr.bf16.gmra.mrb[116].mxu0 %v2677_v1  ;;  %v2628_v24 = vmax.f32 %v2452_v6, 0.0 }
 0x3b7   : > { %v2447_v23 = vadd.f32 %v7200_v43, %v2446_v19  ;;  %v2626_v14 = vmax.f32 %v2444_v8, 0.0 }
 0x3b8   : > { %v2629_v27 = vmax.f32 %v2455_v49, 0.0 }
 0x3b9   : > { %v2627_v13 = vmax.f32 %v2447_v23, 0.0 }
 0x3ba   : > { %v2679_v33 = vpack.c.bf16 %v2629_v27, %v2628_v24 }
 0x3bb   : > { %v2678_v30 = vpack.c.bf16 %v2627_v13, %v2626_v14  ;;  %v5849_v31 = vpop.f32.mrb[124].mxu1 }
 0x3bc   : > { %v2468_v32 = vadd.f32 %v5849_v31, %v7200_v43  ;;  %v2459_v34 = vpop.f32.mrb[125].mxu1 }
 0x3bd   : > { %v2460_v36 = vadd.f32 %v7200_v43, %v2459_v34  ;;  %v5850_v39 = vpop.f32.mrb[126].mxu1  ;;  %5923 = vmatprep.mubr.bf16.mxu0 %v2678_v30 }
 0x3be   : > { %v2471_v40 = vadd.f32 %v5850_v39, %v7200_v43  ;;  %v2462_v44 = vpop.f32.mrb[127].mxu1  ;;  %5924 = vmatmul.mubr.bf16.gmra.mrb[120].mxu0 %v2679_v33  ;;  %v2632_v47 = vmax.f32 %v2468_v32, 0.0 }
 0x3bf   : > { %v2463_v9 = vadd.f32 %v7200_v43, %v2462_v44  ;;  %v2630_v52 = vmax.f32 %v2460_v36, 0.0 }
 0x3c0   : > { %v2633_v48 = vmax.f32 %v2471_v40, 0.0 }
 0x3c1   : > { %v2631_v53 = vmax.f32 %v2463_v9, 0.0 }
 0x3c2   : > { %v2681_v55 = vpack.c.bf16 %v2633_v48, %v2632_v47 }
 0x3c3   : > { %v2680_v54 = vpack.c.bf16 %v2631_v53, %v2630_v52  ;;  %v5853_v59 = vpop.f32.mrb[128].mxu1 }
 0x3c4   : > { %v2484_v12 = vadd.f32 %v5853_v59, %v7200_v43  ;;  %v2475_v60 = vpop.f32.mrb[129].mxu1 }
 0x3c5   : > { %v2476_v22 = vadd.f32 %v7200_v43, %v2475_v60  ;;  %v5854_v29 = vpop.f32.mrb[130].mxu1  ;;  %5927 = vmatprep.mubr.bf16.mxu0 %v2680_v54 }
 0x3c6   : > { %v2487_v51 = vadd.f32 %v5854_v29, %v7200_v43  ;;  %v2478_v58 = vpop.f32.mrb[131].mxu1  ;;  %5928 = vmatmul.mubr.bf16.gmra.mrb[124].mxu0 %v2681_v55  ;;  %v2636_v10 = vmax.f32 %v2484_v12, 0.0 }
 0x3c7   : > { %v2479_v2 = vadd.f32 %v7200_v43, %v2478_v58  ;;  %v2634_v26 = vmax.f32 %v2476_v22, 0.0 }
 0x3c8   : > { %v2637_v18 = vmax.f32 %v2487_v51, 0.0 }
 0x3c9   : > { %v2635_v35 = vmax.f32 %v2479_v2, 0.0 }
 0x3ca   : > { %v2683_v41 = vpack.c.bf16 %v2637_v18, %v2636_v10 }
 0x3cb   : > { %v2682_v50 = vpack.c.bf16 %v2635_v35, %v2634_v26  ;;  %v5857_v25 = vpop.f32.mrb[132].mxu1 }
 0x3cc   : > { %v2500_v57 = vadd.f32 %v5857_v25, %v7200_v43  ;;  %v2491_v3 = vpop.f32.mrb[133].mxu1 }
 0x3cd   : > { %v2492_v37 = vadd.f32 %v7200_v43, %v2491_v3  ;;  %v5858_v11 = vpop.f32.mrb[134].mxu1  ;;  %5931 = vmatprep.mubr.bf16.mxu0 %v2682_v50 }
 0x3ce   : > { %v2503_v20 = vadd.f32 %v5858_v11, %v7200_v43  ;;  %v2494_v28 = vpop.f32.mrb[135].mxu1  ;;  %5932 = vmatmul.mubr.bf16.gmra.mrb[128].mxu0 %v2683_v41  ;;  %v2640_v0 = vmax.f32 %v2500_v57, 0.0 }
 0x3cf   : > { %v2495_v46 = vadd.f32 %v7200_v43, %v2494_v28  ;;  %v2638_v42 = vmax.f32 %v2492_v37, 0.0 }
 0x3d0   : > { %v2641_v21 = vmax.f32 %v2503_v20, 0.0 }
 0x3d1   : > { %v2639_v63 = vmax.f32 %v2495_v46, 0.0 }
 0x3d2   : > { %v2685_v16 = vpack.c.bf16 %v2641_v21, %v2640_v0 }
 0x3d3   : > { %v2684_v17 = vpack.c.bf16 %v2639_v63, %v2638_v42  ;;  %v5861_v38 = vpop.f32.mrb[136].mxu1 }
 0x3d4   : > { %v2516_v61 = vadd.f32 %v5861_v38, %v7200_v43  ;;  %v2507_v45 = vpop.f32.mrb[137].mxu1 }
 0x3d5   : > { %v2508_v56 = vadd.f32 %v7200_v43, %v2507_v45  ;;  %v5862_v62 = vpop.f32.mrb[138].mxu1  ;;  %5935 = vmatprep.mubr.bf16.mxu0 %v2684_v17 }
 0x3d6   : > { %v2519_v1 = vadd.f32 %v5862_v62, %v7200_v43  ;;  %v2510_v4 = vpop.f32.mrb[139].mxu1  ;;  %5936 = vmatmul.mubr.bf16.gmra.mrb[132].mxu0 %v2685_v16  ;;  %v2644_v6 = vmax.f32 %v2516_v61, 0.0 }
 0x3d7   : > { %v2511_v5 = vadd.f32 %v7200_v43, %v2510_v4  ;;  %v2642_v8 = vmax.f32 %v2508_v56, 0.0 }
 0x3d8   : > { %v2645_v7 = vmax.f32 %v2519_v1, 0.0 }
 0x3d9   : > { %v2643_v15 = vmax.f32 %v2511_v5, 0.0 }
 0x3da   : > { %v2687_v49 = vpack.c.bf16 %v2645_v7, %v2644_v6 }
 0x3db   : > { %v2686_v19 = vpack.c.bf16 %v2643_v15, %v2642_v8  ;;  %v5865_v23 = vpop.f32.mrb[140].mxu1 }
 0x3dc   : > { %v2532_v24 = vadd.f32 %v5865_v23, %v7200_v43  ;;  %v2523_v27 = vpop.f32.mrb[141].mxu1 }
 0x3dd   : > { %v2524_v14 = vadd.f32 %v7200_v43, %v2523_v27  ;;  %v5866_v13 = vpop.f32.mrb[142].mxu1  ;;  %5939 = vmatprep.mubr.bf16.mxu0 %v2686_v19 }
 0x3de   : > { %v2535_v33 = vadd.f32 %v5866_v13, %v7200_v43  ;;  %v2526_v30 = vpop.f32.mrb[143].mxu1  ;;  %5940 = vmatmul.mubr.bf16.gmra.mrb[136].mxu0 %v2687_v49  ;;  %v2648_v32 = vmax.f32 %v2532_v24, 0.0 }
 0x3df   : > { %v2527_v31 = vadd.f32 %v7200_v43, %v2526_v30  ;;  %v2646_v36 = vmax.f32 %v2524_v14, 0.0 }
 0x3e0   : > { %v2649_v34 = vmax.f32 %v2535_v33, 0.0 }
 0x3e1   : > { %v2647_v39 = vmax.f32 %v2527_v31, 0.0  ;;  %v6485_v31 = vld [vmem:[%s7793_s14] sm:$0xff]  }
 0x3e2   : > { %v2689_v40 = vpack.c.bf16 %v2649_v34, %v2648_v32  ;;  %6123 = vmatprep.subr.bf16.mxu0 %v6485_v31  ;;  %v6486_v32 = vld [vmem:[%s7793_s14 + $0x8] sm:$0xff]  }
 0x3e3   : > { %v2688_v44 = vpack.c.bf16 %v2647_v39, %v2646_v36  ;;  %v5869_v9 = vpop.f32.mrb[144].mxu1  ;;  %6124 = vmatpush3.bf16.msra.mxu0 %v6485_v31 }
 0x3e4   : > { %v2548_v47 = vadd.f32 %v5869_v9, %v7200_v43  ;;  %v2539_v48 = vpop.f32.mrb[145].mxu1  ;;  %6125 = vmatprep.subr.bf16.mxu0 %v6486_v32 }
 0x3e5   : > { %v2540_v52 = vadd.f32 %v7200_v43, %v2539_v48  ;;  %v5870_v53 = vpop.f32.mrb[146].mxu1  ;;  %5943 = vmatprep.mubr.bf16.mxu0 %v2688_v44  ;;  %v6487_v48 = vld [vmem:[%s7793_s14 + $0x10] sm:$0xff]  }
 0x3e6   : > { %v2551_v55 = vadd.f32 %v5870_v53, %v7200_v43  ;;  %v2542_v54 = vpop.f32.mrb[147].mxu1  ;;  %5944 = vmatmul.mubr.bf16.gmra.mrb[140].mxu0 %v2689_v40  ;;  %v2652_v12 = vmax.f32 %v2548_v47, 0.0 }
 0x3e7   : > { %v2543_v59 = vadd.f32 %v7200_v43, %v2542_v54  ;;  %v2650_v22 = vmax.f32 %v2540_v52, 0.0  ;;  %6126 = vmatpush3.bf16.msra.mxu0 %v6486_v32  ;;  %v6488_v52 = vld [vmem:[%s7793_s14 + $0x18] sm:$0xff]  }
 0x3e8   : > { %v2653_v60 = vmax.f32 %v2551_v55, 0.0  ;;  %6127 = vmatprep.subr.bf16.mxu0 %v6487_v48 }
 0x3e9   : > { %v2651_v29 = vmax.f32 %v2543_v59, 0.0 }
 0x3ea   : > { %v2691_v51 = vpack.c.bf16 %v2653_v60, %v2652_v12 }
 0x3eb   : > { %v2690_v58 = vpack.c.bf16 %v2651_v29, %v2650_v22  ;;  %v5873_v2 = vpop.f32.mrb[148].mxu1  ;;  %6128 = vmatpush3.bf16.msra.mxu0 %v6487_v48  ;;  %v6489_v22 = vld [vmem:[%s7793_s14 + $0x20] sm:$0xff]  }
 0x3ec   : > { %v2564_v10 = vadd.f32 %v5873_v2, %v7200_v43  ;;  %v2555_v18 = vpop.f32.mrb[149].mxu1  ;;  %6129 = vmatprep.subr.bf16.mxu0 %v6488_v52 }
 0x3ed   : > { %v2556_v26 = vadd.f32 %v7200_v43, %v2555_v18  ;;  %v5874_v35 = vpop.f32.mrb[150].mxu1  ;;  %5947 = vmatprep.mubr.bf16.mxu0 %v2690_v58 }
 0x3ee   : > { %v2567_v41 = vadd.f32 %v5874_v35, %v7200_v43  ;;  %v2558_v50 = vpop.f32.mrb[151].mxu1  ;;  %5948 = vmatmul.mubr.bf16.gmra.mrb[144].mxu0 %v2691_v51  ;;  %v2656_v57 = vmax.f32 %v2564_v10, 0.0 }
 0x3ef   : > { %v2559_v25 = vadd.f32 %v7200_v43, %v2558_v50  ;;  %v2654_v37 = vmax.f32 %v2556_v26, 0.0  ;;  %6130 = vmatpush3.bf16.msra.mxu0 %v6488_v52 }
 0x3f0   : > { %v2657_v3 = vmax.f32 %v2567_v41, 0.0  ;;  %6131 = vmatprep.subr.bf16.mxu0 %v6489_v22  ;;  %v6490_v41 = vld [vmem:[%s7793_s14 + $0x28] sm:$0xff]  }
 0x3f1   : > { %v2655_v11 = vmax.f32 %v2559_v25, 0.0 }
 0x3f2   : > { %v2693_v20 = vpack.c.bf16 %v2657_v3, %v2656_v57 }
 0x3f3   : > { %v2692_v28 = vpack.c.bf16 %v2655_v11, %v2654_v37  ;;  %v5877_v46 = vpop.f32.mrb[152].mxu1  ;;  %6132 = vmatpush3.bf16.msra.mxu0 %v6489_v22 }
 0x3f4   : > { %v2580_v0 = vadd.f32 %v5877_v46, %v7200_v43  ;;  %v2571_v21 = vpop.f32.mrb[153].mxu1  ;;  %6133 = vmatprep.subr.bf16.mxu0 %v6490_v41 }
 0x3f5   : > { %v2572_v42 = vadd.f32 %v7200_v43, %v2571_v21  ;;  %v5878_v63 = vpop.f32.mrb[154].mxu1  ;;  %5951 = vmatprep.mubr.bf16.mxu0 %v2692_v28 }
 0x3f6   : > { %v2583_v16 = vadd.f32 %v5878_v63, %v7200_v43  ;;  %v2574_v17 = vpop.f32.mrb[155].mxu1  ;;  %5952 = vmatmul.mubr.bf16.gmra.mrb[148].mxu0 %v2693_v20  ;;  %v2660_v61 = vmax.f32 %v2580_v0, 0.0  ;;  %v6491_v20 = vld [vmem:[%s7793_s14 + $0x30] sm:$0xff]  }
 0x3f7   : > { %v2575_v38 = vadd.f32 %v7200_v43, %v2574_v17  ;;  %v2658_v56 = vmax.f32 %v2572_v42, 0.0  ;;  %6134 = vmatpush3.bf16.msra.mxu0 %v6490_v41 }
 0x3f8   : > { %v2661_v45 = vmax.f32 %v2583_v16, 0.0  ;;  %6135 = vmatprep.subr.bf16.mxu0 %v6491_v20 }
 0x3f9   : > { %v2659_v62 = vmax.f32 %v2575_v38, 0.0  ;;  %v6492_v38 = vld [vmem:[%s7793_s14 + $0x38] sm:$0xff]  }
 0x3fa   : > { %v2695_v1 = vpack.c.bf16 %v2661_v45, %v2660_v61 }
 0x3fb   : > { %v2694_v4 = vpack.c.bf16 %v2659_v62, %v2658_v56  ;;  %v5881_v5 = vpop.f32.mrb[156].mxu1  ;;  %6136 = vmatpush3.bf16.msra.mxu0 %v6491_v20 }
 0x3fc   : > { %v2596_v6 = vadd.f32 %v5881_v5, %v7200_v43  ;;  %v2587_v7 = vpop.f32.mrb[157].mxu1  ;;  %6137 = vmatprep.subr.bf16.mxu0 %v6492_v38 }
 0x3fd   : > { %v2588_v8 = vadd.f32 %v7200_v43, %v2587_v7  ;;  %v5882_v15 = vpop.f32.mrb[158].mxu1  ;;  %5955 = vmatprep.mubr.bf16.mxu0 %v2694_v4 }
 0x3fe   : > { %v2599_v49 = vadd.f32 %v5882_v15, %v7200_v43  ;;  %v2590_v19 = vpop.f32.mrb[159].mxu1  ;;  %5956 = vmatmul.mubr.bf16.gmra.mrb[152].mxu0 %v2695_v1  ;;  %v2664_v24 = vmax.f32 %v2596_v6, 0.0 }
 0x3ff   : > { %v2591_v23 = vadd.f32 %v7200_v43, %v2590_v19  ;;  %v2662_v14 = vmax.f32 %v2588_v8, 0.0  ;;  %v7302_v43 = vld [vmem:[%s7789_s10] ss:$0 sm:$0xff]  ;;  %6138 = vmatpush3.bf16.msra.mxu0 %v6492_v38 }
 0x400   : > { %v2665_v27 = vmax.f32 %v2599_v49, 0.0 }
 0x401   : > { %v2663_v13 = vmax.f32 %v2591_v23, 0.0 }
 0x402   : > { %v2697_v33 = vpack.c.bf16 %v2665_v27, %v2664_v24 }
 0x403   : > { %v2696_v30 = vpack.c.bf16 %v2663_v13, %v2662_v14 }
 0x405   : > { %5959 = vmatprep.mubr.bf16.mxu0 %v2696_v30 }
 0x406   : > { %5960 = vmatmul.mubr.bf16.gmra.mrb[156].mxu0 %v2697_v33 }
 0x461   : > { %v5901_v34 = vpop.f32.mrb[96].mxu0 }
 0x462   : > { %v2812_v36 = vadd.f32 %v5901_v34, %v7302_v43  ;;  %v2803_v39 = vpop.f32.mrb[97].mxu0 }
 0x463   : > { %v2804_v40 = vadd.f32 %v7302_v43, %v2803_v39  ;;  %v5902_v44 = vpop.f32.mrb[98].mxu0 }
 0x464   : > { %v2815_v9 = vadd.f32 %v5902_v44, %v7302_v43  ;;  %v2806_v47 = vpop.f32.mrb[99].mxu0  ;;  %v3060_v55 = vmax.f32 %v2812_v36, 0.0 }
 0x465   : > { %v2807_v53 = vadd.f32 %v7302_v43, %v2806_v47  ;;  %v3058_v59 = vmax.f32 %v2804_v40, 0.0 }
 0x466   : > { %v3061_v54 = vmax.f32 %v2815_v9, 0.0 }
 0x467   : > { %v3059_v12 = vmax.f32 %v2807_v53, 0.0 }
 0x468   : > { %v3123_v60 = vpack.c.bf16 %v3061_v54, %v3060_v55 }
 0x469   : > { %v3122_v29 = vpack.c.bf16 %v3059_v12, %v3058_v59  ;;  %v5905_v51 = vpop.f32.mrb[100].mxu0 }
 0x46a   : > { %v2828_v58 = vadd.f32 %v5905_v51, %v7302_v43  ;;  %v2819_v2 = vpop.f32.mrb[101].mxu0 }
 0x46b   : > { %v2820_v10 = vadd.f32 %v7302_v43, %v2819_v2  ;;  %v5906_v18 = vpop.f32.mrb[102].mxu0  ;;  %6059 = vmatprep.mubr.bf16.mxu1 %v3122_v29 }
 0x46c   : > { %v2831_v26 = vadd.f32 %v5906_v18, %v7302_v43  ;;  %v2822_v35 = vpop.f32.mrb[103].mxu0  ;;  %6060 = vmatmul.mubr.bf16.vlgmr.msra.gmra.mrb[160].mxu1 %v3123_v60  ;;  %v3064_v25 = vmax.f32 %v2828_v58, 0.0 }
 0x46d   : > { %v2823_v50 = vadd.f32 %v7302_v43, %v2822_v35  ;;  %v3062_v3 = vmax.f32 %v2820_v10, 0.0 }
 0x46e   : > { %v3065_v57 = vmax.f32 %v2831_v26, 0.0 }
 0x46f   : > { %v3063_v37 = vmax.f32 %v2823_v50, 0.0 }
 0x470   : > { %v3125_v11 = vpack.c.bf16 %v3065_v57, %v3064_v25 }
 0x471   : > { %v3124_v28 = vpack.c.bf16 %v3063_v37, %v3062_v3  ;;  %v5909_v46 = vpop.f32.mrb[104].mxu0 }
 0x472   : > { %v2844_v0 = vadd.f32 %v5909_v46, %v7302_v43  ;;  %v2835_v21 = vpop.f32.mrb[105].mxu0 }
 0x473   : > { %v2836_v42 = vadd.f32 %v7302_v43, %v2835_v21  ;;  %v5910_v63 = vpop.f32.mrb[106].mxu0  ;;  %6063 = vmatprep.mubr.bf16.mxu1 %v3124_v28 }
 0x474   : > { %v2847_v16 = vadd.f32 %v5910_v63, %v7302_v43  ;;  %v2838_v17 = vpop.f32.mrb[107].mxu0  ;;  %6064 = vmatmul.mubr.bf16.gmra.mrb[164].mxu1 %v3125_v11  ;;  %v3068_v45 = vmax.f32 %v2844_v0, 0.0 }
 0x475   : > { %v2839_v61 = vadd.f32 %v7302_v43, %v2838_v17  ;;  %v3066_v62 = vmax.f32 %v2836_v42, 0.0 }
 0x476   : > { %v3069_v56 = vmax.f32 %v2847_v16, 0.0 }
 0x477   : > { %v3067_v1 = vmax.f32 %v2839_v61, 0.0 }
 0x478   : > { %v3127_v4 = vpack.c.bf16 %v3069_v56, %v3068_v45 }
 0x479   : > { %v3126_v5 = vpack.c.bf16 %v3067_v1, %v3066_v62  ;;  %v5913_v6 = vpop.f32.mrb[108].mxu0 }
 0x47a   : > { %v2860_v7 = vadd.f32 %v5913_v6, %v7302_v43  ;;  %v2851_v8 = vpop.f32.mrb[109].mxu0 }
 0x47b   : > { %v2852_v15 = vadd.f32 %v7302_v43, %v2851_v8  ;;  %v5914_v49 = vpop.f32.mrb[110].mxu0  ;;  %6067 = vmatprep.mubr.bf16.mxu1 %v3126_v5 }
 0x47c   : > { %v2863_v19 = vadd.f32 %v5914_v49, %v7302_v43  ;;  %v2854_v23 = vpop.f32.mrb[111].mxu0  ;;  %6068 = vmatmul.mubr.bf16.gmra.mrb[168].mxu1 %v3127_v4  ;;  %v3072_v27 = vmax.f32 %v2860_v7, 0.0 }
 0x47d   : > { %v2855_v24 = vadd.f32 %v7302_v43, %v2854_v23  ;;  %v3070_v13 = vmax.f32 %v2852_v15, 0.0 }
 0x47e   : > { %v3073_v14 = vmax.f32 %v2863_v19, 0.0 }
 0x47f   : > { %v3071_v33 = vmax.f32 %v2855_v24, 0.0 }
 0x480   : > { %v3129_v30 = vpack.c.bf16 %v3073_v14, %v3072_v27 }
 0x481   : > { %v3128_v31 = vpack.c.bf16 %v3071_v33, %v3070_v13  ;;  %v5917_v32 = vpop.f32.mrb[112].mxu0 }
 0x482   : > { %v2876_v34 = vadd.f32 %v5917_v32, %v7302_v43  ;;  %v2867_v36 = vpop.f32.mrb[113].mxu0 }
 0x483   : > { %v2868_v39 = vadd.f32 %v7302_v43, %v2867_v36  ;;  %v5918_v40 = vpop.f32.mrb[114].mxu0  ;;  %6071 = vmatprep.mubr.bf16.mxu1 %v3128_v31 }
 0x484   : > { %v2879_v44 = vadd.f32 %v5918_v40, %v7302_v43  ;;  %v2870_v9 = vpop.f32.mrb[115].mxu0  ;;  %6072 = vmatmul.mubr.bf16.gmra.mrb[172].mxu1 %v3129_v30  ;;  %v3076_v48 = vmax.f32 %v2876_v34, 0.0 }
 0x485   : > { %v2871_v47 = vadd.f32 %v7302_v43, %v2870_v9  ;;  %v3074_v53 = vmax.f32 %v2868_v39, 0.0 }
 0x486   : > { %v3077_v52 = vmax.f32 %v2879_v44, 0.0 }
 0x487   : > { %v3075_v55 = vmax.f32 %v2871_v47, 0.0 }
 0x488   : > { %v3131_v54 = vpack.c.bf16 %v3077_v52, %v3076_v48 }
 0x489   : > { %v3130_v59 = vpack.c.bf16 %v3075_v55, %v3074_v53  ;;  %v5921_v12 = vpop.f32.mrb[116].mxu0 }
 0x48a   : > { %v2892_v60 = vadd.f32 %v5921_v12, %v7302_v43  ;;  %v2883_v22 = vpop.f32.mrb[117].mxu0 }
 0x48b   : > { %v2884_v29 = vadd.f32 %v7302_v43, %v2883_v22  ;;  %v5922_v51 = vpop.f32.mrb[118].mxu0  ;;  %6075 = vmatprep.mubr.bf16.mxu1 %v3130_v59 }
 0x48c   : > { %v2895_v58 = vadd.f32 %v5922_v51, %v7302_v43  ;;  %v2886_v2 = vpop.f32.mrb[119].mxu0  ;;  %6076 = vmatmul.mubr.bf16.gmra.mrb[176].mxu1 %v3131_v54  ;;  %v3080_v18 = vmax.f32 %v2892_v60, 0.0 }
 0x48d   : > { %v2887_v10 = vadd.f32 %v7302_v43, %v2886_v2  ;;  %v3078_v35 = vmax.f32 %v2884_v29, 0.0 }
 0x48e   : > { %v3081_v26 = vmax.f32 %v2895_v58, 0.0 }
 0x48f   : > { %v3079_v41 = vmax.f32 %v2887_v10, 0.0 }
 0x490   : > { %v3133_v50 = vpack.c.bf16 %v3081_v26, %v3080_v18 }
 0x491   : > { %v3132_v25 = vpack.c.bf16 %v3079_v41, %v3078_v35  ;;  %v5925_v57 = vpop.f32.mrb[120].mxu0 }
 0x492   : > { %v2908_v3 = vadd.f32 %v5925_v57, %v7302_v43  ;;  %v2899_v37 = vpop.f32.mrb[121].mxu0 }
 0x493   : > { %v2900_v11 = vadd.f32 %v7302_v43, %v2899_v37  ;;  %v5926_v20 = vpop.f32.mrb[122].mxu0  ;;  %6079 = vmatprep.mubr.bf16.mxu1 %v3132_v25 }
 0x494   : > { %v2911_v28 = vadd.f32 %v5926_v20, %v7302_v43  ;;  %v2902_v46 = vpop.f32.mrb[123].mxu0  ;;  %6080 = vmatmul.mubr.bf16.gmra.mrb[180].mxu1 %v3133_v50  ;;  %v3084_v21 = vmax.f32 %v2908_v3, 0.0 }
 0x495   : > { %v2903_v0 = vadd.f32 %v7302_v43, %v2902_v46  ;;  %v3082_v63 = vmax.f32 %v2900_v11, 0.0 }
 0x496   : > { %v3085_v42 = vmax.f32 %v2911_v28, 0.0 }
 0x497   : > { %v3083_v16 = vmax.f32 %v2903_v0, 0.0 }
 0x498   : > { %v3135_v17 = vpack.c.bf16 %v3085_v42, %v3084_v21 }
 0x499   : > { %v3134_v38 = vpack.c.bf16 %v3083_v16, %v3082_v63  ;;  %v5929_v61 = vpop.f32.mrb[124].mxu0 }
 0x49a   : > { %v2924_v45 = vadd.f32 %v5929_v61, %v7302_v43  ;;  %v2915_v56 = vpop.f32.mrb[125].mxu0 }
 0x49b   : > { %v2916_v62 = vadd.f32 %v7302_v43, %v2915_v56  ;;  %v5930_v1 = vpop.f32.mrb[126].mxu0  ;;  %6083 = vmatprep.mubr.bf16.mxu1 %v3134_v38 }
 0x49c   : > { %v2927_v4 = vadd.f32 %v5930_v1, %v7302_v43  ;;  %v2918_v5 = vpop.f32.mrb[127].mxu0  ;;  %6084 = vmatmul.mubr.bf16.gmra.mrb[184].mxu1 %v3135_v17  ;;  %v3088_v7 = vmax.f32 %v2924_v45, 0.0 }
 0x49d   : > { %v2919_v6 = vadd.f32 %v7302_v43, %v2918_v5  ;;  %v3086_v15 = vmax.f32 %v2916_v62, 0.0 }
 0x49e   : > { %v3089_v8 = vmax.f32 %v2927_v4, 0.0 }
 0x49f   : > { %v3087_v49 = vmax.f32 %v2919_v6, 0.0 }
 0x4a0   : > { %v3137_v19 = vpack.c.bf16 %v3089_v8, %v3088_v7 }
 0x4a1   : > { %v3136_v23 = vpack.c.bf16 %v3087_v49, %v3086_v15  ;;  %v5933_v24 = vpop.f32.mrb[128].mxu0 }
 0x4a2   : > { %v2940_v27 = vadd.f32 %v5933_v24, %v7302_v43  ;;  %v2931_v14 = vpop.f32.mrb[129].mxu0 }
 0x4a3   : > { %v2932_v13 = vadd.f32 %v7302_v43, %v2931_v14  ;;  %v5934_v33 = vpop.f32.mrb[130].mxu0  ;;  %6087 = vmatprep.mubr.bf16.mxu1 %v3136_v23 }
 0x4a4   : > { %v2943_v30 = vadd.f32 %v5934_v33, %v7302_v43  ;;  %v2934_v31 = vpop.f32.mrb[131].mxu0  ;;  %6088 = vmatmul.mubr.bf16.gmra.mrb[188].mxu1 %v3137_v19  ;;  %v3092_v34 = vmax.f32 %v2940_v27, 0.0 }
 0x4a5   : > { %v2935_v32 = vadd.f32 %v7302_v43, %v2934_v31  ;;  %v3090_v39 = vmax.f32 %v2932_v13, 0.0 }
 0x4a6   : > { %v3093_v36 = vmax.f32 %v2943_v30, 0.0 }
 0x4a7   : > { %v3091_v40 = vmax.f32 %v2935_v32, 0.0 }
 0x4a8   : > { %v3139_v44 = vpack.c.bf16 %v3093_v36, %v3092_v34 }
 0x4a9   : > { %v3138_v9 = vpack.c.bf16 %v3091_v40, %v3090_v39  ;;  %v5937_v47 = vpop.f32.mrb[132].mxu0 }
 0x4aa   : > { %v2956_v48 = vadd.f32 %v5937_v47, %v7302_v43  ;;  %v2947_v52 = vpop.f32.mrb[133].mxu0 }
 0x4ab   : > { %v2948_v53 = vadd.f32 %v7302_v43, %v2947_v52  ;;  %v5938_v55 = vpop.f32.mrb[134].mxu0  ;;  %6091 = vmatprep.mubr.bf16.mxu1 %v3138_v9 }
 0x4ac   : > { %v2959_v54 = vadd.f32 %v5938_v55, %v7302_v43  ;;  %v2950_v59 = vpop.f32.mrb[135].mxu0  ;;  %6092 = vmatmul.mubr.bf16.gmra.mrb[192].mxu1 %v3139_v44  ;;  %v3096_v60 = vmax.f32 %v2956_v48, 0.0 }
 0x4ad   : > { %v2951_v12 = vadd.f32 %v7302_v43, %v2950_v59  ;;  %v3094_v29 = vmax.f32 %v2948_v53, 0.0 }
 0x4ae   : > { %v3097_v22 = vmax.f32 %v2959_v54, 0.0 }
 0x4af   : > { %v3095_v51 = vmax.f32 %v2951_v12, 0.0 }
 0x4b0   : > { %v3141_v58 = vpack.c.bf16 %v3097_v22, %v3096_v60 }
 0x4b1   : > { %v3140_v2 = vpack.c.bf16 %v3095_v51, %v3094_v29  ;;  %v5941_v10 = vpop.f32.mrb[136].mxu0 }
 0x4b2   : > { %v2972_v18 = vadd.f32 %v5941_v10, %v7302_v43  ;;  %v2963_v26 = vpop.f32.mrb[137].mxu0 }
 0x4b3   : > { %v2964_v35 = vadd.f32 %v7302_v43, %v2963_v26  ;;  %v5942_v41 = vpop.f32.mrb[138].mxu0  ;;  %6095 = vmatprep.mubr.bf16.mxu1 %v3140_v2 }
 0x4b4   : > { %v2975_v50 = vadd.f32 %v5942_v41, %v7302_v43  ;;  %v2966_v25 = vpop.f32.mrb[139].mxu0  ;;  %6096 = vmatmul.mubr.bf16.gmra.mrb[196].mxu1 %v3141_v58  ;;  %v3100_v3 = vmax.f32 %v2972_v18, 0.0 }
 0x4b5   : > { %v2967_v57 = vadd.f32 %v7302_v43, %v2966_v25  ;;  %v3098_v11 = vmax.f32 %v2964_v35, 0.0 }
 0x4b6   : > { %v3101_v37 = vmax.f32 %v2975_v50, 0.0 }
 0x4b7   : > { %v3099_v20 = vmax.f32 %v2967_v57, 0.0 }
 0x4b8   : > { %v3143_v28 = vpack.c.bf16 %v3101_v37, %v3100_v3 }
 0x4b9   : > { %v3142_v46 = vpack.c.bf16 %v3099_v20, %v3098_v11  ;;  %v5945_v0 = vpop.f32.mrb[140].mxu0 }
 0x4ba   : > { %v2988_v21 = vadd.f32 %v5945_v0, %v7302_v43  ;;  %v2979_v42 = vpop.f32.mrb[141].mxu0 }
 0x4bb   : > { %v2980_v63 = vadd.f32 %v7302_v43, %v2979_v42  ;;  %v5946_v16 = vpop.f32.mrb[142].mxu0  ;;  %6099 = vmatprep.mubr.bf16.mxu1 %v3142_v46 }
 0x4bc   : > { %v2991_v17 = vadd.f32 %v5946_v16, %v7302_v43  ;;  %v2982_v38 = vpop.f32.mrb[143].mxu0  ;;  %6100 = vmatmul.mubr.bf16.gmra.mrb[200].mxu1 %v3143_v28  ;;  %v3104_v45 = vmax.f32 %v2988_v21, 0.0 }
 0x4bd   : > { %v2983_v61 = vadd.f32 %v7302_v43, %v2982_v38  ;;  %v3102_v62 = vmax.f32 %v2980_v63, 0.0 }
 0x4be   : > { %v3105_v56 = vmax.f32 %v2991_v17, 0.0 }
 0x4bf   : > { %v3103_v1 = vmax.f32 %v2983_v61, 0.0  ;;  %v4451_v61 = vld [vmem:[%s7795_s16] sm:$0xff] }
 0x4c0   : > { %v3145_v4 = vpack.c.bf16 %v3105_v56, %v3104_v45  ;;  %v4452_v45 = vld [vmem:[%s7795_s16 + $0x8] sm:$0xff] }
 0x4c1   : > { %v3144_v5 = vpack.c.bf16 %v3103_v1, %v3102_v62  ;;  %v5949_v6 = vpop.f32.mrb[144].mxu0  ;;  %v6331_v56 = vpack.c.bf16 %v4452_v45, %v4451_v61 }
 0x4c2   : > { %v3004_v7 = vadd.f32 %v5949_v6, %v7302_v43  ;;  %v2995_v8 = vpop.f32.mrb[145].mxu0 }
 0x4c3   : > { %v2996_v15 = vadd.f32 %v7302_v43, %v2995_v8  ;;  %v5950_v49 = vpop.f32.mrb[146].mxu0  ;;  %6103 = vmatprep.mubr.bf16.mxu1 %v3144_v5  ;;  %6332 = vmatprep.subr.bf16.mxu0 %v6331_v56 }
 0x4c4   : > { %v3007_v19 = vadd.f32 %v5950_v49, %v7302_v43  ;;  %v2998_v23 = vpop.f32.mrb[147].mxu0  ;;  %6104 = vmatmul.mubr.bf16.gmra.mrb[204].mxu1 %v3145_v4  ;;  %v3108_v27 = vmax.f32 %v3004_v7, 0.0 }
 0x4c5   : > { %v2999_v24 = vadd.f32 %v7302_v43, %v2998_v23  ;;  %v3106_v13 = vmax.f32 %v2996_v15, 0.0 }
 0x4c6   : > { %v3109_v14 = vmax.f32 %v3007_v19, 0.0 }
 0x4c7   : > { %v3107_v33 = vmax.f32 %v2999_v24, 0.0 }
 0x4c8   : > { %v3147_v30 = vpack.c.bf16 %v3109_v14, %v3108_v27  ;;  %v4453_v27 = vld [vmem:[%s7795_s16 + $0x10] sm:$0xff]  ;;  %v4454_v14 = vld [vmem:[%s7795_s16 + $0x18] sm:$0xff] }
 0x4c9   : > { %v3146_v31 = vpack.c.bf16 %v3107_v33, %v3106_v13  ;;  %v5953_v32 = vpop.f32.mrb[148].mxu0 }
 0x4ca   : > { %v3020_v34 = vadd.f32 %v5953_v32, %v7302_v43  ;;  %v3011_v36 = vpop.f32.mrb[149].mxu0 }
 0x4cb   : > { %v3012_v39 = vadd.f32 %v7302_v43, %v3011_v36  ;;  %v5954_v40 = vpop.f32.mrb[150].mxu0  ;;  %6107 = vmatprep.mubr.bf16.mxu1 %v3146_v31 }
 0x4cc   : > { %v3023_v44 = vadd.f32 %v5954_v40, %v7302_v43  ;;  %v3014_v9 = vpop.f32.mrb[151].mxu0  ;;  %6108 = vmatmul.mubr.bf16.gmra.mrb[208].mxu1 %v3147_v30  ;;  %v3112_v48 = vmax.f32 %v3020_v34, 0.0  ;;  %v6335_v34 = vpack.c.bf16 %v4454_v14, %v4453_v27  ;;  %v4455_v40 = vld [vmem:[%s7795_s16 + $0x20] sm:$0xff] }
 0x4cd   : > { %v3015_v47 = vadd.f32 %v7302_v43, %v3014_v9  ;;  %v3110_v53 = vmax.f32 %v3012_v39, 0.0 }
 0x4ce   : > { %v3113_v52 = vmax.f32 %v3023_v44, 0.0  ;;  %v4456_v44 = vld [vmem:[%s7795_s16 + $0x28] sm:$0xff] }
 0x4cf   : > { %v3111_v55 = vmax.f32 %v3015_v47, 0.0 }
 0x4d0   : > { %v3149_v54 = vpack.c.bf16 %v3113_v52, %v3112_v48 }
 0x4d1   : > { %v3148_v59 = vpack.c.bf16 %v3111_v55, %v3110_v53  ;;  %v5957_v12 = vpop.f32.mrb[152].mxu0  ;;  %v6339_v55 = vpack.c.bf16 %v4456_v44, %v4455_v40 }
 0x4d2   : > { %v3036_v60 = vadd.f32 %v5957_v12, %v7302_v43  ;;  %v3027_v22 = vpop.f32.mrb[153].mxu0  ;;  %v4457_v12 = vld [vmem:[%s7795_s16 + $0x30] sm:$0xff] }
 0x4d3   : > { %v3028_v29 = vadd.f32 %v7302_v43, %v3027_v22  ;;  %v5958_v51 = vpop.f32.mrb[154].mxu0  ;;  %6111 = vmatprep.mubr.bf16.mxu1 %v3148_v59 }
 0x4d4   : > { %v3039_v58 = vadd.f32 %v5958_v51, %v7302_v43  ;;  %v3030_v2 = vpop.f32.mrb[155].mxu0  ;;  %6112 = vmatmul.mubr.bf16.gmra.mrb[212].mxu1 %v3149_v54  ;;  %v3116_v18 = vmax.f32 %v3036_v60, 0.0  ;;  %v4458_v60 = vld [vmem:[%s7795_s16 + $0x38] sm:$0xff] }
 0x4d5   : > { %v3031_v10 = vadd.f32 %v7302_v43, %v3030_v2  ;;  %v3114_v35 = vmax.f32 %v3028_v29, 0.0 }
 0x4d6   : > { %v3117_v26 = vmax.f32 %v3039_v58, 0.0 }
 0x4d7   : > { %v3115_v41 = vmax.f32 %v3031_v10, 0.0  ;;  %v6343_v10 = vpack.c.bf16 %v4458_v60, %v4457_v12 }
 0x4d8   : > { %v3151_v50 = vpack.c.bf16 %v3117_v26, %v3116_v18 }
 0x4d9   : > { %v3150_v25 = vpack.c.bf16 %v3115_v41, %v3114_v35  ;;  %v5961_v57 = vpop.f32.mrb[156].mxu0  ;;  %v4459_v35 = vld [vmem:[%s7795_s16 + $0x40] sm:$0xff]  ;;  %v4460_v41 = vld [vmem:[%s7795_s16 + $0x48] sm:$0xff] }
 0x4da   : > { %v3052_v3 = vadd.f32 %v5961_v57, %v7302_v43  ;;  %v3043_v37 = vpop.f32.mrb[157].mxu0 }
 0x4db   : > { %v3044_v11 = vadd.f32 %v7302_v43, %v3043_v37  ;;  %v5962_v20 = vpop.f32.mrb[158].mxu0  ;;  %6115 = vmatprep.mubr.bf16.mxu1 %v3150_v25 }
 0x4dc   : > { %v3055_v28 = vadd.f32 %v5962_v20, %v7302_v43  ;;  %v3046_v46 = vpop.f32.mrb[159].mxu0  ;;  %6116 = vmatmul.mubr.bf16.gmra.mrb[216].mxu1 %v3151_v50  ;;  %v3120_v21 = vmax.f32 %v3052_v3, 0.0 }
 0x4dd   : > { %v3047_v0 = vadd.f32 %v7302_v43, %v3046_v46  ;;  %v3118_v63 = vmax.f32 %v3044_v11, 0.0  ;;  %v7395_v43 = vld [vmem:[%s7792_s13] ss:$0 sm:$0xff]  ;;  %v6347_v11 = vpack.c.bf16 %v4460_v41, %v4459_v35  ;;  %v4461_v46 = vld [vmem:[%s7795_s16 + $0x50] sm:$0xff] }
 0x4de   : > { %v3121_v42 = vmax.f32 %v3055_v28, 0.0 }
 0x4df   : > { %v3119_v16 = vmax.f32 %v3047_v0, 0.0  ;;  %v4462_v0 = vld [vmem:[%s7795_s16 + $0x58] sm:$0xff] }
 0x4e0   : > { %v3153_v17 = vpack.c.bf16 %v3121_v42, %v3120_v21 }
 0x4e1   : > { %v3152_v38 = vpack.c.bf16 %v3119_v16, %v3118_v63 }
 0x4e3   : > { %6119 = vmatprep.mubr.bf16.mxu1 %v3152_v38  ;;  %v6351_v38 = vpack.c.bf16 %v4462_v0, %v4461_v46 }
 0x4e4   : > { %6120 = vmatmul.mubr.bf16.gmra.mrb[220].mxu1 %v3153_v17 }
 0x53f   : > { %v6061_v62 = vpop.f32.mrb[160].mxu1 }
 0x540   : > { %v3869_v1 = vadd.f32 %v6061_v62, %v7395_v43  ;;  %v3605_v4 = vpop.f32.mrb[161].mxu1  ;;  %v4464_v62 = vld [vmem:[%s7795_s16 + $0x68] sm:$0xff] }
 0x541   : > { %v3867_v5 = vadd.f32 %v7395_v43, %v3605_v4  ;;  %v6062_v6 = vpop.f32.mrb[162].mxu1 }
 0x542   : > { %v3870_v7 = vadd.f32 %v6062_v6, %v7395_v43  ;;  %v3608_v8 = vpop.f32.mrb[163].mxu1  ;;  %v3933_v49 = vmax.f32 %v3869_v1, 0.0 }
 0x543   : > { %v3868_v15 = vadd.f32 %v7395_v43, %v3608_v8  ;;  %v3931_v23 = vmax.f32 %v3867_v5, 0.0 }
 0x544   : > { %v3934_v19 = vmax.f32 %v3870_v7, 0.0 }
 0x545   : > { %v3932_v24 = vmax.f32 %v3868_v15, 0.0 }
 0x546   : > { %v3996_v13 = vpack.c.bf16 %v3934_v19, %v3933_v49  ;;  %v4465_v19 = vld [vmem:[%s7795_s16 + $0x70] sm:$0xff] }
 0x547   : > { %v3995_v33 = vpack.c.bf16 %v3932_v24, %v3931_v23  ;;  %v6065_v30 = vpop.f32.mrb[164].mxu1  ;;  %v4466_v23 = vld [vmem:[%s7795_s16 + $0x78] sm:$0xff] }
 0x548   : > { %v3873_v31 = vadd.f32 %v6065_v30, %v7395_v43  ;;  %v3621_v32 = vpop.f32.mrb[165].mxu1  ;;  %v6359_v30 = vpack.c.bf16 %v4466_v23, %v4465_v19 }
 0x549   : > { %v3871_v36 = vadd.f32 %v7395_v43, %v3621_v32  ;;  %v6066_v39 = vpop.f32.mrb[166].mxu1  ;;  %6139 = vmatprep.mubr.bf16.mxu0 %v3995_v33 }
 0x54a   : > { %v3874_v9 = vadd.f32 %v6066_v39, %v7395_v43  ;;  %v3624_v47 = vpop.f32.mrb[167].mxu1  ;;  %6140 = vmatmul.mubr.bf16.vlgmr.msra.gmra.mrb[160].mxu0 %v3996_v13  ;;  %v3937_v52 = vmax.f32 %v3873_v31, 0.0 }
 0x54b   : > { %v3872_v48 = vadd.f32 %v7395_v43, %v3624_v47  ;;  %6334 = vmatpush3.bf16.msra.mxu0 %v6331_v56  ;;  %v3935_v54 = vmax.f32 %v3871_v36, 0.0  ;;  %v4463_v56 = vld [vmem:[%s7795_s16 + $0x60] sm:$0xff] }
 0x54c   : > { %v3938_v53 = vmax.f32 %v3874_v9, 0.0  ;;  %6336 = vmatprep.subr.bf16.mxu0 %v6335_v34  ;;  %v6355_v8 = vpack.c.bf16 %v4464_v62, %v4463_v56 }
 0x54d   : > { %v3936_v59 = vmax.f32 %v3872_v48, 0.0 }
 0x54e   : > { %v3998_v22 = vpack.c.bf16 %v3938_v53, %v3937_v52 }
 0x54f   : > { %v3997_v29 = vpack.c.bf16 %v3936_v59, %v3935_v54  ;;  %v6069_v51 = vpop.f32.mrb[168].mxu1  ;;  %6338 = vmatpush3.bf16.msra.mxu0 %v6335_v34 }
 0x550   : > { %v3877_v58 = vadd.f32 %v6069_v51, %v7395_v43  ;;  %v3637_v2 = vpop.f32.mrb[169].mxu1  ;;  %6340 = vmatprep.subr.bf16.mxu0 %v6339_v55 }
 0x551   : > { %v3875_v18 = vadd.f32 %v7395_v43, %v3637_v2  ;;  %v6070_v26 = vpop.f32.mrb[170].mxu1  ;;  %6143 = vmatprep.mubr.bf16.mxu0 %v3997_v29 }
 0x552   : > { %v3878_v50 = vadd.f32 %v6070_v26, %v7395_v43  ;;  %v3640_v25 = vpop.f32.mrb[171].mxu1  ;;  %6144 = vmatmul.mubr.bf16.gmra.mrb[164].mxu0 %v3998_v22  ;;  %v3941_v3 = vmax.f32 %v3877_v58, 0.0 }
 0x553   : > { %v3876_v57 = vadd.f32 %v7395_v43, %v3640_v25  ;;  %6342 = vmatpush3.bf16.msra.mxu0 %v6339_v55  ;;  %v3939_v20 = vmax.f32 %v3875_v18, 0.0 }
 0x554   : > { %v3942_v37 = vmax.f32 %v3878_v50, 0.0  ;;  %6344 = vmatprep.subr.bf16.mxu0 %v6343_v10 }
 0x555   : > { %v3940_v28 = vmax.f32 %v3876_v57, 0.0 }
 0x556   : > { %v4000_v21 = vpack.c.bf16 %v3942_v37, %v3941_v3 }
 0x557   : > { %v3999_v42 = vpack.c.bf16 %v3940_v28, %v3939_v20  ;;  %v6073_v63 = vpop.f32.mrb[172].mxu1  ;;  %6346 = vmatpush3.bf16.msra.mxu0 %v6343_v10 }
 0x558   : > { %v3881_v16 = vadd.f32 %v6073_v63, %v7395_v43  ;;  %v3653_v17 = vpop.f32.mrb[173].mxu1  ;;  %6348 = vmatprep.subr.bf16.mxu0 %v6347_v11 }
 0x559   : > { %v3879_v61 = vadd.f32 %v7395_v43, %v3653_v17  ;;  %v6074_v45 = vpop.f32.mrb[174].mxu1  ;;  %6147 = vmatprep.mubr.bf16.mxu0 %v3999_v42 }
 0x55a   : > { %v3882_v1 = vadd.f32 %v6074_v45, %v7395_v43  ;;  %v3656_v4 = vpop.f32.mrb[175].mxu1  ;;  %6148 = vmatmul.mubr.bf16.gmra.mrb[168].mxu0 %v4000_v21  ;;  %v3945_v6 = vmax.f32 %v3881_v16, 0.0 }
 0x55b   : > { %v3880_v5 = vadd.f32 %v7395_v43, %v3656_v4  ;;  %6350 = vmatpush3.bf16.msra.mxu0 %v6347_v11  ;;  %v3943_v15 = vmax.f32 %v3879_v61, 0.0 }
 0x55c   : > { %v3946_v7 = vmax.f32 %v3882_v1, 0.0  ;;  %6352 = vmatprep.subr.bf16.mxu0 %v6351_v38 }
 0x55d   : > { %v3944_v49 = vmax.f32 %v3880_v5, 0.0 }
 0x55e   : > { %v4002_v24 = vpack.c.bf16 %v3946_v7, %v3945_v6 }
 0x55f   : > { %v4001_v27 = vpack.c.bf16 %v3944_v49, %v3943_v15  ;;  %v6077_v14 = vpop.f32.mrb[176].mxu1  ;;  %6354 = vmatpush3.bf16.msra.mxu0 %v6351_v38 }
 0x560   : > { %v3885_v13 = vadd.f32 %v6077_v14, %v7395_v43  ;;  %v3669_v33 = vpop.f32.mrb[177].mxu1  ;;  %6356 = vmatprep.subr.bf16.mxu0 %v6355_v8 }
 0x561   : > { %v3883_v31 = vadd.f32 %v7395_v43, %v3669_v33  ;;  %v6078_v32 = vpop.f32.mrb[178].mxu1  ;;  %6151 = vmatprep.mubr.bf16.mxu0 %v4001_v27 }
 0x562   : > { %v3886_v34 = vadd.f32 %v6078_v32, %v7395_v43  ;;  %v3672_v36 = vpop.f32.mrb[179].mxu1  ;;  %6152 = vmatmul.mubr.bf16.gmra.mrb[172].mxu0 %v4002_v24  ;;  %v3949_v40 = vmax.f32 %v3885_v13, 0.0 }
 0x563   : > { %v3884_v39 = vadd.f32 %v7395_v43, %v3672_v36  ;;  %6358 = vmatpush3.bf16.msra.mxu0 %v6355_v8  ;;  %v3947_v9 = vmax.f32 %v3883_v31, 0.0 }
 0x564   : > { %v3950_v44 = vmax.f32 %v3886_v34, 0.0  ;;  %6360 = vmatprep.subr.bf16.mxu0 %v6359_v30 }
 0x565   : > { %v3948_v47 = vmax.f32 %v3884_v39, 0.0 }
 0x566   : > { %v4004_v48 = vpack.c.bf16 %v3950_v44, %v3949_v40 }
 0x567   : > { %v4003_v52 = vpack.c.bf16 %v3948_v47, %v3947_v9  ;;  %v6081_v53 = vpop.f32.mrb[180].mxu1  ;;  %6362 = vmatpush3.bf16.msra.mxu0 %v6359_v30 }
 0x568   : > { %v3889_v55 = vadd.f32 %v6081_v53, %v7395_v43  ;;  %v3685_v54 = vpop.f32.mrb[181].mxu1 }
 0x569   : > { %v3887_v59 = vadd.f32 %v7395_v43, %v3685_v54  ;;  %v6082_v12 = vpop.f32.mrb[182].mxu1  ;;  %6155 = vmatprep.mubr.bf16.mxu0 %v4003_v52 }
 0x56a   : > { %v3890_v60 = vadd.f32 %v6082_v12, %v7395_v43  ;;  %v3688_v22 = vpop.f32.mrb[183].mxu1  ;;  %6156 = vmatmul.mubr.bf16.gmra.mrb[176].mxu0 %v4004_v48  ;;  %v3953_v51 = vmax.f32 %v3889_v55, 0.0 }
 0x56b   : > { %v3888_v29 = vadd.f32 %v7395_v43, %v3688_v22  ;;  %v3951_v2 = vmax.f32 %v3887_v59, 0.0 }
 0x56c   : > { %v3954_v58 = vmax.f32 %v3890_v60, 0.0 }
 0x56d   : > { %v3952_v10 = vmax.f32 %v3888_v29, 0.0 }
 0x56e   : > { %v4006_v18 = vpack.c.bf16 %v3954_v58, %v3953_v51 }
 0x56f   : > { %v4005_v26 = vpack.c.bf16 %v3952_v10, %v3951_v2  ;;  %v6085_v35 = vpop.f32.mrb[184].mxu1 }
 0x570   : > { %v3893_v41 = vadd.f32 %v6085_v35, %v7395_v43  ;;  %v3701_v50 = vpop.f32.mrb[185].mxu1 }
 0x571   : > { %v3891_v25 = vadd.f32 %v7395_v43, %v3701_v50  ;;  %v6086_v57 = vpop.f32.mrb[186].mxu1  ;;  %6159 = vmatprep.mubr.bf16.mxu0 %v4005_v26 }
 0x572   : > { %v3894_v3 = vadd.f32 %v6086_v57, %v7395_v43  ;;  %v3704_v37 = vpop.f32.mrb[187].mxu1  ;;  %6160 = vmatmul.mubr.bf16.gmra.mrb[180].mxu0 %v4006_v18  ;;  %v3957_v20 = vmax.f32 %v3893_v41, 0.0 }
 0x573   : > { %v3892_v11 = vadd.f32 %v7395_v43, %v3704_v37  ;;  %v3955_v46 = vmax.f32 %v3891_v25, 0.0 }
 0x574   : > { %v3958_v28 = vmax.f32 %v3894_v3, 0.0 }
 0x575   : > { %v3956_v0 = vmax.f32 %v3892_v11, 0.0 }
 0x576   : > { %v4008_v21 = vpack.c.bf16 %v3958_v28, %v3957_v20 }
 0x577   : > { %v4007_v42 = vpack.c.bf16 %v3956_v0, %v3955_v46  ;;  %v6089_v63 = vpop.f32.mrb[188].mxu1 }
 0x578   : > { %v3897_v16 = vadd.f32 %v6089_v63, %v7395_v43  ;;  %v3717_v17 = vpop.f32.mrb[189].mxu1 }
 0x579   : > { %v3895_v38 = vadd.f32 %v7395_v43, %v3717_v17  ;;  %v6090_v61 = vpop.f32.mrb[190].mxu1  ;;  %6163 = vmatprep.mubr.bf16.mxu0 %v4007_v42 }
 0x57a   : > { %v3898_v45 = vadd.f32 %v6090_v61, %v7395_v43  ;;  %v3720_v56 = vpop.f32.mrb[191].mxu1  ;;  %6164 = vmatmul.mubr.bf16.gmra.mrb[184].mxu0 %v4008_v21  ;;  %v3961_v1 = vmax.f32 %v3897_v16, 0.0 }
 0x57b   : > { %v3896_v62 = vadd.f32 %v7395_v43, %v3720_v56  ;;  %v3959_v5 = vmax.f32 %v3895_v38, 0.0 }
 0x57c   : > { %v3962_v4 = vmax.f32 %v3898_v45, 0.0 }
 0x57d   : > { %v3960_v6 = vmax.f32 %v3896_v62, 0.0 }
 0x57e   : > { %v4010_v7 = vpack.c.bf16 %v3962_v4, %v3961_v1 }
 0x57f   : > { %v4009_v8 = vpack.c.bf16 %v3960_v6, %v3959_v5  ;;  %v6093_v15 = vpop.f32.mrb[192].mxu1 }
 0x580   : > { %v3901_v49 = vadd.f32 %v6093_v15, %v7395_v43  ;;  %v3733_v19 = vpop.f32.mrb[193].mxu1 }
 0x581   : > { %v3899_v23 = vadd.f32 %v7395_v43, %v3733_v19  ;;  %v6094_v24 = vpop.f32.mrb[194].mxu1  ;;  %6167 = vmatprep.mubr.bf16.mxu0 %v4009_v8 }
 0x582   : > { %v3902_v27 = vadd.f32 %v6094_v24, %v7395_v43  ;;  %v3736_v14 = vpop.f32.mrb[195].mxu1  ;;  %6168 = vmatmul.mubr.bf16.gmra.mrb[188].mxu0 %v4010_v7  ;;  %v3965_v33 = vmax.f32 %v3901_v49, 0.0 }
 0x583   : > { %v3900_v13 = vadd.f32 %v7395_v43, %v3736_v14  ;;  %v3963_v31 = vmax.f32 %v3899_v23, 0.0 }
 0x584   : > { %v3966_v30 = vmax.f32 %v3902_v27, 0.0 }
 0x585   : > { %v3964_v32 = vmax.f32 %v3900_v13, 0.0 }
 0x586   : > { %v4012_v34 = vpack.c.bf16 %v3966_v30, %v3965_v33 }
 0x587   : > { %v4011_v36 = vpack.c.bf16 %v3964_v32, %v3963_v31  ;;  %v6097_v39 = vpop.f32.mrb[196].mxu1 }
 0x588   : > { %v3905_v40 = vadd.f32 %v6097_v39, %v7395_v43  ;;  %v3749_v44 = vpop.f32.mrb[197].mxu1 }
 0x589   : > { %v3903_v9 = vadd.f32 %v7395_v43, %v3749_v44  ;;  %v6098_v47 = vpop.f32.mrb[198].mxu1  ;;  %6171 = vmatprep.mubr.bf16.mxu0 %v4011_v36 }
 0x58a   : > { %v3906_v48 = vadd.f32 %v6098_v47, %v7395_v43  ;;  %v3752_v52 = vpop.f32.mrb[199].mxu1  ;;  %6172 = vmatmul.mubr.bf16.gmra.mrb[192].mxu0 %v4012_v34  ;;  %v3969_v55 = vmax.f32 %v3905_v40, 0.0 }
 0x58b   : > { %v3904_v53 = vadd.f32 %v7395_v43, %v3752_v52  ;;  %v3967_v59 = vmax.f32 %v3903_v9, 0.0 }
 0x58c   : > { %v3970_v54 = vmax.f32 %v3906_v48, 0.0 }
 0x58d   : > { %v3968_v12 = vmax.f32 %v3904_v53, 0.0 }
 0x58e   : > { %v4014_v60 = vpack.c.bf16 %v3970_v54, %v3969_v55 }
 0x58f   : > { %v4013_v22 = vpack.c.bf16 %v3968_v12, %v3967_v59  ;;  %v6101_v29 = vpop.f32.mrb[200].mxu1 }
 0x590   : > { %v3909_v51 = vadd.f32 %v6101_v29, %v7395_v43  ;;  %v3765_v58 = vpop.f32.mrb[201].mxu1 }
 0x591   : > { %v3907_v2 = vadd.f32 %v7395_v43, %v3765_v58  ;;  %v6102_v10 = vpop.f32.mrb[202].mxu1  ;;  %6175 = vmatprep.mubr.bf16.mxu0 %v4013_v22 }
 0x592   : > { %v3910_v18 = vadd.f32 %v6102_v10, %v7395_v43  ;;  %v3768_v26 = vpop.f32.mrb[203].mxu1  ;;  %6176 = vmatmul.mubr.bf16.gmra.mrb[196].mxu0 %v4014_v60  ;;  %v3973_v41 = vmax.f32 %v3909_v51, 0.0 }
 0x593   : > { %v3908_v35 = vadd.f32 %v7395_v43, %v3768_v26  ;;  %v3971_v25 = vmax.f32 %v3907_v2, 0.0 }
 0x594   : > { %v3974_v50 = vmax.f32 %v3910_v18, 0.0 }
 0x595   : > { %v3972_v57 = vmax.f32 %v3908_v35, 0.0 }
 0x596   : > { %v4016_v3 = vpack.c.bf16 %v3974_v50, %v3973_v41 }
 0x597   : > { %v4015_v37 = vpack.c.bf16 %v3972_v57, %v3971_v25  ;;  %v6105_v11 = vpop.f32.mrb[204].mxu1 }
 0x598   : > { %v3913_v20 = vadd.f32 %v6105_v11, %v7395_v43  ;;  %v3781_v28 = vpop.f32.mrb[205].mxu1 }
 0x599   : > { %v3911_v46 = vadd.f32 %v7395_v43, %v3781_v28  ;;  %v6106_v0 = vpop.f32.mrb[206].mxu1  ;;  %6179 = vmatprep.mubr.bf16.mxu0 %v4015_v37 }
 0x59a   : > { %v3914_v21 = vadd.f32 %v6106_v0, %v7395_v43  ;;  %v3784_v42 = vpop.f32.mrb[207].mxu1  ;;  %6180 = vmatmul.mubr.bf16.gmra.mrb[200].mxu0 %v4016_v3  ;;  %v3977_v16 = vmax.f32 %v3913_v20, 0.0 }
 0x59b   : > { %v3912_v63 = vadd.f32 %v7395_v43, %v3784_v42  ;;  %v3975_v38 = vmax.f32 %v3911_v46, 0.0 }
 0x59c   : > { %v3978_v17 = vmax.f32 %v3914_v21, 0.0 }
 0x59d   : > { %v3976_v61 = vmax.f32 %v3912_v63, 0.0  ;;  %v7506_v63 = vld [vmem:[%s7794_s15] ss:$0 sm:$0xff] }
 0x59e   : > { %v4018_v45 = vpack.c.bf16 %v3978_v17, %v3977_v16 }
 0x59f   : > { %v4017_v56 = vpack.c.bf16 %v3976_v61, %v3975_v38  ;;  %v6109_v62 = vpop.f32.mrb[208].mxu1 }
 0x5a0   : > { %v3917_v1 = vadd.f32 %v6109_v62, %v7395_v43  ;;  %v3797_v4 = vpop.f32.mrb[209].mxu1 }
 0x5a1   : > { %v3915_v5 = vadd.f32 %v7395_v43, %v3797_v4  ;;  %v6110_v6 = vpop.f32.mrb[210].mxu1  ;;  %6183 = vmatprep.mubr.bf16.mxu0 %v4017_v56 }
 0x5a2   : > { %v3918_v7 = vadd.f32 %v6110_v6, %v7395_v43  ;;  %v3800_v8 = vpop.f32.mrb[211].mxu1  ;;  %6184 = vmatmul.mubr.bf16.gmra.mrb[204].mxu0 %v4018_v45  ;;  %v3981_v49 = vmax.f32 %v3917_v1, 0.0 }
 0x5a3   : > { %v3916_v15 = vadd.f32 %v7395_v43, %v3800_v8  ;;  %v3979_v23 = vmax.f32 %v3915_v5, 0.0 }
 0x5a4   : > { %v3982_v19 = vmax.f32 %v3918_v7, 0.0 }
 0x5a5   : > { %v3980_v24 = vmax.f32 %v3916_v15, 0.0 }
 0x5a6   : > { %v4020_v27 = vpack.c.bf16 %v3982_v19, %v3981_v49 }
 0x5a7   : > { %v4019_v14 = vpack.c.bf16 %v3980_v24, %v3979_v23  ;;  %v6113_v13 = vpop.f32.mrb[212].mxu1 }
 0x5a8   : > { %v3921_v33 = vadd.f32 %v6113_v13, %v7395_v43  ;;  %v3813_v30 = vpop.f32.mrb[213].mxu1 }
 0x5a9   : > { %v3919_v31 = vadd.f32 %v7395_v43, %v3813_v30  ;;  %v6114_v32 = vpop.f32.mrb[214].mxu1  ;;  %6187 = vmatprep.mubr.bf16.mxu0 %v4019_v14 }
 0x5aa   : > { %v3922_v34 = vadd.f32 %v6114_v32, %v7395_v43  ;;  %v3816_v36 = vpop.f32.mrb[215].mxu1  ;;  %6188 = vmatmul.mubr.bf16.gmra.mrb[208].mxu0 %v4020_v27  ;;  %v3985_v40 = vmax.f32 %v3921_v33, 0.0 }
 0x5ab   : > { %v3920_v39 = vadd.f32 %v7395_v43, %v3816_v36  ;;  %v3983_v9 = vmax.f32 %v3919_v31, 0.0 }
 0x5ac   : > { %v3986_v44 = vmax.f32 %v3922_v34, 0.0 }
 0x5ad   : > { %v3984_v47 = vmax.f32 %v3920_v39, 0.0 }
 0x5ae   : > { %v4022_v48 = vpack.c.bf16 %v3986_v44, %v3985_v40 }
 0x5af   : > { %v4021_v52 = vpack.c.bf16 %v3984_v47, %v3983_v9  ;;  %v6117_v53 = vpop.f32.mrb[216].mxu1 }
 0x5b0   : > { %v3925_v55 = vadd.f32 %v6117_v53, %v7395_v43  ;;  %v3829_v54 = vpop.f32.mrb[217].mxu1 }
 0x5b1   : > { %v3923_v59 = vadd.f32 %v7395_v43, %v3829_v54  ;;  %v6118_v12 = vpop.f32.mrb[218].mxu1  ;;  %6191 = vmatprep.mubr.bf16.mxu0 %v4021_v52 }
 0x5b2   : > { %v3926_v60 = vadd.f32 %v6118_v12, %v7395_v43  ;;  %v3832_v22 = vpop.f32.mrb[219].mxu1  ;;  %6192 = vmatmul.mubr.bf16.gmra.mrb[212].mxu0 %v4022_v48  ;;  %v3989_v51 = vmax.f32 %v3925_v55, 0.0 }
 0x5b3   : > { %v3924_v29 = vadd.f32 %v7395_v43, %v3832_v22  ;;  %v3987_v2 = vmax.f32 %v3923_v59, 0.0 }
 0x5b4   : > { %v3990_v58 = vmax.f32 %v3926_v60, 0.0 }
 0x5b5   : > { %v3988_v10 = vmax.f32 %v3924_v29, 0.0 }
 0x5b6   : > { %v4024_v18 = vpack.c.bf16 %v3990_v58, %v3989_v51 }
 0x5b7   : > { %v4023_v26 = vpack.c.bf16 %v3988_v10, %v3987_v2  ;;  %v6121_v35 = vpop.f32.mrb[220].mxu1 }
 0x5b8   : > { %v3929_v41 = vadd.f32 %v6121_v35, %v7395_v43  ;;  %v3845_v50 = vpop.f32.mrb[221].mxu1 }
 0x5b9   : > { %v3927_v25 = vadd.f32 %v7395_v43, %v3845_v50  ;;  %v6122_v57 = vpop.f32.mrb[222].mxu1  ;;  %6195 = vmatprep.mubr.bf16.mxu0 %v4023_v26 }
 0x5ba   : > { %v3930_v3 = vadd.f32 %v6122_v57, %v7395_v43  ;;  %v3848_v37 = vpop.f32.mrb[223].mxu1  ;;  %6196 = vmatmul.mubr.bf16.gmra.mrb[216].mxu0 %v4024_v18  ;;  %v3993_v20 = vmax.f32 %v3929_v41, 0.0 }
 0x5bb   : > { %v3928_v11 = vadd.f32 %v7395_v43, %v3848_v37  ;;  %v3991_v46 = vmax.f32 %v3927_v25, 0.0 }
 0x5bc   : > { %v3994_v28 = vmax.f32 %v3930_v3, 0.0 }
 0x5bd   : > { %v3992_v0 = vmax.f32 %v3928_v11, 0.0 }
 0x5be   : > { %v4026_v21 = vpack.c.bf16 %v3994_v28, %v3993_v20 }
 0x5bf   : > { %v4025_v42 = vpack.c.bf16 %v3992_v0, %v3991_v46 }
 0x5c1   : > { %6199 = vmatprep.mubr.bf16.mxu0 %v4025_v42 }
 0x5c2   : > { %6200 = vmatmul.mubr.bf16.gmra.mrb[220].mxu0 %v4026_v21 }
 0x61d   : > { %v6141_v16 = vpop.f32.mrb[160].mxu0 }
 0x61e   : > { %v4132_v17 = vpop.f32.mrb[161].mxu0  ;;  %v4141_v43 = vadd.f32 %v6141_v16, %v7506_v63 }
 0x61f   : > { %v4133_v38 = vadd.f32 %v7506_v63, %v4132_v17  ;;  %v6142_v61 = vpop.f32.mrb[162].mxu0 }
 0x620   : > { %v4135_v45 = vpop.f32.mrb[163].mxu0  ;;  %v4144_v1 = vadd.f32 %v6142_v61, %v7506_v63  ;;  %v4389_v5 = vmax.f32 %v4141_v43, 0.0 }
 0x621   : > { %v4387_v56 = vmax.f32 %v4133_v38, 0.0  ;;  %v4136_v62 = vadd.f32 %v7506_v63, %v4135_v45 }
 0x622   : > { %v4390_v8 = vmax.f32 %v4144_v1, 0.0 }
 0x623   : > { %v4388_v4 = vmax.f32 %v4136_v62, 0.0  ;;  %6235 = vmatprep.mubr.f32.mxu0 %v4387_v56 }
 0x625   : > { %v6145_v6 = vpop.f32.mrb[164].mxu0  ;;  %6236 = vmatmul.mubr.f32.vlgmr.msra.gmra.mrb[224].mxu0 %v4388_v4 }
 0x626   : > { %v4148_v7 = vpop.f32.mrb[165].mxu0  ;;  %6238 = vmatprep.mubr.f32.mxu0 %v4389_v5  ;;  %v4157_v19 = vadd.f32 %v6145_v6, %v7506_v63 }
 0x627   : > { %v4149_v15 = vadd.f32 %v7506_v63, %v4148_v7  ;;  %v6146_v49 = vpop.f32.mrb[166].mxu0 }
 0x628   : > { %v4151_v23 = vpop.f32.mrb[167].mxu0  ;;  %v4160_v14 = vadd.f32 %v6146_v49, %v7506_v63  ;;  %v4393_v33 = vmax.f32 %v4157_v19, 0.0 }
 0x629   : > { %v4391_v24 = vmax.f32 %v4149_v15, 0.0  ;;  %v4152_v27 = vadd.f32 %v7506_v63, %v4151_v23  ;;  %6239 = vmatmul.mubr.f32.gmra.mrb[226].mxu0 %v4390_v8 }
 0x62a   : > { %v4394_v32 = vmax.f32 %v4160_v14, 0.0 }
 0x62b   : > { %v4392_v13 = vmax.f32 %v4152_v27, 0.0  ;;  %6241 = vmatprep.mubr.f32.mxu0 %v4391_v24 }
 0x62d   : > { %v6149_v30 = vpop.f32.mrb[168].mxu0  ;;  %6242 = vmatmul.mubr.f32.gmra.mrb[228].mxu0 %v4392_v13 }
 0x62e   : > { %v4164_v31 = vpop.f32.mrb[169].mxu0  ;;  %6244 = vmatprep.mubr.f32.mxu0 %v4393_v33  ;;  %v4173_v39 = vadd.f32 %v6149_v30, %v7506_v63 }
 0x62f   : > { %v4165_v34 = vadd.f32 %v7506_v63, %v4164_v31  ;;  %v6150_v36 = vpop.f32.mrb[170].mxu0 }
 0x630   : > { %v4167_v40 = vpop.f32.mrb[171].mxu0  ;;  %v4176_v47 = vadd.f32 %v6150_v36, %v7506_v63  ;;  %v4397_v52 = vmax.f32 %v4173_v39, 0.0 }
 0x631   : > { %v4395_v44 = vmax.f32 %v4165_v34, 0.0  ;;  %v4168_v9 = vadd.f32 %v7506_v63, %v4167_v40  ;;  %6245 = vmatmul.mubr.f32.gmra.mrb[230].mxu0 %v4394_v32 }
 0x632   : > { %v4398_v54 = vmax.f32 %v4176_v47, 0.0 }
 0x633   : > { %v4396_v48 = vmax.f32 %v4168_v9, 0.0  ;;  %6247 = vmatprep.mubr.f32.mxu0 %v4395_v44 }
 0x635   : > { %v6153_v53 = vpop.f32.mrb[172].mxu0  ;;  %6248 = vmatmul.mubr.f32.gmra.mrb[232].mxu0 %v4396_v48 }
 0x636   : > { %v4180_v55 = vpop.f32.mrb[173].mxu0  ;;  %6250 = vmatprep.mubr.f32.mxu0 %v4397_v52  ;;  %v4189_v60 = vadd.f32 %v6153_v53, %v7506_v63 }
 0x637   : > { %v4181_v59 = vadd.f32 %v7506_v63, %v4180_v55  ;;  %v6154_v12 = vpop.f32.mrb[174].mxu0 }
 0x638   : > { %v4183_v22 = vpop.f32.mrb[175].mxu0  ;;  %v4192_v58 = vadd.f32 %v6154_v12, %v7506_v63  ;;  %v4401_v10 = vmax.f32 %v4189_v60, 0.0 }
 0x639   : > { %v4399_v29 = vmax.f32 %v4181_v59, 0.0  ;;  %v4184_v51 = vadd.f32 %v7506_v63, %v4183_v22  ;;  %6251 = vmatmul.mubr.f32.gmra.mrb[234].mxu0 %v4398_v54 }
 0x63a   : > { %v4402_v35 = vmax.f32 %v4192_v58, 0.0 }
 0x63b   : > { %v4400_v2 = vmax.f32 %v4184_v51, 0.0  ;;  %6253 = vmatprep.mubr.f32.mxu0 %v4399_v29 }
 0x63d   : > { %v6157_v18 = vpop.f32.mrb[176].mxu0  ;;  %6254 = vmatmul.mubr.f32.gmra.mrb[236].mxu0 %v4400_v2 }
 0x63e   : > { %v4196_v26 = vpop.f32.mrb[177].mxu0  ;;  %6256 = vmatprep.mubr.f32.mxu0 %v4401_v10  ;;  %v4205_v25 = vadd.f32 %v6157_v18, %v7506_v63 }
 0x63f   : > { %v4197_v41 = vadd.f32 %v7506_v63, %v4196_v26  ;;  %v6158_v50 = vpop.f32.mrb[178].mxu0 }
 0x640   : > { %v4199_v57 = vpop.f32.mrb[179].mxu0  ;;  %v4208_v11 = vadd.f32 %v6158_v50, %v7506_v63  ;;  %v4405_v28 = vmax.f32 %v4205_v25, 0.0 }
 0x641   : > { %v4403_v3 = vmax.f32 %v4197_v41, 0.0  ;;  %v4200_v37 = vadd.f32 %v7506_v63, %v4199_v57  ;;  %6257 = vmatmul.mubr.f32.gmra.mrb[238].mxu0 %v4402_v35 }
 0x642   : > { %v4406_v21 = vmax.f32 %v4208_v11, 0.0 }
 0x643   : > { %v4404_v20 = vmax.f32 %v4200_v37, 0.0  ;;  %6259 = vmatprep.mubr.f32.mxu0 %v4403_v3 }
 0x645   : > { %v6161_v46 = vpop.f32.mrb[180].mxu0  ;;  %6260 = vmatmul.mubr.f32.gmra.mrb[240].mxu0 %v4404_v20 }
 0x646   : > { %v4212_v0 = vpop.f32.mrb[181].mxu0  ;;  %6262 = vmatprep.mubr.f32.mxu0 %v4405_v28  ;;  %v4221_v17 = vadd.f32 %v6161_v46, %v7506_v63 }
 0x647   : > { %v4213_v42 = vadd.f32 %v7506_v63, %v4212_v0  ;;  %v6162_v16 = vpop.f32.mrb[182].mxu0 }
 0x648   : > { %v4215_v38 = vpop.f32.mrb[183].mxu0  ;;  %v4224_v45 = vadd.f32 %v6162_v16, %v7506_v63  ;;  %v4409_v62 = vmax.f32 %v4221_v17, 0.0 }
 0x649   : > { %v4407_v61 = vmax.f32 %v4213_v42, 0.0  ;;  %v4216_v43 = vadd.f32 %v7506_v63, %v4215_v38  ;;  %6263 = vmatmul.mubr.f32.gmra.mrb[242].mxu0 %v4406_v21 }
 0x64a   : > { %v4410_v5 = vmax.f32 %v4224_v45, 0.0 }
 0x64b   : > { %v4408_v56 = vmax.f32 %v4216_v43, 0.0  ;;  %6265 = vmatprep.mubr.f32.mxu0 %v4407_v61 }
 0x64d   : > { %v6165_v1 = vpop.f32.mrb[184].mxu0  ;;  %6266 = vmatmul.mubr.f32.gmra.mrb[244].mxu0 %v4408_v56 }
 0x64e   : > { %v4228_v4 = vpop.f32.mrb[185].mxu0  ;;  %6268 = vmatprep.mubr.f32.mxu0 %v4409_v62  ;;  %v4237_v8 = vadd.f32 %v6165_v1, %v7506_v63 }
 0x64f   : > { %v4229_v6 = vadd.f32 %v7506_v63, %v4228_v4  ;;  %v6166_v7 = vpop.f32.mrb[186].mxu0 }
 0x650   : > { %v4231_v15 = vpop.f32.mrb[187].mxu0  ;;  %v4240_v23 = vadd.f32 %v6166_v7, %v7506_v63  ;;  %v4413_v27 = vmax.f32 %v4237_v8, 0.0 }
 0x651   : > { %v4411_v49 = vmax.f32 %v4229_v6, 0.0  ;;  %v4232_v19 = vadd.f32 %v7506_v63, %v4231_v15  ;;  %6269 = vmatmul.mubr.f32.gmra.mrb[246].mxu0 %v4410_v5 }
 0x652   : > { %v4414_v33 = vmax.f32 %v4240_v23, 0.0 }
 0x653   : > { %v4412_v24 = vmax.f32 %v4232_v19, 0.0  ;;  %6271 = vmatprep.mubr.f32.mxu0 %v4411_v49 }
 0x655   : > { %v6169_v14 = vpop.f32.mrb[188].mxu0  ;;  %6272 = vmatmul.mubr.f32.gmra.mrb[248].mxu0 %v4412_v24 }
 0x656   : > { %v4244_v13 = vpop.f32.mrb[189].mxu0  ;;  %6274 = vmatprep.mubr.f32.mxu0 %v4413_v27  ;;  %v4253_v32 = vadd.f32 %v6169_v14, %v7506_v63 }
 0x657   : > { %v4245_v30 = vadd.f32 %v7506_v63, %v4244_v13  ;;  %v6170_v31 = vpop.f32.mrb[190].mxu0 }
 0x658   : > { %v4247_v34 = vpop.f32.mrb[191].mxu0  ;;  %v4256_v40 = vadd.f32 %v6170_v31, %v7506_v63  ;;  %v4417_v9 = vmax.f32 %v4253_v32, 0.0 }
 0x659   : > { %v4415_v36 = vmax.f32 %v4245_v30, 0.0  ;;  %v4248_v39 = vadd.f32 %v7506_v63, %v4247_v34  ;;  %6275 = vmatmul.mubr.f32.gmra.mrb[250].mxu0 %v4414_v33 }
 0x65a   : > { %v4418_v52 = vmax.f32 %v4256_v40, 0.0 }
 0x65b   : > { %v4416_v44 = vmax.f32 %v4248_v39, 0.0  ;;  %6277 = vmatprep.mubr.f32.mxu0 %v4415_v36 }
 0x65d   : > { %v6173_v47 = vpop.f32.mrb[192].mxu0  ;;  %6278 = vmatmul.mubr.f32.gmra.mrb[252].mxu0 %v4416_v44 }
 0x65e   : > { %v4260_v48 = vpop.f32.mrb[193].mxu0  ;;  %6280 = vmatprep.mubr.f32.mxu0 %v4417_v9  ;;  %v4269_v54 = vadd.f32 %v6173_v47, %v7506_v63 }
 0x65f   : > { %v4261_v53 = vadd.f32 %v7506_v63, %v4260_v48  ;;  %v6174_v55 = vpop.f32.mrb[194].mxu0 }
 0x660   : > { %v4263_v59 = vpop.f32.mrb[195].mxu0  ;;  %v4272_v22 = vadd.f32 %v6174_v55, %v7506_v63  ;;  %v4421_v51 = vmax.f32 %v4269_v54, 0.0 }
 0x661   : > { %v4419_v12 = vmax.f32 %v4261_v53, 0.0  ;;  %v4264_v60 = vadd.f32 %v7506_v63, %v4263_v59  ;;  %6281 = vmatmul.mubr.f32.gmra.mrb[254].mxu0 %v4418_v52 }
 0x662   : > { %v4422_v10 = vmax.f32 %v4272_v22, 0.0 }
 0x663   : > { %v4420_v29 = vmax.f32 %v4264_v60, 0.0  ;;  %6283 = vmatprep.mubr.f32.mxu0 %v4419_v12 }
 0x665   : > { %v6177_v58 = vpop.f32.mrb[196].mxu0  ;;  %6284 = vmatmul.mubr.f32.gmra.mrb[0].mxu0 %v4420_v29 }
 0x666   : > { %v4276_v2 = vpop.f32.mrb[197].mxu0  ;;  %6286 = vmatprep.mubr.f32.mxu0 %v4421_v51  ;;  %v4285_v35 = vadd.f32 %v6177_v58, %v7506_v63 }
 0x667   : > { %v4277_v18 = vadd.f32 %v7506_v63, %v4276_v2  ;;  %v6178_v26 = vpop.f32.mrb[198].mxu0 }
 0x668   : > { %v4279_v41 = vpop.f32.mrb[199].mxu0  ;;  %v4288_v57 = vadd.f32 %v6178_v26, %v7506_v63  ;;  %v4425_v37 = vmax.f32 %v4285_v35, 0.0 }
 0x669   : > { %v4423_v50 = vmax.f32 %v4277_v18, 0.0  ;;  %v4280_v25 = vadd.f32 %v7506_v63, %v4279_v41  ;;  %6287 = vmatmul.mubr.f32.gmra.mrb[2].mxu0 %v4422_v10 }
 0x66a   : > { %v4426_v28 = vmax.f32 %v4288_v57, 0.0 }
 0x66b   : > { %v4424_v3 = vmax.f32 %v4280_v25, 0.0  ;;  %6289 = vmatprep.mubr.f32.mxu0 %v4423_v50 }
 0x66d   : > { %v6181_v11 = vpop.f32.mrb[200].mxu0  ;;  %6290 = vmatmul.mubr.f32.gmra.mrb[4].mxu0 %v4424_v3 }
 0x66e   : > { %v4292_v20 = vpop.f32.mrb[201].mxu0  ;;  %6292 = vmatprep.mubr.f32.mxu0 %v4425_v37  ;;  %v4301_v21 = vadd.f32 %v6181_v11, %v7506_v63 }
 0x66f   : > { %v4293_v46 = vadd.f32 %v7506_v63, %v4292_v20  ;;  %v6182_v0 = vpop.f32.mrb[202].mxu0 }
 0x670   : > { %v4295_v42 = vpop.f32.mrb[203].mxu0  ;;  %v4304_v38 = vadd.f32 %v6182_v0, %v7506_v63  ;;  %v4429_v43 = vmax.f32 %v4301_v21, 0.0 }
 0x671   : > { %v4427_v16 = vmax.f32 %v4293_v46, 0.0  ;;  %v4296_v17 = vadd.f32 %v7506_v63, %v4295_v42  ;;  %6293 = vmatmul.mubr.f32.gmra.mrb[6].mxu0 %v4426_v28 }
 0x672   : > { %v4430_v62 = vmax.f32 %v4304_v38, 0.0 }
 0x673   : > { %v4428_v61 = vmax.f32 %v4296_v17, 0.0  ;;  %6295 = vmatprep.mubr.f32.mxu0 %v4427_v16 }
 0x675   : > { %v6185_v45 = vpop.f32.mrb[204].mxu0  ;;  %6296 = vmatmul.mubr.f32.gmra.mrb[8].mxu0 %v4428_v61  ;;  %v7575_v61 = vld [vmem:[%s7796_s17] ss:$0 sm:$0xff] }
 0x676   : > { %v4308_v56 = vpop.f32.mrb[205].mxu0  ;;  %6298 = vmatprep.mubr.f32.mxu0 %v4429_v43  ;;  %v4317_v5 = vadd.f32 %v6185_v45, %v7506_v63 }
 0x677   : > { %v4309_v1 = vadd.f32 %v7506_v63, %v4308_v56  ;;  %v6186_v4 = vpop.f32.mrb[206].mxu0 }
 0x678   : > { %v4311_v6 = vpop.f32.mrb[207].mxu0  ;;  %v4320_v15 = vadd.f32 %v6186_v4, %v7506_v63  ;;  %v4433_v19 = vmax.f32 %v4317_v5, 0.0 }
 0x679   : > { %v4431_v7 = vmax.f32 %v4309_v1, 0.0  ;;  %v4312_v8 = vadd.f32 %v7506_v63, %v4311_v6  ;;  %6299 = vmatmul.mubr.f32.gmra.mrb[10].mxu0 %v4430_v62 }
 0x67a   : > { %v4434_v27 = vmax.f32 %v4320_v15, 0.0 }
 0x67b   : > { %v4432_v49 = vmax.f32 %v4312_v8, 0.0  ;;  %6301 = vmatprep.mubr.f32.mxu0 %v4431_v7 }
 0x67d   : > { %v6189_v23 = vpop.f32.mrb[208].mxu0  ;;  %6302 = vmatmul.mubr.f32.gmra.mrb[12].mxu0 %v4432_v49 }
 0x67e   : > { %v4324_v24 = vpop.f32.mrb[209].mxu0  ;;  %6304 = vmatprep.mubr.f32.mxu0 %v4433_v19  ;;  %v4333_v33 = vadd.f32 %v6189_v23, %v7506_v63 }
 0x67f   : > { %v4325_v14 = vadd.f32 %v7506_v63, %v4324_v24  ;;  %v6190_v13 = vpop.f32.mrb[210].mxu0 }
 0x680   : > { %v4327_v30 = vpop.f32.mrb[211].mxu0  ;;  %v4336_v34 = vadd.f32 %v6190_v13, %v7506_v63  ;;  %v4437_v39 = vmax.f32 %v4333_v33, 0.0 }
 0x681   : > { %v4435_v31 = vmax.f32 %v4325_v14, 0.0  ;;  %v4328_v32 = vadd.f32 %v7506_v63, %v4327_v30  ;;  %6305 = vmatmul.mubr.f32.gmra.mrb[14].mxu0 %v4434_v27 }
 0x682   : > { %v4438_v9 = vmax.f32 %v4336_v34, 0.0 }
 0x683   : > { %v4436_v36 = vmax.f32 %v4328_v32, 0.0  ;;  %6307 = vmatprep.mubr.f32.mxu0 %v4435_v31 }
 0x685   : > { %v6193_v40 = vpop.f32.mrb[212].mxu0  ;;  %6308 = vmatmul.mubr.f32.gmra.mrb[16].mxu0 %v4436_v36 }
 0x686   : > { %v4340_v44 = vpop.f32.mrb[213].mxu0  ;;  %6310 = vmatprep.mubr.f32.mxu0 %v4437_v39  ;;  %v4349_v52 = vadd.f32 %v6193_v40, %v7506_v63 }
 0x687   : > { %v4341_v47 = vadd.f32 %v7506_v63, %v4340_v44  ;;  %v6194_v48 = vpop.f32.mrb[214].mxu0 }
 0x688   : > { %v4343_v53 = vpop.f32.mrb[215].mxu0  ;;  %v4352_v59 = vadd.f32 %v6194_v48, %v7506_v63  ;;  %v4441_v60 = vmax.f32 %v4349_v52, 0.0 }
 0x689   : > { %v4439_v55 = vmax.f32 %v4341_v47, 0.0  ;;  %v4344_v54 = vadd.f32 %v7506_v63, %v4343_v53  ;;  %6311 = vmatmul.mubr.f32.gmra.mrb[18].mxu0 %v4438_v9 }
 0x68a   : > { %v4442_v51 = vmax.f32 %v4352_v59, 0.0 }
 0x68b   : > { %v4440_v12 = vmax.f32 %v4344_v54, 0.0  ;;  %6313 = vmatprep.mubr.f32.mxu0 %v4439_v55 }
 0x68d   : > { %v6197_v22 = vpop.f32.mrb[216].mxu0  ;;  %6314 = vmatmul.mubr.f32.gmra.mrb[20].mxu0 %v4440_v12 }
 0x68e   : > { %v4356_v29 = vpop.f32.mrb[217].mxu0  ;;  %6316 = vmatprep.mubr.f32.mxu0 %v4441_v60  ;;  %v4365_v10 = vadd.f32 %v6197_v22, %v7506_v63 }
 0x68f   : > { %v4357_v58 = vadd.f32 %v7506_v63, %v4356_v29  ;;  %v6198_v2 = vpop.f32.mrb[218].mxu0 }
 0x690   : > { %v4359_v18 = vpop.f32.mrb[219].mxu0  ;;  %v4368_v41 = vadd.f32 %v6198_v2, %v7506_v63  ;;  %v4445_v25 = vmax.f32 %v4365_v10, 0.0 }
 0x691   : > { %v4443_v26 = vmax.f32 %v4357_v58, 0.0  ;;  %v4360_v35 = vadd.f32 %v7506_v63, %v4359_v18  ;;  %6317 = vmatmul.mubr.f32.gmra.mrb[22].mxu0 %v4442_v51 }
 0x692   : > { %v4446_v37 = vmax.f32 %v4368_v41, 0.0 }
 0x693   : > { %v4444_v50 = vmax.f32 %v4360_v35, 0.0  ;;  %6319 = vmatprep.mubr.f32.mxu0 %v4443_v26 }
 0x695   : > { %v6201_v57 = vpop.f32.mrb[220].mxu0  ;;  %6320 = vmatmul.mubr.f32.gmra.mrb[24].mxu0 %v4444_v50 }
 0x696   : > { %v4372_v3 = vpop.f32.mrb[221].mxu0  ;;  %6322 = vmatprep.mubr.f32.mxu0 %v4445_v25  ;;  %v4381_v28 = vadd.f32 %v6201_v57, %v7506_v63 }
 0x697   : > { %v4373_v11 = vadd.f32 %v7506_v63, %v4372_v3  ;;  %v6202_v20 = vpop.f32.mrb[222].mxu0 }
 0x698   : > { %v4375_v46 = vpop.f32.mrb[223].mxu0  ;;  %v4384_v42 = vadd.f32 %v6202_v20, %v7506_v63  ;;  %v4449_v17 = vmax.f32 %v4381_v28, 0.0 }
 0x699   : > { %v4447_v0 = vmax.f32 %v4373_v11, 0.0  ;;  %v4376_v21 = vadd.f32 %v7506_v63, %v4375_v46  ;;  %6323 = vmatmul.mubr.f32.gmra.mrb[26].mxu0 %v4446_v37 }
 0x69a   : > { %v4450_v38 = vmax.f32 %v4384_v42, 0.0 }
 0x69b   : > { %v4448_v16 = vmax.f32 %v4376_v21, 0.0  ;;  %6325 = vmatprep.mubr.f32.mxu0 %v4447_v0 }
 0x69d   : > { %6326 = vmatmul.mubr.f32.gmra.mrb[28].mxu0 %v4448_v16 }
 0x69e   : > { %6328 = vmatprep.mubr.f32.mxu0 %v4449_v17 }
 0x6a1   : > { %6329 = vmatmul.mubr.f32.gmra.mrb[30].mxu0 %v4450_v38 }
 0x6f8   : > { %v6237_v63 = vpop.f32.mrb[224].mxu0 }
 0x6f9   : > { %v4546_v43 = vadd.f32 %v6237_v63, %v7575_v61  ;;  %v4540_v45 = vpop.f32.mrb[225].mxu0 }
 0x6fa   : > { %v4541_v56 = vadd.f32 %v7575_v61, %v4540_v45 }
 0x6fb   : > { %4861 = vst.msk [vmem:[%s7582_s24 + $0x8] sm:$0xff] %vm4859_vm2, %v4546_v43 }
 0x6fc   : > { %4860 = vst.msk [vmem:[%s7582_s24] sm:$0xff] %vm4859_vm2, %v4541_v56  ;;  %v6240_v62 = vpop.f32.mrb[226].mxu0 }
 0x6fd   : > { %v4556_v1 = vadd.f32 %v6240_v62, %v7575_v61  ;;  %v4550_v4 = vpop.f32.mrb[227].mxu0 }
 0x6fe   : > { %v4551_v5 = vadd.f32 %v7575_v61, %v4550_v4 }
 0x6ff   : > { %4863 = vst.msk [vmem:[%s7582_s24 + $0x18] sm:$0xff] %vm4859_vm2, %v4556_v1 }
 0x700   : > { %4862 = vst.msk [vmem:[%s7582_s24 + $0x10] sm:$0xff] %vm4859_vm2, %v4551_v5  ;;  %v6243_v6 = vpop.f32.mrb[228].mxu0 }
 0x701   : > { %v4566_v7 = vadd.f32 %v6243_v6, %v7575_v61  ;;  %v4560_v8 = vpop.f32.mrb[229].mxu0 }
 0x702   : > { %v4561_v15 = vadd.f32 %v7575_v61, %v4560_v8 }
 0x703   : > { %4865 = vst.msk [vmem:[%s7582_s24 + $0x28] sm:$0xff] %vm4859_vm2, %v4566_v7 }
 0x704   : > { %4864 = vst.msk [vmem:[%s7582_s24 + $0x20] sm:$0xff] %vm4859_vm2, %v4561_v15  ;;  %v6246_v49 = vpop.f32.mrb[230].mxu0 }
 0x705   : > { %v4576_v19 = vadd.f32 %v6246_v49, %v7575_v61  ;;  %v4570_v23 = vpop.f32.mrb[231].mxu0 }
 0x706   : > { %v4571_v24 = vadd.f32 %v7575_v61, %v4570_v23 }
 0x707   : > { %4867 = vst.msk [vmem:[%s7582_s24 + $0x38] sm:$0xff] %vm4859_vm2, %v4576_v19 }
 0x708   : > { %4866 = vst.msk [vmem:[%s7582_s24 + $0x30] sm:$0xff] %vm4859_vm2, %v4571_v24  ;;  %v6249_v27 = vpop.f32.mrb[232].mxu0 }
 0x709   : > { %v4586_v14 = vadd.f32 %v6249_v27, %v7575_v61  ;;  %v4580_v13 = vpop.f32.mrb[233].mxu0 }
 0x70a   : > { %v4581_v33 = vadd.f32 %v7575_v61, %v4580_v13 }
 0x70b   : > { %4869 = vst.msk [vmem:[%s7582_s24 + $0x48] sm:$0xff] %vm4859_vm2, %v4586_v14 }
 0x70c   : > { %4868 = vst.msk [vmem:[%s7582_s24 + $0x40] sm:$0xff] %vm4859_vm2, %v4581_v33  ;;  %v6252_v30 = vpop.f32.mrb[234].mxu0 }
 0x70d   : > { %v4596_v31 = vadd.f32 %v6252_v30, %v7575_v61  ;;  %v4590_v32 = vpop.f32.mrb[235].mxu0 }
 0x70e   : > { %v4591_v34 = vadd.f32 %v7575_v61, %v4590_v32 }
 0x70f   : > { %4871 = vst.msk [vmem:[%s7582_s24 + $0x58] sm:$0xff] %vm4859_vm2, %v4596_v31 }
 0x710   : > { %4870 = vst.msk [vmem:[%s7582_s24 + $0x50] sm:$0xff] %vm4859_vm2, %v4591_v34  ;;  %v6255_v36 = vpop.f32.mrb[236].mxu0 }
 0x711   : > { %v4606_v39 = vadd.f32 %v6255_v36, %v7575_v61  ;;  %v4600_v40 = vpop.f32.mrb[237].mxu0 }
 0x712   : > { %v4601_v44 = vadd.f32 %v7575_v61, %v4600_v40 }
 0x713   : > { %4873 = vst.msk [vmem:[%s7582_s24 + $0x68] sm:$0xff] %vm4859_vm2, %v4606_v39 }
 0x714   : > { %4872 = vst.msk [vmem:[%s7582_s24 + $0x60] sm:$0xff] %vm4859_vm2, %v4601_v44  ;;  %v6258_v9 = vpop.f32.mrb[238].mxu0 }
 0x715   : > { %v4616_v47 = vadd.f32 %v6258_v9, %v7575_v61  ;;  %v4610_v48 = vpop.f32.mrb[239].mxu0 }
 0x716   : > { %v4611_v52 = vadd.f32 %v7575_v61, %v4610_v48 }
 0x717   : > { %4875 = vst.msk [vmem:[%s7582_s24 + $0x78] sm:$0xff] %vm4859_vm2, %v4616_v47 }
 0x718   : > { %4874 = vst.msk [vmem:[%s7582_s24 + $0x70] sm:$0xff] %vm4859_vm2, %v4611_v52  ;;  %v6261_v53 = vpop.f32.mrb[240].mxu0 }
 0x719   : > { %v4626_v55 = vadd.f32 %v6261_v53, %v7575_v61  ;;  %v4620_v54 = vpop.f32.mrb[241].mxu0 }
 0x71a   : > { %v4621_v59 = vadd.f32 %v7575_v61, %v4620_v54 }
 0x71b   : > { %4877 = vst.msk [vmem:[%s7582_s24 + $0x88] sm:$0xff] %vm4859_vm2, %v4626_v55 }
 0x71c   : > { %4876 = vst.msk [vmem:[%s7582_s24 + $0x80] sm:$0xff] %vm4859_vm2, %v4621_v59  ;;  %v6264_v12 = vpop.f32.mrb[242].mxu0 }
 0x71d   : > { %v4636_v60 = vadd.f32 %v6264_v12, %v7575_v61  ;;  %v4630_v22 = vpop.f32.mrb[243].mxu0 }
 0x71e   : > { %v4631_v29 = vadd.f32 %v7575_v61, %v4630_v22 }
 0x71f   : > { %4879 = vst.msk [vmem:[%s7582_s24 + $0x98] sm:$0xff] %vm4859_vm2, %v4636_v60 }
 0x720   : > { %4878 = vst.msk [vmem:[%s7582_s24 + $0x90] sm:$0xff] %vm4859_vm2, %v4631_v29  ;;  %v6267_v51 = vpop.f32.mrb[244].mxu0 }
 0x721   : > { %v4646_v58 = vadd.f32 %v6267_v51, %v7575_v61  ;;  %v4640_v2 = vpop.f32.mrb[245].mxu0 }
 0x722   : > { %v4641_v10 = vadd.f32 %v7575_v61, %v4640_v2 }
 0x723   : > { %4881 = vst.msk [vmem:[%s7582_s24 + $0xa8] sm:$0xff] %vm4859_vm2, %v4646_v58 }
 0x724   : > { %4880 = vst.msk [vmem:[%s7582_s24 + $0xa0] sm:$0xff] %vm4859_vm2, %v4641_v10  ;;  %v6270_v18 = vpop.f32.mrb[246].mxu0 }
 0x725   : > { %v4656_v26 = vadd.f32 %v6270_v18, %v7575_v61  ;;  %v4650_v35 = vpop.f32.mrb[247].mxu0 }
 0x726   : > { %v4651_v41 = vadd.f32 %v7575_v61, %v4650_v35 }
 0x727   : > { %4883 = vst.msk [vmem:[%s7582_s24 + $0xb8] sm:$0xff] %vm4859_vm2, %v4656_v26 }
 0x728   : > { %4882 = vst.msk [vmem:[%s7582_s24 + $0xb0] sm:$0xff] %vm4859_vm2, %v4651_v41  ;;  %v6273_v50 = vpop.f32.mrb[248].mxu0 }
 0x729   : > { %v4666_v25 = vadd.f32 %v6273_v50, %v7575_v61  ;;  %v4660_v57 = vpop.f32.mrb[249].mxu0 }
 0x72a   : > { %v4661_v3 = vadd.f32 %v7575_v61, %v4660_v57 }
 0x72b   : > { %4885 = vst.msk [vmem:[%s7582_s24 + $0xc8] sm:$0xff] %vm4859_vm2, %v4666_v25 }
 0x72c   : > { %4884 = vst.msk [vmem:[%s7582_s24 + $0xc0] sm:$0xff] %vm4859_vm2, %v4661_v3  ;;  %v6276_v37 = vpop.f32.mrb[250].mxu0 }
 0x72d   : > { %v4676_v11 = vadd.f32 %v6276_v37, %v7575_v61  ;;  %v4670_v20 = vpop.f32.mrb[251].mxu0 }
 0x72e   : > { %v4671_v28 = vadd.f32 %v7575_v61, %v4670_v20 }
 0x72f   : > { %4887 = vst.msk [vmem:[%s7582_s24 + $0xd8] sm:$0xff] %vm4859_vm2, %v4676_v11 }
 0x730   : > { %4886 = vst.msk [vmem:[%s7582_s24 + $0xd0] sm:$0xff] %vm4859_vm2, %v4671_v28  ;;  %v6279_v46 = vpop.f32.mrb[252].mxu0 }
 0x731   : > { %v4686_v0 = vadd.f32 %v6279_v46, %v7575_v61  ;;  %v4680_v21 = vpop.f32.mrb[253].mxu0 }
 0x732   : > { %v4681_v42 = vadd.f32 %v7575_v61, %v4680_v21 }
 0x733   : > { %4889 = vst.msk [vmem:[%s7582_s24 + $0xe8] sm:$0xff] %vm4859_vm2, %v4686_v0 }
 0x734   : > { %4888 = vst.msk [vmem:[%s7582_s24 + $0xe0] sm:$0xff] %vm4859_vm2, %v4681_v42  ;;  %v6282_v16 = vpop.f32.mrb[254].mxu0 }
 0x735   : > { %v4696_v17 = vadd.f32 %v6282_v16, %v7575_v61  ;;  %v4690_v38 = vpop.f32.mrb[255].mxu0 }
 0x736   : > { %v4691_v63 = vadd.f32 %v7575_v61, %v4690_v38 }
 0x737   : > { %4891 = vst.msk [vmem:[%s7582_s24 + $0xf8] sm:$0xff] %vm4859_vm2, %v4696_v17 }
 0x738   : > { %4890 = vst.msk [vmem:[%s7582_s24 + $0xf0] sm:$0xff] %vm4859_vm2, %v4691_v63  ;;  %v6285_v43 = vpop.f32.mrb[0].mxu0 }
 0x739   : > { %v4706_v45 = vadd.f32 %v6285_v43, %v7575_v61  ;;  %v4700_v56 = vpop.f32.mrb[1].mxu0 }
 0x73a   : > { %v4701_v62 = vadd.f32 %v7575_v61, %v4700_v56 }
 0x73b   : > { %4893 = vst.msk [vmem:[%s7582_s24 + $0x108] sm:$0xff] %vm4859_vm2, %v4706_v45 }
 0x73c   : > { %4892 = vst.msk [vmem:[%s7582_s24 + $0x100] sm:$0xff] %vm4859_vm2, %v4701_v62  ;;  %v6288_v1 = vpop.f32.mrb[2].mxu0 }
 0x73d   : > { %v4716_v4 = vadd.f32 %v6288_v1, %v7575_v61  ;;  %v4710_v5 = vpop.f32.mrb[3].mxu0 }
 0x73e   : > { %v4711_v6 = vadd.f32 %v7575_v61, %v4710_v5 }
 0x73f   : > { %4895 = vst.msk [vmem:[%s7582_s24 + $0x118] sm:$0xff] %vm4859_vm2, %v4716_v4 }
 0x740   : > { %4894 = vst.msk [vmem:[%s7582_s24 + $0x110] sm:$0xff] %vm4859_vm2, %v4711_v6  ;;  %v6291_v7 = vpop.f32.mrb[4].mxu0 }
 0x741   : > { %v4726_v8 = vadd.f32 %v6291_v7, %v7575_v61  ;;  %v4720_v15 = vpop.f32.mrb[5].mxu0 }
 0x742   : > { %v4721_v49 = vadd.f32 %v7575_v61, %v4720_v15 }
 0x743   : > { %4897 = vst.msk [vmem:[%s7582_s24 + $0x128] sm:$0xff] %vm4859_vm2, %v4726_v8 }
 0x744   : > { %4896 = vst.msk [vmem:[%s7582_s24 + $0x120] sm:$0xff] %vm4859_vm2, %v4721_v49  ;;  %v6294_v19 = vpop.f32.mrb[6].mxu0 }
 0x745   : > { %v4736_v23 = vadd.f32 %v6294_v19, %v7575_v61  ;;  %v4730_v24 = vpop.f32.mrb[7].mxu0 }
 0x746   : > { %v4731_v27 = vadd.f32 %v7575_v61, %v4730_v24 }
 0x747   : > { %4899 = vst.msk [vmem:[%s7582_s24 + $0x138] sm:$0xff] %vm4859_vm2, %v4736_v23 }
 0x748   : > { %4898 = vst.msk [vmem:[%s7582_s24 + $0x130] sm:$0xff] %vm4859_vm2, %v4731_v27  ;;  %v6297_v14 = vpop.f32.mrb[8].mxu0 }
 0x749   : > { %v4746_v13 = vadd.f32 %v6297_v14, %v7575_v61  ;;  %v4740_v33 = vpop.f32.mrb[9].mxu0 }
 0x74a   : > { %v4741_v30 = vadd.f32 %v7575_v61, %v4740_v33 }
 0x74b   : > { %4901 = vst.msk [vmem:[%s7582_s24 + $0x148] sm:$0xff] %vm4859_vm2, %v4746_v13 }
 0x74c   : > { %4900 = vst.msk [vmem:[%s7582_s24 + $0x140] sm:$0xff] %vm4859_vm2, %v4741_v30  ;;  %v6300_v31 = vpop.f32.mrb[10].mxu0 }
 0x74d   : > { %v4756_v32 = vadd.f32 %v6300_v31, %v7575_v61  ;;  %v4750_v34 = vpop.f32.mrb[11].mxu0 }
 0x74e   : > { %v4751_v36 = vadd.f32 %v7575_v61, %v4750_v34 }
 0x74f   : > { %4903 = vst.msk [vmem:[%s7582_s24 + $0x158] sm:$0xff] %vm4859_vm2, %v4756_v32 }
 0x750   : > { %4902 = vst.msk [vmem:[%s7582_s24 + $0x150] sm:$0xff] %vm4859_vm2, %v4751_v36  ;;  %v6303_v39 = vpop.f32.mrb[12].mxu0 }
 0x751   : > { %v4766_v40 = vadd.f32 %v6303_v39, %v7575_v61  ;;  %v4760_v44 = vpop.f32.mrb[13].mxu0 }
 0x752   : > { %v4761_v9 = vadd.f32 %v7575_v61, %v4760_v44 }
 0x753   : > { %4905 = vst.msk [vmem:[%s7582_s24 + $0x168] sm:$0xff] %vm4859_vm2, %v4766_v40 }
 0x754   : > { %4904 = vst.msk [vmem:[%s7582_s24 + $0x160] sm:$0xff] %vm4859_vm2, %v4761_v9  ;;  %v6306_v47 = vpop.f32.mrb[14].mxu0 }
 0x755   : > { %v4776_v48 = vadd.f32 %v6306_v47, %v7575_v61  ;;  %v4770_v52 = vpop.f32.mrb[15].mxu0 }
 0x756   : > { %v4771_v53 = vadd.f32 %v7575_v61, %v4770_v52 }
 0x757   : > { %4907 = vst.msk [vmem:[%s7582_s24 + $0x178] sm:$0xff] %vm4859_vm2, %v4776_v48 }
 0x758   : > { %4906 = vst.msk [vmem:[%s7582_s24 + $0x170] sm:$0xff] %vm4859_vm2, %v4771_v53  ;;  %v6309_v55 = vpop.f32.mrb[16].mxu0 }
 0x759   : > { %v4786_v54 = vadd.f32 %v6309_v55, %v7575_v61  ;;  %v4780_v59 = vpop.f32.mrb[17].mxu0 }
 0x75a   : > { %v4781_v12 = vadd.f32 %v7575_v61, %v4780_v59 }
 0x75b   : > { %4909 = vst.msk [vmem:[%s7582_s24 + $0x188] sm:$0xff] %vm4859_vm2, %v4786_v54 }
 0x75c   : > { %4908 = vst.msk [vmem:[%s7582_s24 + $0x180] sm:$0xff] %vm4859_vm2, %v4781_v12  ;;  %v6312_v60 = vpop.f32.mrb[18].mxu0 }
 0x75d   : > { %v4796_v22 = vadd.f32 %v6312_v60, %v7575_v61  ;;  %v4790_v29 = vpop.f32.mrb[19].mxu0 }
 0x75e   : > { %v4791_v51 = vadd.f32 %v7575_v61, %v4790_v29 }
 0x75f   : > { %4911 = vst.msk [vmem:[%s7582_s24 + $0x198] sm:$0xff] %vm4859_vm2, %v4796_v22 }
 0x760   : > { %4910 = vst.msk [vmem:[%s7582_s24 + $0x190] sm:$0xff] %vm4859_vm2, %v4791_v51  ;;  %v6315_v58 = vpop.f32.mrb[20].mxu0 }
 0x761   : > { %v4806_v2 = vadd.f32 %v6315_v58, %v7575_v61  ;;  %v4800_v10 = vpop.f32.mrb[21].mxu0 }
 0x762   : > { %v4801_v18 = vadd.f32 %v7575_v61, %v4800_v10 }
 0x763   : > { %4913 = vst.msk [vmem:[%s7582_s24 + $0x1a8] sm:$0xff] %vm4859_vm2, %v4806_v2 }
 0x764   : > { %4912 = vst.msk [vmem:[%s7582_s24 + $0x1a0] sm:$0xff] %vm4859_vm2, %v4801_v18  ;;  %v6318_v26 = vpop.f32.mrb[22].mxu0 }
 0x765   : > { %v4816_v35 = vadd.f32 %v6318_v26, %v7575_v61  ;;  %v4810_v41 = vpop.f32.mrb[23].mxu0 }
 0x766   : > { %v4811_v50 = vadd.f32 %v7575_v61, %v4810_v41 }
 0x767   : > { %4915 = vst.msk [vmem:[%s7582_s24 + $0x1b8] sm:$0xff] %vm4859_vm2, %v4816_v35 }
 0x768   : > { %4914 = vst.msk [vmem:[%s7582_s24 + $0x1b0] sm:$0xff] %vm4859_vm2, %v4811_v50  ;;  %v6321_v25 = vpop.f32.mrb[24].mxu0 }
 0x769   : > { %v4826_v57 = vadd.f32 %v6321_v25, %v7575_v61  ;;  %v4820_v3 = vpop.f32.mrb[25].mxu0 }
 0x76a   : > { %v4821_v37 = vadd.f32 %v7575_v61, %v4820_v3 }
 0x76b   : > { %4917 = vst.msk [vmem:[%s7582_s24 + $0x1c8] sm:$0xff] %vm4859_vm2, %v4826_v57 }
 0x76c   : > { %4916 = vst.msk [vmem:[%s7582_s24 + $0x1c0] sm:$0xff] %vm4859_vm2, %v4821_v37  ;;  %v6324_v11 = vpop.f32.mrb[26].mxu0 }
 0x76d   : > { %v4836_v20 = vadd.f32 %v6324_v11, %v7575_v61  ;;  %v4830_v28 = vpop.f32.mrb[27].mxu0 }
 0x76e   : > { %v4831_v46 = vadd.f32 %v7575_v61, %v4830_v28 }
 0x76f   : > { %4919 = vst.msk [vmem:[%s7582_s24 + $0x1d8] sm:$0xff] %vm4859_vm2, %v4836_v20 }
 0x770   : > { %4918 = vst.msk [vmem:[%s7582_s24 + $0x1d0] sm:$0xff] %vm4859_vm2, %v4831_v46  ;;  %v6327_v0 = vpop.f32.mrb[28].mxu0 }
 0x771   : > { %v4846_v21 = vadd.f32 %v6327_v0, %v7575_v61  ;;  %v4840_v42 = vpop.f32.mrb[29].mxu0 }
 0x772   : > { %v4841_v16 = vadd.f32 %v7575_v61, %v4840_v42 }
 0x773   : > { %4921 = vst.msk [vmem:[%s7582_s24 + $0x1e8] sm:$0xff] %vm4859_vm2, %v4846_v21 }
 0x774   : > { %4920 = vst.msk [vmem:[%s7582_s24 + $0x1e0] sm:$0xff] %vm4859_vm2, %v4841_v16  ;;  %v6330_v17 = vpop.f32.mrb[30].mxu0 }
 0x775   : > { %v4856_v38 = vadd.f32 %v6330_v17, %v7575_v61  ;;  %v4850_v63 = vpop.f32.mrb[31].mxu0 }
 0x776   : > { %v4851_v43 = vadd.f32 %v7575_v61, %v4850_v63 }
 0x777   : > { %4923 = vst.msk [vmem:[%s7582_s24 + $0x1f8] sm:$0xff] %vm4859_vm2, %v4856_v38 }
 0x778   : > { %4922 = vst.msk [vmem:[%s7582_s24 + $0x1f0] sm:$0xff] %vm4859_vm2, %v4851_v43 }
 0x779 PF: > { %s28_s27 = sadd.s32 1, %s6499_s27  }
 0x77a   : > { %p25_p4 = scmp.ge.s32.totalorder %s28_s27, 4  }
 0x77c   :  { %27 = sbr.rel (!%p25_p4) target bundleno = 4 (0x4), region = 122 }

</bundles_post_ra>
